<compile_context>
chip_gen: v7x
topology: tpu7x:2x2x1
jax: 0.10.0
libtpu: 0.0.40
codegen_flags: <defaults>
</compile_context>

<pallas_src>
import jax
import jax.numpy as jnp
import numpy as np
from jax.experimental import pallas as pl
from jax.experimental.pallas import tpu as pltpu

H1, H2, H3 = 1024, 512, 300
H3P = 384        # 300 padded to a lane multiple
OUTP = 128       # lane-dense output: q1 in col 0, q2 in col 1


# ----------------------------- Pallas kernel -------------------------------
def _critic_kernel(x_ref, a_ref,
                   w1x_ref, w1a_ref, b15_ref,
                   w2_ref, b2_ref, w6_ref, b6_ref,
                   w3_ref, b3_ref, w7_ref, b7_ref,
                   w48_ref, b48_ref,
                   q_ref):
    """Fused twin-Q MLP over one batch tile. Weights resident in VMEM."""
    x = x_ref[...].astype(jnp.bfloat16)                       # (TM, obs)
    a = a_ref[...].astype(jnp.bfloat16)                       # (TM, act)

    # Fused layer 1 of both heads, split by operand so no concat is needed:
    # h = [x a] @ [W1 W5]  ==  x @ W1x + a @ W1a      -> (TM, 2048) f32
    h = (jnp.dot(x, w1x_ref[...], preferred_element_type=jnp.float32)
         + jnp.dot(a, w1a_ref[...], preferred_element_type=jnp.float32))
    h = jnp.maximum(h + b15_ref[...], 0.0)
    h1 = h[:, :H1].astype(jnp.bfloat16)                       # head-1 act
    h5 = h[:, H1:].astype(jnp.bfloat16)                       # head-2 act

    def mid(hin, w_r, b_r):
        o = jnp.dot(hin, w_r[...], preferred_element_type=jnp.float32)
        return jnp.maximum(o + b_r[...], 0.0).astype(jnp.bfloat16)

    h2 = mid(h1, w2_ref, b2_ref)                              # (TM, 512)
    h6 = mid(h5, w6_ref, b6_ref)
    h3 = mid(h2, w3_ref, b3_ref)                              # (TM, 384)
    h7 = mid(h6, w7_ref, b7_ref)

    # Fused final layers of both heads: one (TM, 768) x (768, 128) matmul.
    # Columns 0/1 of the stacked weight hold w4/w8 -> q1 in col 0, q2 in col 1.
    h37 = jnp.concatenate([h3, h7], axis=1)                   # (TM, 768) bf16
    q = jnp.dot(h37, w48_ref[...], preferred_element_type=jnp.float32)
    q_ref[...] = q + b48_ref[...]


# ------------------------------- utilities ---------------------------------
def _round_up(n, m):
    return ((n + m - 1) // m) * m


def _pad2d(x, rows, cols, row_off=0, col_off=0):
    return jnp.pad(x, ((row_off, rows - x.shape[0] - row_off),
                       (col_off, cols - x.shape[1] - col_off)))


def _init_linear(key, in_dim, out_dim):
    """PyTorch nn.Linear default init: U(-1/sqrt(fan_in), 1/sqrt(fan_in)).

    Weight returned pre-transposed to (in_dim, out_dim), bias as (1, out_dim).
    """
    kw, kb = jax.random.split(key)
    bound = 1.0 / np.sqrt(in_dim)
    w = jax.random.uniform(kw, (in_dim, out_dim), jnp.float32, -bound, bound)
    b = jax.random.uniform(kb, (1, out_dim), jnp.float32, -bound, bound)
    return w, b


def init_critic_params(key, obs_dim, action_dim):
    d_in = obs_dim + action_dim
    sizes = [(d_in, H1), (H1, H2), (H2, H3), (H3, 1)] * 2
    keys = jax.random.split(key, len(sizes))
    return [_init_linear(k, i, o) for k, (i, o) in zip(keys, sizes)]


def prepare_critic_params(params, obs_dim, action_dim):
    """One-time prep: fuse/pad to TPU tiles and cast weights to bf16.

    Zero padding is semantics-preserving (zero weight rows/cols, relu(0)=0).
    Biases stay f32 (added to the f32 accumulator).
    """
    (w1, b1), (w2, b2), (w3, b3), (w4, b4), \
        (w5, b5), (w6, b6), (w7, b7), (w8, b8) = params

    bf = jnp.bfloat16
    f32 = jnp.float32

    # Fused first layer of both heads, split by input operand so the kernel
    # can consume x and a directly (no wrapper concat / lane padding).
    w15 = jnp.concatenate([w1, w5], axis=1)                    # (obs+act, 2048)
    w1x = w15[:obs_dim].astype(bf)                             # (obs, 2048)
    w1a = w15[obs_dim:].astype(bf)                             # (act, 2048)
    b15 = jnp.concatenate([b1, b5], axis=1).astype(f32)        # (1, 2048)

    w2p = w2.astype(bf)
    w6p = w6.astype(bf)
    b2p = b2.astype(f32)
    b6p = b6.astype(f32)

    w3p = _pad2d(w3, H2, H3P).astype(bf)
    w7p = _pad2d(w7, H2, H3P).astype(bf)
    b3p = _pad2d(b3, 1, H3P).astype(f32)
    b7p = _pad2d(b7, 1, H3P).astype(f32)

    # Stacked final layer: [h3 | h7] @ w48; q1 in output column 0, q2 in col 1.
    w48 = jnp.concatenate([_pad2d(w4, H3P, OUTP, col_off=0),
                           _pad2d(w8, H3P, OUTP, col_off=1)], axis=0).astype(bf)
    b48 = (_pad2d(b4, 1, OUTP, col_off=0)
           + _pad2d(b8, 1, OUTP, col_off=1)).astype(f32)

    return (w1x, w1a, b15, w2p, b2p, w6p, b6p, w3p, b3p, w7p, b7p, w48, b48)


# ------------------------------- wrapper ------------------------------------
@jax.jit
def critic_forward(prepared, x, a):
    (w1x, w1a, b15, w2p, b2p, w6p, b6p,
     w3p, b3p, w7p, b7p, w48, b48) = prepared

    B, obs_dim = x.shape
    act_dim = a.shape[1]

    # TensorCore-aware batch tiling:
    #   B <= 128          : single tile (rounded to 16 for bf16 sublanes)
    #   128 < B <= 1024   : exactly 2 tiles -> "parallel" axis uses both v7x TCs
    #   B > 1024          : 512-row tiles, pipelined activation DMA
    if B <= 128:
        TM = _round_up(max(B, 16), 16)
        Bp = TM
    elif B <= 1024:
        TM = _round_up(-(-B // 2), 16)
        Bp = 2 * TM
    else:
        TM = 512
        Bp = _round_up(B, TM)

    if Bp != B:   # cheap: pads only the raw (B, obs)/(B, act) inputs
        x = jnp.pad(x, ((0, Bp - B), (0, 0)))
        a = jnp.pad(a, ((0, Bp - B), (0, 0)))

    const = lambda i: (0, 0)   # weights/biases: same block every grid step
    weights = (w1x, w1a, b15, w2p, b2p, w6p, b6p, w3p, b3p, w7p, b7p, w48, b48)
    # TODO(synk): pipeline_mode=pl.Buffered(1) on these constant blocks (and
    # pinning the ~3 MiB of bf16 weights VMEM-resident across calls for the
    # DMA-bound small-batch path) would shave the remaining overhead; omitted
    # here to keep the kernel portable across jax versions.
    weight_specs = [pl.BlockSpec(w.shape, const) for w in weights]

    q = pl.pallas_call(
        _critic_kernel,
        out_shape=jax.ShapeDtypeStruct((Bp, OUTP), jnp.float32),
        grid_spec=pltpu.PrefetchScalarGridSpec(
            num_scalar_prefetch=0,
            grid=(Bp // TM,),
            in_specs=[pl.BlockSpec((TM, obs_dim), lambda i: (i, 0)),
                      pl.BlockSpec((TM, act_dim), lambda i: (i, 0))]
                     + weight_specs,
            out_specs=pl.BlockSpec((TM, OUTP), lambda i: (i, 0)),
        ),
        compiler_params=pltpu.CompilerParams(
            dimension_semantics=("parallel",),
            vmem_limit_bytes=32 << 20),
    )(x, a, *weights)

    return q[:B, 0:1], q[:B, 1:2]


# --------------------------- pure-JAX reference ------------------------------
def critic_forward_ref_bf16(params, x, a):
    """Reference mirroring the kernel math (bf16 weights, f32 accumulation)."""
    xa = jnp.concatenate([x, a], axis=1).astype(jnp.bfloat16)

    def head(ps):
        h = xa
        for i, (w, b) in enumerate(ps):
            o = jnp.dot(h, w.astype(jnp.bfloat16),
                        preferred_element_type=jnp.float32) + b
            h = jnp.maximum(o, 0.0).astype(jnp.bfloat16) if i < 3 else o
        return h

    return head(params[:4]), head(params[4:])


# ----------------------------------- main ------------------------------------
if __name__ == "__main__":
    obs_dim, action_dim, batch = 16, 8, 2

    root = jax.random.PRNGKey(0)
    k_params, k_x, k_a = jax.random.split(root, 3)

    params = init_critic_params(k_params, obs_dim, action_dim)
    prepared = jax.block_until_ready(
        prepare_critic_params(params, obs_dim, action_dim))

    x = jax.random.normal(k_x, (batch, obs_dim), jnp.float32)
    a = jax.random.normal(k_a, (batch, action_dim), jnp.float32)

    q1, q2 = critic_forward(prepared, x, a)
    jax.block_until_ready((q1, q2))

    q1_ref, q2_ref = critic_forward_ref_bf16(params, x, a)
    np.testing.assert_allclose(np.asarray(q1), np.asarray(q1_ref),
                               rtol=5e-3, atol=5e-3)
    np.testing.assert_allclose(np.asarray(q2), np.asarray(q2_ref),
                               rtol=5e-3, atol=5e-3)

    assert q1.shape == (batch, 1) and q2.shape == (batch, 1)
    print("KERNEL_OK")
</pallas_src>

<mosaic_0001>
module attributes {stable_mosaic.version = 11 : i64} {
  func.func @_critic_kernel(%arg0: i32, %arg1: memref<16x16xf32, #tpu.memory_space<vmem>>, %arg2: memref<16x8xf32, #tpu.memory_space<vmem>>, %arg3: memref<16x2048xbf16, #tpu.memory_space<vmem>>, %arg4: memref<8x2048xbf16, #tpu.memory_space<vmem>>, %arg5: memref<1x2048xf32, #tpu.memory_space<vmem>>, %arg6: memref<1024x512xbf16, #tpu.memory_space<vmem>>, %arg7: memref<1x512xf32, #tpu.memory_space<vmem>>, %arg8: memref<1024x512xbf16, #tpu.memory_space<vmem>>, %arg9: memref<1x512xf32, #tpu.memory_space<vmem>>, %arg10: memref<512x384xbf16, #tpu.memory_space<vmem>>, %arg11: memref<1x384xf32, #tpu.memory_space<vmem>>, %arg12: memref<512x384xbf16, #tpu.memory_space<vmem>>, %arg13: memref<1x384xf32, #tpu.memory_space<vmem>>, %arg14: memref<768x128xbf16, #tpu.memory_space<vmem>>, %arg15: memref<1x128xf32, #tpu.memory_space<vmem>>, %arg16: memref<16x128xf32, #tpu.memory_space<vmem>>) attributes {dimension_semantics = [#tpu.dimension_semantics<parallel>], iteration_bounds = array<i64: 1>, scalar_prefetch = 0 : i64, scratch_operands = 0 : i64, tpu.core_type = #tpu.core_type<tc>, window_params = [{transform_indices = @transform_0, window_bounds = array<i64: 16, 16>}, {transform_indices = @transform_1, window_bounds = array<i64: 16, 8>}, {pipeline_mode = #tpu.pipeline_mode<synchronous>, transform_indices = @transform_2, window_bounds = array<i64: 16, 2048>}, {pipeline_mode = #tpu.pipeline_mode<synchronous>, transform_indices = @transform_3, window_bounds = array<i64: 8, 2048>}, {pipeline_mode = #tpu.pipeline_mode<synchronous>, transform_indices = @transform_4, window_bounds = array<i64: 1, 2048>}, {pipeline_mode = #tpu.pipeline_mode<synchronous>, transform_indices = @transform_5, window_bounds = array<i64: 1024, 512>}, {pipeline_mode = #tpu.pipeline_mode<synchronous>, transform_indices = @transform_6, window_bounds = array<i64: 1, 512>}, {pipeline_mode = #tpu.pipeline_mode<synchronous>, transform_indices = @transform_7, window_bounds = array<i64: 1024, 512>}, {pipeline_mode = #tpu.pipeline_mode<synchronous>, transform_indices = @transform_8, window_bounds = array<i64: 1, 512>}, {pipeline_mode = #tpu.pipeline_mode<synchronous>, transform_indices = @transform_9, window_bounds = array<i64: 512, 384>}, {pipeline_mode = #tpu.pipeline_mode<synchronous>, transform_indices = @transform_10, window_bounds = array<i64: 1, 384>}, {pipeline_mode = #tpu.pipeline_mode<synchronous>, transform_indices = @transform_11, window_bounds = array<i64: 512, 384>}, {pipeline_mode = #tpu.pipeline_mode<synchronous>, transform_indices = @transform_12, window_bounds = array<i64: 1, 384>}, {pipeline_mode = #tpu.pipeline_mode<synchronous>, transform_indices = @transform_13, window_bounds = array<i64: 768, 128>}, {pipeline_mode = #tpu.pipeline_mode<synchronous>, transform_indices = @transform_14, window_bounds = array<i64: 1, 128>}, {transform_indices = @transform_15, window_bounds = array<i64: 16, 128>}]} {
    %c0 = arith.constant 0 : index
    %c0_0 = arith.constant 0 : index
    %0 = vector.load %arg1[%c0, %c0_0] : memref<16x16xf32, #tpu.memory_space<vmem>>, vector<16x16xf32>
    %1 = arith.truncf %0 : vector<16x16xf32> to vector<16x16xbf16>
    %c0_1 = arith.constant 0 : index
    %c0_2 = arith.constant 0 : index
    %2 = vector.load %arg2[%c0_1, %c0_2] : memref<16x8xf32, #tpu.memory_space<vmem>>, vector<16x8xf32>
    %3 = arith.truncf %2 : vector<16x8xf32> to vector<16x8xbf16>
    %c0_3 = arith.constant 0 : index
    %c0_4 = arith.constant 0 : index
    %4 = vector.load %arg3[%c0_3, %c0_4] : memref<16x2048xbf16, #tpu.memory_space<vmem>>, vector<16x2048xbf16>
    %cst = arith.constant dense<0.000000e+00> : vector<16x2048xf32>
    %5 = tpu.matmul %1, %4, %cst {dimension_numbers = #tpu.dot_dimension_numbers<[1], [0], [0], [1], [0, 0, 1, 1], [], []>} : vector<16x16xbf16>, vector<16x2048xbf16>, vector<16x2048xf32> -> vector<16x2048xf32>
    %c0_5 = arith.constant 0 : index
    %c0_6 = arith.constant 0 : index
    %6 = vector.load %arg4[%c0_5, %c0_6] : memref<8x2048xbf16, #tpu.memory_space<vmem>>, vector<8x2048xbf16>
    %cst_7 = arith.constant dense<0.000000e+00> : vector<16x2048xf32>
    %7 = tpu.matmul %3, %6, %cst_7 {dimension_numbers = #tpu.dot_dimension_numbers<[1], [0], [0], [1], [0, 0, 1, 1], [], []>} : vector<16x8xbf16>, vector<8x2048xbf16>, vector<16x2048xf32> -> vector<16x2048xf32>
    %8 = arith.addf %5, %7 : vector<16x2048xf32>
    %c0_8 = arith.constant 0 : index
    %c0_9 = arith.constant 0 : index
    %9 = vector.load %arg5[%c0_8, %c0_9] : memref<1x2048xf32, #tpu.memory_space<vmem>>, vector<1x2048xf32>
    %10 = vector.broadcast %9 : vector<1x2048xf32> to vector<16x2048xf32>
    %11 = arith.addf %8, %10 : vector<16x2048xf32>
    %cst_10 = arith.constant 0.000000e+00 : f32
    %12 = vector.broadcast %cst_10 : f32 to vector<16x2048xf32>
    %13 = arith.maximumf %11, %12 : vector<16x2048xf32>
    %14 = vector.extract_strided_slice %13 {offsets = [0, 0], sizes = [16, 1024], strides = [1, 1]} : vector<16x2048xf32> to vector<16x1024xf32>
    %15 = arith.truncf %14 : vector<16x1024xf32> to vector<16x1024xbf16>
    %16 = vector.extract_strided_slice %13 {offsets = [0, 1024], sizes = [16, 1024], strides = [1, 1]} : vector<16x2048xf32> to vector<16x1024xf32>
    %17 = arith.truncf %16 : vector<16x1024xf32> to vector<16x1024xbf16>
    %c0_11 = arith.constant 0 : index
    %c0_12 = arith.constant 0 : index
    %18 = vector.load %arg6[%c0_11, %c0_12] : memref<1024x512xbf16, #tpu.memory_space<vmem>>, vector<1024x512xbf16>
    %cst_13 = arith.constant dense<0.000000e+00> : vector<16x512xf32>
    %19 = tpu.matmul %15, %18, %cst_13 {dimension_numbers = #tpu.dot_dimension_numbers<[1], [0], [0], [1], [0, 0, 1, 1], [], []>} : vector<16x1024xbf16>, vector<1024x512xbf16>, vector<16x512xf32> -> vector<16x512xf32>
    %c0_14 = arith.constant 0 : index
    %c0_15 = arith.constant 0 : index
    %20 = vector.load %arg7[%c0_14, %c0_15] : memref<1x512xf32, #tpu.memory_space<vmem>>, vector<1x512xf32>
    %21 = vector.broadcast %20 : vector<1x512xf32> to vector<16x512xf32>
    %22 = arith.addf %19, %21 : vector<16x512xf32>
    %cst_16 = arith.constant 0.000000e+00 : f32
    %23 = vector.broadcast %cst_16 : f32 to vector<16x512xf32>
    %24 = arith.maximumf %22, %23 : vector<16x512xf32>
    %25 = arith.truncf %24 : vector<16x512xf32> to vector<16x512xbf16>
    %c0_17 = arith.constant 0 : index
    %c0_18 = arith.constant 0 : index
    %26 = vector.load %arg8[%c0_17, %c0_18] : memref<1024x512xbf16, #tpu.memory_space<vmem>>, vector<1024x512xbf16>
    %cst_19 = arith.constant dense<0.000000e+00> : vector<16x512xf32>
    %27 = tpu.matmul %17, %26, %cst_19 {dimension_numbers = #tpu.dot_dimension_numbers<[1], [0], [0], [1], [0, 0, 1, 1], [], []>} : vector<16x1024xbf16>, vector<1024x512xbf16>, vector<16x512xf32> -> vector<16x512xf32>
    %c0_20 = arith.constant 0 : index
    %c0_21 = arith.constant 0 : index
    %28 = vector.load %arg9[%c0_20, %c0_21] : memref<1x512xf32, #tpu.memory_space<vmem>>, vector<1x512xf32>
    %29 = vector.broadcast %28 : vector<1x512xf32> to vector<16x512xf32>
    %30 = arith.addf %27, %29 : vector<16x512xf32>
    %cst_22 = arith.constant 0.000000e+00 : f32
    %31 = vector.broadcast %cst_22 : f32 to vector<16x512xf32>
    %32 = arith.maximumf %30, %31 : vector<16x512xf32>
    %33 = arith.truncf %32 : vector<16x512xf32> to vector<16x512xbf16>
    %c0_23 = arith.constant 0 : index
    %c0_24 = arith.constant 0 : index
    %34 = vector.load %arg10[%c0_23, %c0_24] : memref<512x384xbf16, #tpu.memory_space<vmem>>, vector<512x384xbf16>
    %cst_25 = arith.constant dense<0.000000e+00> : vector<16x384xf32>
    %35 = tpu.matmul %25, %34, %cst_25 {dimension_numbers = #tpu.dot_dimension_numbers<[1], [0], [0], [1], [0, 0, 1, 1], [], []>} : vector<16x512xbf16>, vector<512x384xbf16>, vector<16x384xf32> -> vector<16x384xf32>
    %c0_26 = arith.constant 0 : index
    %c0_27 = arith.constant 0 : index
    %36 = vector.load %arg11[%c0_26, %c0_27] : memref<1x384xf32, #tpu.memory_space<vmem>>, vector<1x384xf32>
    %37 = vector.broadcast %36 : vector<1x384xf32> to vector<16x384xf32>
    %38 = arith.addf %35, %37 : vector<16x384xf32>
    %cst_28 = arith.constant 0.000000e+00 : f32
    %39 = vector.broadcast %cst_28 : f32 to vector<16x384xf32>
    %40 = arith.maximumf %38, %39 : vector<16x384xf32>
    %41 = arith.truncf %40 : vector<16x384xf32> to vector<16x384xbf16>
    %c0_29 = arith.constant 0 : index
    %c0_30 = arith.constant 0 : index
    %42 = vector.load %arg12[%c0_29, %c0_30] : memref<512x384xbf16, #tpu.memory_space<vmem>>, vector<512x384xbf16>
    %cst_31 = arith.constant dense<0.000000e+00> : vector<16x384xf32>
    %43 = tpu.matmul %33, %42, %cst_31 {dimension_numbers = #tpu.dot_dimension_numbers<[1], [0], [0], [1], [0, 0, 1, 1], [], []>} : vector<16x512xbf16>, vector<512x384xbf16>, vector<16x384xf32> -> vector<16x384xf32>
    %c0_32 = arith.constant 0 : index
    %c0_33 = arith.constant 0 : index
    %44 = vector.load %arg13[%c0_32, %c0_33] : memref<1x384xf32, #tpu.memory_space<vmem>>, vector<1x384xf32>
    %45 = vector.broadcast %44 : vector<1x384xf32> to vector<16x384xf32>
    %46 = arith.addf %43, %45 : vector<16x384xf32>
    %cst_34 = arith.constant 0.000000e+00 : f32
    %47 = vector.broadcast %cst_34 : f32 to vector<16x384xf32>
    %48 = arith.maximumf %46, %47 : vector<16x384xf32>
    %49 = arith.truncf %48 : vector<16x384xf32> to vector<16x384xbf16>
    %50 = tpu.concatenate %41, %49 in 1 : vector<16x384xbf16>, vector<16x384xbf16> -> vector<16x768xbf16>
    %c0_35 = arith.constant 0 : index
    %c0_36 = arith.constant 0 : index
    %51 = vector.load %arg14[%c0_35, %c0_36] : memref<768x128xbf16, #tpu.memory_space<vmem>>, vector<768x128xbf16>
    %cst_37 = arith.constant dense<0.000000e+00> : vector<16x128xf32>
    %52 = tpu.matmul %50, %51, %cst_37 {dimension_numbers = #tpu.dot_dimension_numbers<[1], [0], [0], [1], [0, 0, 1, 1], [], []>} : vector<16x768xbf16>, vector<768x128xbf16>, vector<16x128xf32> -> vector<16x128xf32>
    %c0_38 = arith.constant 0 : index
    %c0_39 = arith.constant 0 : index
    %53 = vector.load %arg15[%c0_38, %c0_39] : memref<1x128xf32, #tpu.memory_space<vmem>>, vector<1x128xf32>
    %54 = vector.broadcast %53 : vector<1x128xf32> to vector<16x128xf32>
    %55 = arith.addf %52, %54 : vector<16x128xf32>
    %c0_40 = arith.constant 0 : index
    %c0_41 = arith.constant 0 : index
    %56 = vector.load %arg16[%c0_40, %c0_41] : memref<16x128xf32, #tpu.memory_space<vmem>>, vector<16x128xf32>
    tpu.vector_store %arg16[%c0_40, %c0_41], %55 {strides = array<i32>} : memref<16x128xf32, #tpu.memory_space<vmem>>, vector<16x128xf32>,
    return
  }
  func.func @transform_0(%arg0: i32) -> (i32, i32) {
    %c0_i32 = arith.constant 0 : i32
    %c0_i32_0 = arith.constant 0 : i32
    return %arg0, %c0_i32 : i32, i32
  }
  func.func @transform_1(%arg0: i32) -> (i32, i32) {
    %c0_i32 = arith.constant 0 : i32
    %c0_i32_0 = arith.constant 0 : i32
    return %arg0, %c0_i32 : i32, i32
  }
  func.func @transform_2(%arg0: i32) -> (i32, i32) {
    %c0_i32 = arith.constant 0 : i32
    %c0_i32_0 = arith.constant 0 : i32
    %c0_i32_1 = arith.constant 0 : i32
    return %c0_i32, %c0_i32_0 : i32, i32
  }
  func.func @transform_3(%arg0: i32) -> (i32, i32) {
    %c0_i32 = arith.constant 0 : i32
    %c0_i32_0 = arith.constant 0 : i32
    %c0_i32_1 = arith.constant 0 : i32
    return %c0_i32, %c0_i32_0 : i32, i32
  }
  func.func @transform_4(%arg0: i32) -> (i32, i32) {
    %c0_i32 = arith.constant 0 : i32
    %c0_i32_0 = arith.constant 0 : i32
    %c0_i32_1 = arith.constant 0 : i32
    return %c0_i32, %c0_i32_0 : i32, i32
  }
  func.func @transform_5(%arg0: i32) -> (i32, i32) {
    %c0_i32 = arith.constant 0 : i32
    %c0_i32_0 = arith.constant 0 : i32
    %c0_i32_1 = arith.constant 0 : i32
    return %c0_i32, %c0_i32_0 : i32, i32
  }
  func.func @transform_6(%arg0: i32) -> (i32, i32) {
    %c0_i32 = arith.constant 0 : i32
    %c0_i32_0 = arith.constant 0 : i32
    %c0_i32_1 = arith.constant 0 : i32
    return %c0_i32, %c0_i32_0 : i32, i32
  }
  func.func @transform_7(%arg0: i32) -> (i32, i32) {
    %c0_i32 = arith.constant 0 : i32
    %c0_i32_0 = arith.constant 0 : i32
    %c0_i32_1 = arith.constant 0 : i32
    return %c0_i32, %c0_i32_0 : i32, i32
  }
  func.func @transform_8(%arg0: i32) -> (i32, i32) {
    %c0_i32 = arith.constant 0 : i32
    %c0_i32_0 = arith.constant 0 : i32
    %c0_i32_1 = arith.constant 0 : i32
    return %c0_i32, %c0_i32_0 : i32, i32
  }
  func.func @transform_9(%arg0: i32) -> (i32, i32) {
    %c0_i32 = arith.constant 0 : i32
    %c0_i32_0 = arith.constant 0 : i32
    %c0_i32_1 = arith.constant 0 : i32
    return %c0_i32, %c0_i32_0 : i32, i32
  }
  func.func @transform_10(%arg0: i32) -> (i32, i32) {
    %c0_i32 = arith.constant 0 : i32
    %c0_i32_0 = arith.constant 0 : i32
    %c0_i32_1 = arith.constant 0 : i32
    return %c0_i32, %c0_i32_0 : i32, i32
  }
  func.func @transform_11(%arg0: i32) -> (i32, i32) {
    %c0_i32 = arith.constant 0 : i32
    %c0_i32_0 = arith.constant 0 : i32
    %c0_i32_1 = arith.constant 0 : i32
    return %c0_i32, %c0_i32_0 : i32, i32
  }
  func.func @transform_12(%arg0: i32) -> (i32, i32) {
    %c0_i32 = arith.constant 0 : i32
    %c0_i32_0 = arith.constant 0 : i32
    %c0_i32_1 = arith.constant 0 : i32
    return %c0_i32, %c0_i32_0 : i32, i32
  }
  func.func @transform_13(%arg0: i32) -> (i32, i32) {
    %c0_i32 = arith.constant 0 : i32
    %c0_i32_0 = arith.constant 0 : i32
    %c0_i32_1 = arith.constant 0 : i32
    return %c0_i32, %c0_i32_0 : i32, i32
  }
  func.func @transform_14(%arg0: i32) -> (i32, i32) {
    %c0_i32 = arith.constant 0 : i32
    %c0_i32_0 = arith.constant 0 : i32
    %c0_i32_1 = arith.constant 0 : i32
    return %c0_i32, %c0_i32_0 : i32, i32
  }
  func.func @transform_15(%arg0: i32) -> (i32, i32) {
    %c0_i32 = arith.constant 0 : i32
    %c0_i32_0 = arith.constant 0 : i32
    return %arg0, %c0_i32 : i32, i32
  }
}

</mosaic_0001>

<bundles_post_ra>
// kernel: critic_forward.1
= control target key start
LH: loop header
LB: loop body
LE: loop exit
PB: predicated region body
PF: predicated region fallthrough
CT: control target
= control target key end

     0   :  { %20 = vsyncpa [#allocation3], 0  ;;  %s10051_s0 = inlined_call_operand.vmem [shape: f32[16,16], index: 0, kind: input, shape index: {}]   ;;  %s10052_s1 = inlined_call_operand.vmem [shape: f32[16,8], index: 1, kind: input, shape index: {}]   ;;  %s10053_s2 = inlined_call_operand.hbm [shape: bf16[16,2048], index: 2, kind: input, shape index: {}]   ;;  %s10054_s3 = inlined_call_operand.hbm [shape: bf16[8,2048], index: 3, kind: input, shape index: {}]   ;;  %s10055_s4 = inlined_call_operand.vmem [shape: f32[1,2048], index: 4, kind: input, shape index: {}]   ;;  %s10056_s5 = inlined_call_operand.hbm [shape: bf16[1024,512], index: 5, kind: input, shape index: {}]   ;;  %s10057_s6 = inlined_call_operand.vmem [shape: f32[1,512], index: 6, kind: input, shape index: {}]   ;;  %s10058_s7 = inlined_call_operand.hbm [shape: bf16[1024,512], index: 7, kind: input, shape index: {}]   ;;  %s10059_s8 = inlined_call_operand.vmem [shape: f32[1,512], index: 8, kind: input, shape index: {}]   ;;  %s10060_s9 = inlined_call_operand.hbm [shape: bf16[512,384], index: 9, kind: input, shape index: {}]   ;;  %s10061_s10 = inlined_call_operand.vmem [shape: f32[1,384], index: 10, kind: input, shape index: {}]   ;;  %s10062_s11 = inlined_call_operand.hbm [shape: bf16[512,384], index: 11, kind: input, shape index: {}]   ;;  %s10063_s12 = inlined_call_operand.vmem [shape: f32[1,384], index: 12, kind: input, shape index: {}]   ;;  %s10064_s13 = inlined_call_operand.hbm [shape: bf16[768,128], index: 13, kind: input, shape index: {}]   ;;  %s10065_s14 = inlined_call_operand.vmem [shape: f32[1,128], index: 14, kind: input, shape index: {}]   ;;  %s10066_s15 = inlined_call_operand.vmem [shape: f32[16,128], index: 15, kind: output, shape index: {}]  }
   0x1   :  { %21 = vsyncpa [#allocation5], 0 }
   0x2   :  { %22 = vsyncpa [#allocation8], 0 }
   0x3   :  { %23 = vsyncpa [#allocation11], 0  ;;  %s9563_s18 = smov [#allocation4]   ;;  %s9401_s22 = scalar_lea.hbm %s10054_s3, 1024 }
   0x4   :  { %s46_s19 = sshll.u32 %s9563_s18, 4  ;;  %p9402_p0 = scmp.ne.s32.totalorder %s10054_s3, %s9401_s22  ;;  %s47_s19 = int_to_ptr.vmem [resolvable:$true] %s46_s19 }
   0x5   :  { %p9405_p1 = scmp.lt.u32.totalorder %s9401_s22, %s10054_s3 }
   0x7   :  { %p9407_p2 = pnand %p9405_p1, %p9402_p0 }
   0x9   :  { %9410 = shalt.err (!%p9407_p2)
}
   0xa   :  { %s9411_s27 = scalar_lea.vmem %s47_s19, 1024  ;;  %p9416_p4 = scmp.lt.s32.totalorder %s47_s19, %s47_s19 }
   0xb   :  { %p9412_p3 = scmp.ne.s32.totalorder %s47_s19, %s9411_s27  ;;  %p9417_p5 = scmp.lt.s32.totalorder %s9411_s27, %s9411_s27 }
   0xd   :  { %p9418_p6 = por %p9417_p5, %p9416_p4 }
   0xf   :  { %p9419_p7 = pnand %p9418_p6, %p9412_p3 }
  0x11   :  { %9422 = shalt.err (!%p9419_p7)
}
  0x12   :  { %49 = dma.hbm_to_vmem [thread:$0]  %s10054_s3, 1024, %s47_s19, [#allocation5]  }
  0x13   :  { %s9564_s30 = smov [#allocation7]   ;;  %s9423_s20 = scalar_lea.hbm %s10058_s7, 32768 }
  0x14   :  { %s71_s16 = sshll.u32 %s9564_s30, 4  ;;  %p9424_p8 = scmp.ne.s32.totalorder %s10058_s7, %s9423_s20  ;;  %s72_s16 = int_to_ptr.vmem [resolvable:$true] %s71_s16 }
  0x15   :  { %p9427_p9 = scmp.lt.u32.totalorder %s9423_s20, %s10058_s7 }
  0x17   :  { %p9429_p10 = pnand %p9427_p9, %p9424_p8 }
  0x19   :  { %9432 = shalt.err (!%p9429_p10)
}
  0x1a   :  { %s9433_s25 = scalar_lea.vmem %s72_s16, 32768  ;;  %p9438_p12 = scmp.lt.s32.totalorder %s72_s16, %s72_s16 }
  0x1b   :  { %p9434_p11 = scmp.ne.s32.totalorder %s72_s16, %s9433_s25  ;;  %p9439_p13 = scmp.lt.s32.totalorder %s9433_s25, %s9433_s25 }
  0x1d   :  { %p9440_p0 = por %p9439_p13, %p9438_p12 }
  0x1f   :  { %p9441_p1 = pnand %p9440_p0, %p9434_p11 }
  0x21   :  { %9444 = shalt.err (!%p9441_p1)
}
  0x22   :  { %s9565_s3 = smov 256   ;;  %s9566_s19 = smov 16  }
  0x23   :  { %77 = dma.hbm_to_vmem [thread:$0]  %s10058_s7, 32768, %s72_s16, [#allocation8], %s9565_s3, %s9565_s3, %s9566_s19  }
  0x24   :  { %s9567_s28 = smov [#allocation10]   ;;  %s9568_s30 = smov [#allocation2]  }
  0x25   :  { %s99_s29 = sshll.u32 %s9567_s28, 4  ;;  %s33_s17 = sshll.u32 %s9568_s30, 4  ;;  %s100_s29 = int_to_ptr.vmem [resolvable:$true] %s99_s29  ;;  %s9685_s17 = int_to_ptr.vmem [resolvable:$true] %s33_s17 }
  0x26   :  { %s9445_s21 = scalar_lea.hbm %s10062_s11, 12288 }
  0x27   :  { %p9446_p2 = scmp.ne.s32.totalorder %s10062_s11, %s9445_s21  ;;  %p9449_p3 = scmp.lt.u32.totalorder %s9445_s21, %s10062_s11 }
  0x29   :  { %p9451_p4 = pnand %p9449_p3, %p9446_p2 }
  0x2b   :  { %9454 = shalt.err (!%p9451_p4)
}
  0x2c   :  { %s9455_s7 = scalar_lea.vmem %s100_s29, 12288  ;;  %p9460_p6 = scmp.lt.s32.totalorder %s100_s29, %s100_s29 }
  0x2d   :  { %p9456_p5 = scmp.ne.s32.totalorder %s100_s29, %s9455_s7  ;;  %p9461_p7 = scmp.lt.s32.totalorder %s9455_s7, %s9455_s7 }
  0x2f   :  { %p9462_p8 = por %p9461_p7, %p9460_p6 }
  0x31   :  { %p9463_p9 = pnand %p9462_p8, %p9456_p5 }
  0x33   :  { %9466 = shalt.err (!%p9463_p9)
}
  0x34   :  { %s10067_s16 = smov 192   ;;  %s10068_s26 = smov 12  }
  0x35   :  { %105 = dma.hbm_to_vmem [thread:$0]  %s10062_s11, 12288, %s100_s29, [#allocation11], %s10067_s16, %s10067_s16, %s10068_s26  }
  0x36   :  { %s9467_s20 = scalar_lea.hbm %s10053_s2, 2048 }
  0x37   :  { %p9468_p10 = scmp.ne.s32.totalorder %s10053_s2, %s9467_s20  ;;  %p9471_p11 = scmp.lt.u32.totalorder %s9467_s20, %s10053_s2 }
  0x39   :  { %p9473_p12 = pnand %p9471_p11, %p9468_p10 }
  0x3b   :  { %9476 = shalt.err (!%p9473_p12)
}
  0x3c   :  { %s9477_s25 = scalar_lea.vmem %s9685_s17, 2048  ;;  %p9482_p0 = scmp.lt.s32.totalorder %s9685_s17, %s9685_s17 }
  0x3d   :  { %p9478_p13 = scmp.ne.s32.totalorder %s9685_s17, %s9477_s25  ;;  %p9483_p1 = scmp.lt.s32.totalorder %s9477_s25, %s9477_s25 }
  0x3f   :  { %p9484_p2 = por %p9483_p1, %p9482_p0 }
  0x41   :  { %p9485_p3 = pnand %p9484_p2, %p9478_p13 }
  0x43   :  { %9488 = shalt.err (!%p9485_p3)
}
  0x44   :  { %s9571_s11 = smov 1024   ;;  %s9572_s29 = smov 64  }
  0x45   :  { %39 = dma.hbm_to_vmem [thread:$0]  %s10053_s2, 2048, %s9685_s17, [#allocation3], %s9571_s11, %s9571_s11, %s9572_s29  }
  0x46   :  { %s9573_s28 = smov [#allocation6]   ;;  %s9574_s18 = smov [#allocation9]  }
  0x47   :  { %s57_s30 = sshll.u32 %s9573_s28, 4  ;;  %s85_s20 = sshll.u32 %s9574_s18, 4  ;;  %s58_s30 = int_to_ptr.vmem [resolvable:$true] %s57_s30  ;;  %s9720_s20 = int_to_ptr.vmem [resolvable:$true] %s85_s20 }
  0x48   :  { %s9489_s23 = scalar_lea.hbm %s10056_s5, 32768 }
  0x49   :  { %p9490_p4 = scmp.ne.s32.totalorder %s10056_s5, %s9489_s23  ;;  %p9493_p5 = scmp.lt.u32.totalorder %s9489_s23, %s10056_s5 }
  0x4b   :  { %p9495_p6 = pnand %p9493_p5, %p9490_p4 }
  0x4d   :  { %9498 = shalt.err (!%p9495_p6)
}
  0x4e   :  { %s9499_s2 = scalar_lea.vmem %s58_s30, 32768  ;;  %p9504_p8 = scmp.lt.s32.totalorder %s58_s30, %s58_s30 }
  0x4f   :  { %p9500_p7 = scmp.ne.s32.totalorder %s58_s30, %s9499_s2  ;;  %p9505_p9 = scmp.lt.s32.totalorder %s9499_s2, %s9499_s2 }
  0x51   :  { %p9506_p10 = por %p9505_p9, %p9504_p8 }
  0x53   :  { %p9507_p11 = pnand %p9506_p10, %p9500_p7 }
  0x55   :  { %9510 = shalt.err (!%p9507_p11)
}
  0x56   :  { %63 = dma.hbm_to_vmem [thread:$0]  %s10056_s5, 32768, %s58_s30, [#allocation5], %s9565_s3, %s9565_s3, %s9566_s19  }
  0x57   :  { %s9511_s16 = scalar_lea.hbm %s10060_s9, 12288 }
  0x58   :  { %p9512_p12 = scmp.ne.s32.totalorder %s10060_s9, %s9511_s16  ;;  %p9515_p13 = scmp.lt.u32.totalorder %s9511_s16, %s10060_s9 }
  0x5a   :  { %p9517_p0 = pnand %p9515_p13, %p9512_p12 }
  0x5c   :  { %9520 = shalt.err (!%p9517_p0)
}
  0x5d   :  { %s9521_s22 = scalar_lea.vmem %s9720_s20, 12288  ;;  %p9526_p2 = scmp.lt.s32.totalorder %s9720_s20, %s9720_s20 }
  0x5e   :  { %p9522_p1 = scmp.ne.s32.totalorder %s9720_s20, %s9521_s22  ;;  %p9527_p3 = scmp.lt.s32.totalorder %s9521_s22, %s9521_s22 }
  0x60   :  { %p9528_p4 = por %p9527_p3, %p9526_p2 }
  0x62   :  { %p9529_p5 = pnand %p9528_p4, %p9522_p1 }
  0x64   :  { %9532 = shalt.err (!%p9529_p5)
}
  0x65   :  { %s10069_s5 = smov 12   ;;  %s10070_s3 = smov 192  }
  0x66   :  { %91 = dma.hbm_to_vmem [thread:$0]  %s10060_s9, 12288, %s9720_s20, [#allocation8], %s10070_s3, %s10070_s3, %s10069_s5  }
  0x67   :  { %s9575_s23 = smov [#allocation12]   ;;  %s9533_s17 = scalar_lea.hbm %s10064_s13, 6144 }
  0x68   :  { %s113_s24 = sshll.u32 %s9575_s23, 4  ;;  %p9534_p6 = scmp.ne.s32.totalorder %s10064_s13, %s9533_s17  ;;  %s114_s24 = int_to_ptr.vmem [resolvable:$true] %s113_s24 }
  0x69   :  { %p9537_p7 = scmp.lt.u32.totalorder %s9533_s17, %s10064_s13 }
  0x6b   :  { %p9539_p8 = pnand %p9537_p7, %p9534_p6 }
  0x6d   :  { %9542 = shalt.err (!%p9539_p8)
}
  0x6e   :  { %s9543_s26 = scalar_lea.vmem %s114_s24, 6144  ;;  %p9548_p10 = scmp.lt.s32.totalorder %s114_s24, %s114_s24 }
  0x6f   :  { %p9544_p9 = scmp.ne.s32.totalorder %s114_s24, %s9543_s26  ;;  %p9549_p11 = scmp.lt.s32.totalorder %s9543_s26, %s9543_s26 }
  0x71   :  { %p9550_p12 = por %p9549_p11, %p9548_p10 }
  0x73   :  { %p9551_p13 = pnand %p9550_p12, %p9544_p9 }
  0x75   :  { %9554 = shalt.err (!%p9551_p13)
}
  0x76   :  { %s9576_s9 = smov 4  }
  0x77   :  { %119 = dma.hbm_to_vmem [thread:$0]  %s10064_s13, 6144, %s114_s24, [#allocation11], %s9572_s29, %s9572_s29, %s9576_s9  }
  0x78   :  { %9555 = dma.done.wait [#allocation3], 2048  }
  0x79   :  { %9556 = vsyncadd [#allocation3], 4294965248 }
  0x7a   :  { %9557 = dma.done.wait [#allocation5], 33792  }
  0x7b   :  { %9558 = vsyncadd [#allocation5], 4294933504 }
  0x7c   :  { %9559 = dma.done.wait [#allocation8], 45056  }
  0x7d   :  { %9560 = vsyncadd [#allocation8], 4294922240 }
  0x7e   :  { %9561 = dma.done.wait [#allocation11], 18432  }
  0x7f   :  { %9562 = vsyncadd [#allocation11], 4294948864  ;;  %v9577_v0 = vmov 0   ;;  %v166_v1 = vld [vmem:[#allocation4] sm:$0xff]  ;;  %vm218_vm0 = vcmask 1043456   ;;  %v148_v8 = vld [vmem:[%s10052_s1 + $0x8] sm:$0xff] }
  0x80   :  { %299 = vmatprep.mubr.bf16.mxu1 %v9577_v0  ;;  %471 = vmatprep.mubr.bf16.mxu0 %v9577_v0  ;;  %v170_v2 = vld [vmem:[#allocation4 + $0x20] sm:$0xff]  ;;  %v7224_v4 = vcombine.high %v166_v1, %v166_v1  ;;  %v7223_v6 = vcombine.low %v166_v1, %v166_v1  ;;  %v172_v9 = vld [vmem:[#allocation4 + $0x30] sm:$0xff]  ;;  %v167_v10 = vld [vmem:[#allocation4 + $0x8] sm:$0xff]  ;;  %vm214_vm1 = vcmask 64512   ;;  %vm691_vm2 = vcmask 130048  }
  0x81   :  { %v147_v3 = vld [vmem:[%s10052_s1] sm:$0xff]  ;;  %v7232_v5 = vcombine.high %v170_v2, %v170_v2  ;;  %v7231_v7 = vcombine.low %v170_v2, %v170_v2  ;;  %v7236_v11 = vcombine.high %v172_v9, %v172_v9  ;;  %v7235_v12 = vcombine.low %v172_v9, %v172_v9  ;;  %v168_v20 = vld [vmem:[#allocation4 + $0x10] sm:$0xff]  ;;  %v169_v26 = vld [vmem:[#allocation4 + $0x18] sm:$0xff] }
  0x82   :  { %v7226_v13 = vcombine.high %v167_v10, %v167_v10  ;;  %7239 = vmatprep.subr.msk.bf16.mxu1 %vm218_vm0, %v7224_v4  ;;  %v220_v14 = vsel %vm218_vm0, %v7223_v6, 0  ;;  %v9783_v16 = vpack.c.bf16 %v148_v8, %v147_v3  ;;  %v7225_v17 = vcombine.low %v167_v10, %v167_v10  ;;  %v150_v18 = vld [vmem:[#allocation2] sm:$0xff]  ;;  %v152_v27 = vld [vmem:[#allocation2 + $0x10] sm:$0xff]  ;;  %v145_v34 = vld [vmem:[%s10051_s0 + $0x8] sm:$0xff] }
  0x83   :  { %7247 = vmatprep.subr.msk.bf16.mxu0 %vm218_vm0, %v7232_v5  ;;  %v244_v15 = vsel %vm218_vm0, %v7231_v7, 0  ;;  %v158_v19 = vld [vmem:[#allocation2 + $0x40] sm:$0xff]  ;;  %268 = vmatpush1.bf16.msra.mxu1 %v220_v14  ;;  %v256_v21 = vsel %vm218_vm0, %v7235_v12, 0  ;;  %v7228_v24 = vcombine.high %v168_v20, %v168_v20  ;;  %v7227_v25 = vcombine.low %v168_v20, %v168_v20  ;;  %v160_v28 = vld [vmem:[#allocation2 + $0x50] sm:$0xff]  ;;  %v171_v36 = vld [vmem:[#allocation4 + $0x28] sm:$0xff] }
  0x84   :  { %440 = vmatpush1.bf16.msra.mxu0 %v244_v15  ;;  %7241 = vmatprep.subr.msk.bf16.mxu1 %vm218_vm0, %v7226_v13  ;;  %v226_v22 = vsel %vm218_vm0, %v7225_v17, 0  ;;  %v7256_v23 = vcombine.high %v150_v18, %v158_v19  ;;  %v7255_v29 = vcombine.low %v150_v18, %v158_v19  ;;  %v7230_v31 = vcombine.high %v169_v26, %v169_v26  ;;  %v144_v33 = vld [vmem:[%s10051_s0] sm:$0xff]  ;;  %v173_v45 = vld [vmem:[#allocation4 + $0x38] sm:$0xff]  ;;  %v156_v46 = vld [vmem:[#allocation2 + $0x30] sm:$0xff] }
  0x85   :  { %7251 = vmatprep.subr.msk.bf16.mxu0 %vm218_vm0, %v7236_v11  ;;  %v232_v30 = vsel %vm218_vm0, %v7227_v25, 0  ;;  %v7260_v32 = vcombine.high %v152_v27, %v160_v28  ;;  %v7229_v35 = vcombine.low %v169_v26, %v169_v26  ;;  %v9810_v37 = vpack.c.bf16 %v145_v34, %v144_v33  ;;  %v154_v38 = vld [vmem:[#allocation2 + $0x20] sm:$0xff]  ;;  %v164_v47 = vld [vmem:[#allocation2 + $0x70] sm:$0xff]  ;;  %v151_v53 = vld [vmem:[#allocation2 + $0x8] sm:$0xff] }
  0x86   :  { %7240 = vmatmul.mubr.msk.bf16.vlgmr.msra.gmra.mrb[0].mxu1 %vm214_vm1, %v9783_v16  ;;  %v162_v39 = vld [vmem:[#allocation2 + $0x60] sm:$0xff]  ;;  %v7259_v40 = vcombine.low %v152_v27, %v160_v28  ;;  %v7234_v42 = vcombine.high %v171_v36, %v171_v36  ;;  %v7233_v44 = vcombine.low %v171_v36, %v171_v36  ;;  %v7238_v50 = vcombine.high %v173_v45, %v173_v45  ;;  %v159_v54 = vld [vmem:[#allocation2 + $0x48] sm:$0xff]  ;;  %v153_v59 = vld [vmem:[#allocation2 + $0x18] sm:$0xff] }
  0x87   :  { %7248 = vmatmul.mubr.msk.bf16.vlgmr.msra.gmra.mrb[0].mxu0 %vm214_vm1, %v9783_v16  ;;  %311 = vmatpush1.bf16.msra.mxu1 %v226_v22  ;;  %v238_v41 = vsel %vm218_vm0, %v7229_v35, 0  ;;  %v7264_v43 = vcombine.high %v154_v38, %v162_v39  ;;  %v7263_v48 = vcombine.low %v154_v38, %v162_v39  ;;  %v7268_v51 = vcombine.high %v156_v46, %v164_v47  ;;  %v8331_v58 = vld [vmem:[#allocation6 + $0x4] ss:$16 sps:$4 sm:$0xff]   ;;  %v161_v60 = vld [vmem:[#allocation2 + $0x58] sm:$0xff]  ;;  %v8329_v61 = vld [vmem:[#allocation6] ss:$16 sps:$4 sm:$0xff]  }
  0x88   :  { %526 = vmatpush1.bf16.msra.mxu0 %v256_v21  ;;  %342 = vmatprep.mubr.bf16.mxu1 %v9577_v0  ;;  %v250_v49 = vsel %vm218_vm0, %v7233_v44, 0  ;;  %v7237_v52 = vcombine.low %v173_v45, %v173_v45  ;;  %v7267_v55 = vcombine.low %v156_v46, %v164_v47  ;;  %v7258_v57 = vcombine.high %v151_v53, %v159_v54  ;;  %v8337_v63 = vld [vmem:[#allocation6 + $0x24] ss:$16 sps:$4 sm:$0xff]   ;;  %v8335_v2 = vld [vmem:[#allocation6 + $0x20] ss:$16 sps:$4 sm:$0xff]   ;;  %v155_v3 = vld [vmem:[#allocation2 + $0x28] sm:$0xff] }
  0x89   :  { %557 = vmatprep.mubr.bf16.mxu0 %v9577_v0  ;;  %695 = vmatprep.subr.bf16.mxu0 %v7256_v23  ;;  %v7257_v62 = vcombine.low %v151_v53, %v159_v54  ;;  %v7262_v1 = vcombine.high %v153_v59, %v161_v60  ;;  %v163_v4 = vld [vmem:[#allocation2 + $0x68] sm:$0xff]  ;;  %v8343_v5 = vld [vmem:[#allocation6 + $0x44] ss:$16 sps:$4 sm:$0xff]   ;;  %v8341_v6 = vld [vmem:[#allocation6 + $0x40] ss:$16 sps:$4 sm:$0xff]   ;;  %v7261_v7 = vcombine.low %v153_v59, %v161_v60 }
  0x8a   :  { %7243 = vmatprep.subr.msk.bf16.mxu1 %vm218_vm0, %v7228_v24  ;;  %v262_v56 = vsel %vm218_vm0, %v7237_v52, 0  ;;  %v8349_v8 = vld [vmem:[#allocation6 + $0x64] ss:$16 sps:$4 sm:$0xff]   ;;  %v7266_v9 = vcombine.high %v155_v3, %v163_v4  ;;  %v8347_v10 = vld [vmem:[#allocation6 + $0x60] ss:$16 sps:$4 sm:$0xff]   ;;  %v157_v11 = vld [vmem:[#allocation2 + $0x38] sm:$0xff]  ;;  %v7265_v15 = vcombine.low %v155_v3, %v163_v4  ;;  %v1043_v3 = vlaneseq }
  0x8b   :  { %v165_v12 = vld [vmem:[#allocation2 + $0x78] sm:$0xff]  ;;  %v8355_v13 = vld [vmem:[#allocation6 + $0x84] ss:$16 sps:$4 sm:$0xff]   ;;  %v8353_v14 = vld [vmem:[#allocation6 + $0x80] ss:$16 sps:$4 sm:$0xff]  }
  0x8c   :  { %v7270_v17 = vcombine.high %v157_v11, %v165_v12  ;;  %v8359_v18 = vld [vmem:[#allocation6 + $0xa0] ss:$16 sps:$4 sm:$0xff]   ;;  %v8367_v19 = vld [vmem:[#allocation6 + $0xc4] ss:$16 sps:$4 sm:$0xff]   ;;  %v8334_v20 = vld [vmem:[#allocation6 + $0xc] ss:$16 sps:$4 sm:$0xff]   ;;  %v7269_v22 = vcombine.low %v157_v11, %v165_v12 }
  0x8d   :  { %v8365_v21 = vld [vmem:[#allocation6 + $0xc0] ss:$16 sps:$4 sm:$0xff]   ;;  %v8373_v23 = vld [vmem:[#allocation6 + $0xe4] ss:$16 sps:$4 sm:$0xff]   ;;  %v8332_v26 = vld [vmem:[#allocation6 + $0x8] ss:$16 sps:$4 sm:$0xff]  }
  0x8e   :  { %7242 = vmatmul.mubr.msk.bf16.vlgmr.msra.gmra.mrb[4].mxu1 %vm214_vm1, %v9783_v16  ;;  %v8371_v24 = vld [vmem:[#allocation6 + $0xe0] ss:$16 sps:$4 sm:$0xff]   ;;  %v8379_v25 = vld [vmem:[#allocation6 + $0x104] ss:$16 sps:$4 sm:$0xff]   ;;  %v8340_v27 = vld [vmem:[#allocation6 + $0x2c] ss:$16 sps:$4 sm:$0xff]  }
  0x8f   :  { %7252 = vmatmul.mubr.msk.bf16.vlgmr.msra.gmra.mrb[4].mxu0 %vm214_vm1, %v9783_v16  ;;  %354 = vmatpush1.bf16.msra.mxu1 %v232_v30  ;;  %v8377_v28 = vld [vmem:[#allocation6 + $0x100] ss:$16 sps:$4 sm:$0xff]   ;;  %v8338_v30 = vld [vmem:[#allocation6 + $0x28] ss:$16 sps:$4 sm:$0xff]   ;;  %v8391_v33 = vld [vmem:[#allocation6 + $0x144] ss:$16 sps:$4 sm:$0xff]  }
  0x90   :  { %696 = vmatpush1.bf16.msra.mxu0 %v7255_v29  ;;  %385 = vmatprep.mubr.bf16.mxu1 %v9577_v0  ;;  %v8385_v29 = vld [vmem:[#allocation6 + $0x124] ss:$16 sps:$4 sm:$0xff]   ;;  %v8352_v34 = vld [vmem:[#allocation6 + $0x6c] ss:$16 sps:$4 sm:$0xff]   ;;  %v8389_v35 = vld [vmem:[#allocation6 + $0x140] ss:$16 sps:$4 sm:$0xff]  }
  0x91   :  { %727 = vmatprep.mubr.bf16.mxu0 %v9577_v0  ;;  %7245 = vmatprep.subr.msk.bf16.mxu1 %vm218_vm0, %v7230_v31  ;;  %v8346_v31 = vld [vmem:[#allocation6 + $0x4c] ss:$16 sps:$4 sm:$0xff]   ;;  %v8397_v36 = vld [vmem:[#allocation6 + $0x164] ss:$16 sps:$4 sm:$0xff]   ;;  %v8350_v38 = vld [vmem:[#allocation6 + $0x68] ss:$16 sps:$4 sm:$0xff]  }
  0x92   :  { %781 = vmatprep.subr.bf16.mxu0 %v7260_v32  ;;  %v8383_v32 = vld [vmem:[#allocation6 + $0x120] ss:$16 sps:$4 sm:$0xff]   ;;  %v8358_v39 = vld [vmem:[#allocation6 + $0x8c] ss:$16 sps:$4 sm:$0xff]   ;;  %v8362_v44 = vld [vmem:[#allocation6 + $0xa8] ss:$16 sps:$4 sm:$0xff]  }
  0x93   :  { %v8370_v45 = vld [vmem:[#allocation6 + $0xcc] ss:$16 sps:$4 sm:$0xff]   ;;  %v8368_v46 = vld [vmem:[#allocation6 + $0xc8] ss:$16 sps:$4 sm:$0xff]   ;;  %v8415_v53 = vld [vmem:[#allocation6 + $0x1c4] ss:$16 sps:$4 sm:$0xff]  }
  0x94   :  { %v8376_v47 = vld [vmem:[#allocation6 + $0xec] ss:$16 sps:$4 sm:$0xff]   ;;  %v8380_v52 = vld [vmem:[#allocation6 + $0x108] ss:$16 sps:$4 sm:$0xff]   ;;  %v8419_v59 = vld [vmem:[#allocation6 + $0x1e0] ss:$16 sps:$4 sm:$0xff]  }
  0x95   :  { %v8388_v54 = vld [vmem:[#allocation6 + $0x12c] ss:$16 sps:$4 sm:$0xff]   ;;  %v8392_v60 = vld [vmem:[#allocation6 + $0x148] ss:$16 sps:$4 sm:$0xff]  }
  0x96   :  { %7244 = vmatmul.mubr.msk.bf16.vlgmr.msra.gmra.mrb[8].mxu1 %vm214_vm1, %v9783_v16  ;;  %v8412_v4 = vld [vmem:[#allocation6 + $0x1ac] ss:$16 sps:$4 sm:$0xff]   ;;  %v8416_v11 = vld [vmem:[#allocation6 + $0x1c8] ss:$16 sps:$4 sm:$0xff]  }
  0x97   :  { %7271 = vmatmul.mubr.msk.bf16.vlgmr.msra.gmra.mrb[8].mxu0 %vm691_vm2, %v9810_v37  ;;  %397 = vmatpush1.bf16.msra.mxu1 %v238_v41  ;;  %v8356_v41 = vld [vmem:[#allocation6 + $0x88] ss:$16 sps:$4 sm:$0xff]  }
  0x98   :  { %782 = vmatpush1.bf16.msra.mxu0 %v7259_v40  ;;  %428 = vmatprep.mubr.bf16.mxu1 %v9577_v0  ;;  %v8395_v40 = vld [vmem:[#allocation6 + $0x160] ss:$16 sps:$4 sm:$0xff]  }
  0x99   :  { %813 = vmatprep.mubr.bf16.mxu0 %v9577_v0  ;;  %7249 = vmatprep.subr.msk.bf16.mxu1 %vm218_vm0, %v7234_v42  ;;  %v8364_v42 = vld [vmem:[#allocation6 + $0xac] ss:$16 sps:$4 sm:$0xff]  }
  0x9a   :  { %867 = vmatprep.subr.bf16.mxu0 %v7264_v43  ;;  %v8401_v43 = vld [vmem:[#allocation6 + $0x180] ss:$16 sps:$4 sm:$0xff]  }
  0x9e   :  { %7246 = vmatmul.mubr.msk.bf16.vlgmr.msra.gmra.mrb[12].mxu1 %vm214_vm1, %v9783_v16 }
  0x9f   :  { %7273 = vmatmul.mubr.msk.bf16.vlgmr.msra.gmra.mrb[12].mxu0 %vm691_vm2, %v9810_v37  ;;  %483 = vmatpush1.bf16.msra.mxu1 %v250_v49  ;;  %v8409_v49 = vld [vmem:[#allocation6 + $0x1a4] ss:$16 sps:$4 sm:$0xff]  }
  0xa0   :  { %868 = vmatpush1.bf16.msra.mxu0 %v7263_v48  ;;  %514 = vmatprep.mubr.bf16.mxu1 %v9577_v0  ;;  %v8374_v48 = vld [vmem:[#allocation6 + $0xe8] ss:$16 sps:$4 sm:$0xff]  }
  0xa1   :  { %899 = vmatprep.mubr.bf16.mxu0 %v9577_v0  ;;  %7253 = vmatprep.subr.msk.bf16.mxu1 %vm218_vm0, %v7238_v50  ;;  %v8382_v50 = vld [vmem:[#allocation6 + $0x10c] ss:$16 sps:$4 sm:$0xff]  }
  0xa2   :  { %953 = vmatprep.subr.bf16.mxu0 %v7268_v51  ;;  %v8407_v51 = vld [vmem:[#allocation6 + $0x1a0] ss:$16 sps:$4 sm:$0xff]  }
  0xa6   :  { %7250 = vmatmul.mubr.msk.bf16.vlgmr.msra.gmra.mrb[16].mxu1 %vm214_vm1, %v9783_v16 }
  0xa7   :  { %7275 = vmatmul.mubr.msk.bf16.vlgmr.msra.gmra.mrb[0].mxu0 %vm691_vm2, %v9810_v37  ;;  %569 = vmatpush1.bf16.msra.mxu1 %v262_v56  ;;  %v8386_v56 = vld [vmem:[#allocation6 + $0x128] ss:$16 sps:$4 sm:$0xff]  }
  0xa8   :  { %954 = vmatpush1.bf16.msra.mxu0 %v7267_v55  ;;  %600 = vmatprep.mubr.bf16.mxu1 %v9577_v0  ;;  %v8413_v55 = vld [vmem:[#allocation6 + $0x1c0] ss:$16 sps:$4 sm:$0xff]  }
  0xa9   :  { %985 = vmatprep.mubr.bf16.mxu0 %v9577_v0  ;;  %738 = vmatprep.subr.bf16.mxu1 %v7258_v57  ;;  %v8421_v57 = vld [vmem:[#allocation6 + $0x1e4] ss:$16 sps:$4 sm:$0xff]  }
  0xaa   :  { %2761 = vmatprep.subr.bf16.mxu0 %v8331_v58  ;;  %v8394_v58 = vld [vmem:[#allocation6 + $0x14c] ss:$16 sps:$4 sm:$0xff]  }
  0xae   :  { %7254 = vmatmul.mubr.msk.bf16.vlgmr.msra.gmra.mrb[20].mxu1 %vm214_vm1, %v9783_v16  ;;  %v8361_v16 = vld [vmem:[#allocation6 + $0xa4] ss:$16 sps:$4 sm:$0xff]  }
  0xaf   :  { %7277 = vmatmul.mubr.msk.bf16.vlgmr.msra.gmra.mrb[4].mxu0 %vm691_vm2, %v9810_v37  ;;  %739 = vmatpush1.bf16.msra.mxu1 %v7257_v62  ;;  %v8400_v62 = vld [vmem:[#allocation6 + $0x16c] ss:$16 sps:$4 sm:$0xff]  }
  0xb0   :  { %770 = vmatprep.mubr.bf16.mxu1 %v9577_v0  ;;  %824 = vmatprep.subr.bf16.mxu1 %v7262_v1  ;;  %v8406_v1 = vld [vmem:[#allocation6 + $0x18c] ss:$16 sps:$4 sm:$0xff]  }
  0xb1   :  { %2762 = vmatpush1.bf16.msra.mxu0 %v8329_v61  ;;  %v8427_v61 = vld [vmem:[#allocation6 + $0x204] ss:$16 sps:$4 sm:$0xff]  }
  0xb2   :  { %2763 = vmatprep.subr.bf16.mxu0 %v8337_v63  ;;  %v8398_v63 = vld [vmem:[#allocation6 + $0x168] ss:$16 sps:$4 sm:$0xff]  }
  0xb5   :  { %2764 = vmatpush1.bf16.msra.mxu0 %v8335_v2  ;;  %v8404_v2 = vld [vmem:[#allocation6 + $0x188] ss:$16 sps:$4 sm:$0xff]  }
  0xb6   :  { %2765 = vmatprep.subr.bf16.mxu0 %v8343_v5  ;;  %7272 = vmatmul.mubr.msk.bf16.vlgmr.msra.gmra.mrb[4].mxu1 %vm691_vm2, %v9810_v37  ;;  %v9851_v5 = vshrl.u32 %v1043_v3, 7 }
  0xb7   :  { %825 = vmatpush1.bf16.msra.mxu1 %v7261_v7  ;;  %856 = vmatprep.mubr.bf16.mxu1 %v9577_v0 }
  0xb8   :  { %910 = vmatprep.subr.bf16.mxu1 %v7266_v9  ;;  %v1061_v7 = vsub.s32 4, %v9851_v5  ;;  %v9857_v9 = vld [vmem:[%s10055_s4 + $0x8] sm:$0xff] }
  0xb9   :  { %2766 = vmatpush1.bf16.msra.mxu0 %v8341_v6  ;;  %v8410_v6 = vld [vmem:[#allocation6 + $0x1a8] ss:$16 sps:$4 sm:$0xff]  }
  0xba   :  { %2767 = vmatprep.subr.bf16.mxu0 %v8349_v8  ;;  %v8418_v8 = vld [vmem:[#allocation6 + $0x1cc] ss:$16 sps:$4 sm:$0xff]   ;;  %v9861_v12 = vrot.slane %v9857_v9, %v1061_v7 }
  0xbd   :  { %2768 = vmatpush1.bf16.msra.mxu0 %v8347_v10  ;;  %v1065_v10 = vsub.s32 5, %v9851_v5 }
  0xbe   :  { %2769 = vmatprep.subr.bf16.mxu0 %v8355_v13  ;;  %7274 = vmatmul.mubr.msk.bf16.vlgmr.msra.gmra.mrb[12].mxu1 %vm691_vm2, %v9810_v37 }
  0xbf   :  { %911 = vmatpush1.bf16.msra.mxu1 %v7265_v15  ;;  %942 = vmatprep.mubr.bf16.mxu1 %v9577_v0  ;;  %v9864_v13 = vrot.slane %v9857_v9, %v1065_v10  ;;  %v8422_v15 = vld [vmem:[#allocation6 + $0x1e8] ss:$16 sps:$4 sm:$0xff]  }
  0xc0   :  { %996 = vmatprep.subr.bf16.mxu1 %v7270_v17  ;;  %v8430_v17 = vld [vmem:[#allocation6 + $0x20c] ss:$16 sps:$4 sm:$0xff]  }
  0xc1   :  { %2770 = vmatpush1.bf16.msra.mxu0 %v8353_v14  ;;  %v8424_v14 = vld [vmem:[#allocation6 + $0x1ec] ss:$16 sps:$4 sm:$0xff]  }
  0xc2   :  { %2771 = vmatprep.subr.bf16.mxu0 %v8361_v16  ;;  %v9869_v16 = vld [vmem:[%s10055_s4] sm:$0xff] }
  0xc5   :  { %2772 = vmatpush1.bf16.msra.mxu0 %v8359_v18  ;;  %v9872_v18 = vrot.slane %v9869_v16, %v1061_v7 }
  0xc6   :  { %2773 = vmatprep.subr.bf16.mxu0 %v8367_v19  ;;  %7276 = vmatmul.mubr.msk.bf16.vlgmr.msra.gmra.mrb[16].mxu1 %vm691_vm2, %v9810_v37  ;;  %v9875_v19 = vrot.slane %v9869_v16, %v1065_v10 }
  0xc7   :  { %997 = vmatpush1.bf16.msra.mxu1 %v7269_v22  ;;  %1028 = vmatprep.mubr.bf16.mxu1 %v9577_v0  ;;  %v8344_v0 = vld [vmem:[#allocation6 + $0x48] ss:$16 sps:$4 sm:$0xff]  }
  0xc8   :  { %2933 = vmatprep.subr.bf16.mxu1 %v8334_v20  ;;  %v1069_v20 = vsub.s32 6, %v9851_v5 }
  0xc9   :  { %2774 = vmatpush1.bf16.msra.mxu0 %v8365_v21  ;;  %v1073_v21 = vsub.s32 7, %v9851_v5 }
  0xca   :  { %2775 = vmatprep.subr.bf16.mxu0 %v8373_v23  ;;  %v9880_v22 = vrot.slane %v9869_v16, %v1069_v20 }
  0xcb   :  { %v9883_v23 = vrot.slane %v9869_v16, %v1073_v21 }
  0xcd   :  { %2776 = vmatpush1.bf16.msra.mxu0 %v8371_v24  ;;  %v9886_v24 = vrot.slane %v9857_v9, %v1069_v20 }
  0xce   :  { %2777 = vmatprep.subr.bf16.mxu0 %v8379_v25  ;;  %7278 = vmatmul.mubr.msk.bf16.vlgmr.msra.gmra.mrb[20].mxu1 %vm691_vm2, %v9810_v37  ;;  %v8403_v37 = vld [vmem:[#allocation6 + $0x184] ss:$16 sps:$4 sm:$0xff]   ;;  %v9889_v25 = vrot.slane %v9857_v9, %v1073_v21 }
  0xcf   :  { %2934 = vmatpush1.bf16.msra.mxu1 %v8332_v26 }
  0xd0   :  { %2935 = vmatprep.subr.bf16.mxu1 %v8340_v27 }
  0xd1   :  { %2778 = vmatpush1.bf16.msra.mxu0 %v8377_v28 }
  0xd2   :  { %2779 = vmatprep.subr.bf16.mxu0 %v8385_v29 }
  0xd3   :  { %2936 = vmatpush1.bf16.msra.mxu1 %v8338_v30  ;;  %v9892_v30 = vsub.s32 0, %v9851_v5 }
  0xd4   :  { %2937 = vmatprep.subr.bf16.mxu1 %v8346_v31  ;;  %v9895_v31 = vsub.s32 1, %v9851_v5 }
  0xd5   :  { %2780 = vmatpush1.bf16.msra.mxu0 %v8383_v32  ;;  %v1046_v32 = vrot.slane %v9869_v16, %v9892_v30  ;;  %v1078_v10 = vrot.slane %v9857_v9, %v9892_v30 }
  0xd6   :  { %2781 = vmatprep.subr.bf16.mxu0 %v8391_v33  ;;  %v1082_v20 = vrot.slane %v9857_v9, %v9895_v31 }
  0xd7   :  { %2938 = vmatpush1.bf16.msra.mxu1 %v8344_v0  ;;  %v1050_v0 = vrot.slane %v9869_v16, %v9895_v31 }
  0xd8   :  { %2939 = vmatprep.subr.bf16.mxu1 %v8352_v34 }
  0xd9   :  { %2782 = vmatpush1.bf16.msra.mxu0 %v8389_v35 }
  0xda   :  { %2783 = vmatprep.subr.bf16.mxu0 %v8397_v36 }
  0xdb   :  { %2940 = vmatpush1.bf16.msra.mxu1 %v8350_v38 }
  0xdc   :  { %2941 = vmatprep.subr.bf16.mxu1 %v8358_v39 }
  0xdd   :  { %2784 = vmatpush1.bf16.msra.mxu0 %v8395_v40 }
  0xde   :  { %2785 = vmatprep.subr.bf16.mxu0 %v8403_v37 }
  0xdf   :  { %2942 = vmatpush1.bf16.msra.mxu1 %v8356_v41 }
  0xe0   :  { %2943 = vmatprep.subr.bf16.mxu1 %v8364_v42 }
  0xe1   :  { %2786 = vmatpush1.bf16.msra.mxu0 %v8401_v43 }
  0xe2   :  { %2787 = vmatprep.subr.bf16.mxu0 %v8409_v49 }
  0xe3   :  { %2944 = vmatpush1.bf16.msra.mxu1 %v8362_v44 }
  0xe4   :  { %2945 = vmatprep.subr.bf16.mxu1 %v8370_v45 }
  0xe5   :  { %2788 = vmatpush1.bf16.msra.mxu0 %v8407_v51 }
  0xe6   :  { %2789 = vmatprep.subr.bf16.mxu0 %v8415_v53 }
  0xe7   :  { %2946 = vmatpush1.bf16.msra.mxu1 %v8368_v46 }
  0xe8   :  { %2947 = vmatprep.subr.bf16.mxu1 %v8376_v47 }
  0xe9   :  { %2790 = vmatpush1.bf16.msra.mxu0 %v8413_v55  ;;  %v8428_v55 = vld [vmem:[#allocation6 + $0x208] ss:$16 sps:$4 sm:$0xff]  }
  0xea   :  { %2791 = vmatprep.subr.bf16.mxu0 %v8421_v57 }
  0xeb   :  { %2948 = vmatpush1.bf16.msra.mxu1 %v8374_v48 }
  0xec   :  { %2949 = vmatprep.subr.bf16.mxu1 %v8382_v50 }
  0xed   :  { %2792 = vmatpush1.bf16.msra.mxu0 %v8419_v59  ;;  %v8436_v59 = vld [vmem:[#allocation6 + $0x22c] ss:$16 sps:$4 sm:$0xff]  }
  0xee   :  { %2804 = vmatprep.subr.bf16.mxu0 %v8427_v61 }
  0xef   :  { %2950 = vmatpush1.bf16.msra.mxu1 %v8380_v52 }
  0xf0   :  { %2951 = vmatprep.subr.bf16.mxu1 %v8388_v54  ;;  %v8425_v54 = vld [vmem:[#allocation6 + $0x200] ss:$16 sps:$4 sm:$0xff]  }
  0xf3   :  { %2952 = vmatpush1.bf16.msra.mxu1 %v8386_v56 }
  0xf4   :  { %2953 = vmatprep.subr.bf16.mxu1 %v8394_v58  ;;  %v8433_v58 = vld [vmem:[#allocation6 + $0x224] ss:$16 sps:$4 sm:$0xff]  }
  0xf7   :  { %2954 = vmatpush1.bf16.msra.mxu1 %v8392_v60 }
  0xf8   :  { %2955 = vmatprep.subr.bf16.mxu1 %v8400_v62 }
  0xfb   :  { %2956 = vmatpush1.bf16.msra.mxu1 %v8398_v63 }
  0xfc   :  { %2957 = vmatprep.subr.bf16.mxu1 %v8406_v1 }
  0xff   :  { %2958 = vmatpush1.bf16.msra.mxu1 %v8404_v2 }
 0x100   :  { %2959 = vmatprep.subr.bf16.mxu1 %v8412_v4  ;;  %v8431_v4 = vld [vmem:[#allocation6 + $0x220] ss:$16 sps:$4 sm:$0xff]  }
 0x103   :  { %2960 = vmatpush1.bf16.msra.mxu1 %v8410_v6  ;;  %v8434_v6 = vld [vmem:[#allocation6 + $0x228] ss:$16 sps:$4 sm:$0xff]  }
 0x104   :  { %2961 = vmatprep.subr.bf16.mxu1 %v8418_v8 }
 0x107   :  { %2962 = vmatpush1.bf16.msra.mxu1 %v8416_v11  ;;  %v8439_v11 = vld [vmem:[#allocation6 + $0x244] ss:$16 sps:$4 sm:$0xff]  }
 0x108   :  { %2963 = vmatprep.subr.bf16.mxu1 %v8424_v14  ;;  %v8442_v14 = vld [vmem:[#allocation6 + $0x24c] ss:$16 sps:$4 sm:$0xff]  }
 0x10b   :  { %2964 = vmatpush1.bf16.msra.mxu1 %v8422_v15 }
 0x10c   :  { %2976 = vmatprep.subr.bf16.mxu1 %v8430_v17 }
 0x159   :  { %v301_v26 = vpop.f32.mrb[0].mxu1 }
 0x15a   :  { %v303_v27 = vpop.f32.mrb[1].mxu1 }
 0x15b   :  { %v305_v28 = vpop.f32.mrb[2].mxu1 }
 0x15c   :  { %v307_v29 = vpop.f32.mrb[3].mxu1 }
 0x169   :  { %v387_v34 = vpop.f32.mrb[8].mxu1 }
 0x16a   :  { %v729_v33 = vpop.f32.mrb[8].mxu0  ;;  %v389_v38 = vpop.f32.mrb[9].mxu1 }
 0x16b   :  { %v730_v35 = vadd.f32 %v729_v33, %v301_v26  ;;  %v731_v36 = vpop.f32.mrb[9].mxu0  ;;  %v391_v37 = vpop.f32.mrb[10].mxu1 }
 0x16c   :  { %v732_v39 = vadd.f32 %v731_v36, %v303_v27  ;;  %v733_v40 = vpop.f32.mrb[10].mxu0  ;;  %v393_v44 = vpop.f32.mrb[11].mxu1 }
 0x16d   :  { %v1123_v41 = vadd.f32 %v1046_v32, %v730_v35  ;;  %v734_v42 = vadd.f32 %v733_v40, %v305_v28  ;;  %v735_v43 = vpop.f32.mrb[11].mxu0 }
 0x16e   :  { %v1124_v45 = vadd.f32 %v1050_v0, %v732_v39  ;;  %v736_v46 = vadd.f32 %v735_v43, %v307_v29 }
 0x16f   :  { %v1139_v47 = vadd.f32 %v1046_v32, %v734_v42  ;;  %v1155_v49 = vmax.f32 %v1123_v41, 0.0 }
 0x170   :  { %v1140_v48 = vadd.f32 %v1050_v0, %v736_v46  ;;  %v1156_v51 = vmax.f32 %v1124_v45, 0.0  ;;  %v8437_v0 = vld [vmem:[#allocation6 + $0x240] ss:$16 sps:$4 sm:$0xff]   ;;  %v8446_v45 = vld [vmem:[#allocation6 + $0x268] ss:$16 sps:$4 sm:$0xff]  }
 0x171   :  { %v1171_v50 = vmax.f32 %v1139_v47, 0.0 }
 0x172   :  { %v1172_v52 = vmax.f32 %v1140_v48, 0.0  ;;  %v815_v53 = vpop.f32.mrb[12].mxu0 }
 0x173   :  { %v1187_v56 = vpack.c.bf16 %v1171_v50, %v1155_v49  ;;  %v817_v57 = vpop.f32.mrb[13].mxu0  ;;  %v816_v60 = vadd.f32 %v815_v53, %v387_v34  ;;  %v8440_v34 = vld [vmem:[#allocation6 + $0x248] ss:$16 sps:$4 sm:$0xff]   ;;  %v8451_v49 = vld [vmem:[#allocation6 + $0x284] ss:$16 sps:$4 sm:$0xff]  }
 0x174   :  { %v1188_v61 = vpack.c.bf16 %v1172_v52, %v1156_v51  ;;  %v819_v62 = vpop.f32.mrb[14].mxu0  ;;  %v818_v63 = vadd.f32 %v817_v57, %v389_v38  ;;  %v8454_v50 = vld [vmem:[#allocation6 + $0x28c] ss:$16 sps:$4 sm:$0xff]   ;;  %v8449_v53 = vld [vmem:[#allocation6 + $0x280] ss:$16 sps:$4 sm:$0xff]  }
 0x175   :  { %v821_v1 = vpop.f32.mrb[15].mxu0  ;;  %v1127_v2 = vadd.f32 %v9872_v18, %v816_v60  ;;  %v820_v3 = vadd.f32 %v819_v62, %v391_v37  ;;  %v8448_v37 = vld [vmem:[#allocation6 + $0x26c] ss:$16 sps:$4 sm:$0xff]  }
 0x176   :  { %2793 = vmatprep.mubr.bf16.mxu0 %v1188_v61  ;;  %2965 = vmatprep.mubr.bf16.mxu1 %v1188_v61  ;;  %v1128_v7 = vadd.f32 %v9875_v19, %v818_v63  ;;  %v822_v8 = vadd.f32 %v821_v1, %v393_v44  ;;  %v8443_v44 = vld [vmem:[#allocation6 + $0x260] ss:$16 sps:$4 sm:$0xff]   ;;  %v8457_v63 = vld [vmem:[#allocation6 + $0x2a4] ss:$16 sps:$4 sm:$0xff]   ;;  %v8460_v1 = vld [vmem:[#allocation6 + $0x2ac] ss:$16 sps:$4 sm:$0xff]  }
 0x177   :  { %2794 = vmatmul.mubr.bf16.vlgmr.msra.gmra.mrb[16].mxu0 %v1187_v56  ;;  %2966 = vmatmul.mubr.bf16.vlgmr.msra.gmra.mrb[24].mxu1 %v1187_v56  ;;  %v1159_v15 = vmax.f32 %v1127_v2, 0.0  ;;  %v1143_v17 = vadd.f32 %v9872_v18, %v820_v3  ;;  %v9921_v56 = vsub.s32 3, %v9851_v5 }
 0x178   :  { %2805 = vmatpush1.bf16.msra.mxu0 %v8425_v54  ;;  %2977 = vmatpush1.bf16.msra.mxu1 %v8428_v55  ;;  %v1160_v21 = vmax.f32 %v1128_v7, 0.0  ;;  %v1144_v26 = vadd.f32 %v9875_v19, %v822_v8  ;;  %v8445_v19 = vld [vmem:[#allocation6 + $0x264] ss:$16 sps:$4 sm:$0xff]   ;;  %v8452_v54 = vld [vmem:[#allocation6 + $0x288] ss:$16 sps:$4 sm:$0xff]   ;;  %v9918_v55 = vsub.s32 2, %v9851_v5 }
 0x179   :  { %2806 = vmatprep.subr.bf16.mxu0 %v8433_v58  ;;  %2978 = vmatprep.subr.bf16.mxu1 %v8436_v59  ;;  %v1175_v27 = vmax.f32 %v1143_v17, 0.0 }
 0x17a   :  { %v901_v28 = vpop.f32.mrb[0].mxu0  ;;  %v1176_v29 = vmax.f32 %v1144_v26, 0.0  ;;  %v1054_v8 = vrot.slane %v9869_v16, %v9918_v55 }
 0x17b   :  { %v1131_v32 = vadd.f32 %v1078_v10, %v901_v28  ;;  %v903_v33 = vpop.f32.mrb[1].mxu0  ;;  %v9909_v35 = vpack.c.bf16 %v1175_v27, %v1159_v15  ;;  %v8466_v15 = vld [vmem:[#allocation6 + $0x2cc] ss:$16 sps:$4 sm:$0xff]  }
 0x17c   :  { %v1132_v18 = vadd.f32 %v1082_v20, %v903_v33  ;;  %2807 = vmatpush1.bf16.msra.mxu0 %v8431_v4  ;;  %2979 = vmatpush1.bf16.msra.mxu1 %v8434_v6  ;;  %v905_v36 = vpop.f32.mrb[2].mxu0  ;;  %v9911_v38 = vpack.c.bf16 %v1176_v29, %v1160_v21  ;;  %v8455_v4 = vld [vmem:[#allocation6 + $0x2a0] ss:$16 sps:$4 sm:$0xff]   ;;  %v8458_v6 = vld [vmem:[#allocation6 + $0x2a8] ss:$16 sps:$4 sm:$0xff]  }
 0x17d   :  { %v1147_v39 = vadd.f32 %v1078_v10, %v905_v36  ;;  %v907_v40 = vpop.f32.mrb[3].mxu0  ;;  %2808 = vmatprep.subr.bf16.mxu0 %v8439_v11  ;;  %2980 = vmatprep.subr.bf16.mxu1 %v8442_v14  ;;  %v1163_v41 = vmax.f32 %v1131_v32, 0.0  ;;  %v8463_v14 = vld [vmem:[#allocation6 + $0x2c4] ss:$16 sps:$4 sm:$0xff]   ;;  %v8464_v21 = vld [vmem:[#allocation6 + $0x2c8] ss:$16 sps:$4 sm:$0xff]  }
 0x17e   :  { %v1164_v42 = vmax.f32 %v1132_v18, 0.0  ;;  %v1148_v43 = vadd.f32 %v1082_v20, %v907_v40  ;;  %v8461_v20 = vld [vmem:[#allocation6 + $0x2c0] ss:$16 sps:$4 sm:$0xff]   ;;  %v8470_v40 = vld [vmem:[#allocation6 + $0x2e8] ss:$16 sps:$4 sm:$0xff]  }
 0x17f   :  { %v1179_v46 = vmax.f32 %v1147_v39, 0.0  ;;  %v8467_v39 = vld [vmem:[#allocation6 + $0x2e0] ss:$16 sps:$4 sm:$0xff]  }
 0x180   :  { %v1180_v47 = vmax.f32 %v1148_v43, 0.0  ;;  %2809 = vmatpush1.bf16.msra.mxu0 %v8437_v0  ;;  %2981 = vmatpush1.bf16.msra.mxu1 %v8440_v34  ;;  %v8472_v0 = vld [vmem:[#allocation6 + $0x2ec] ss:$16 sps:$4 sm:$0xff]  }
 0x181   :  { %v9913_v48 = vpack.c.bf16 %v1179_v46, %v1163_v41  ;;  %2810 = vmatprep.subr.bf16.mxu0 %v8445_v19  ;;  %2982 = vmatprep.subr.bf16.mxu1 %v8448_v37  ;;  %v8478_v43 = vld [vmem:[#allocation6 + $0x30c] ss:$16 sps:$4 sm:$0xff]   ;;  %v8473_v46 = vld [vmem:[#allocation6 + $0x300] ss:$16 sps:$4 sm:$0xff]  }
 0x182   :  { %v9915_v51 = vpack.c.bf16 %v1180_v47, %v1164_v42  ;;  %v987_v52 = vpop.f32.mrb[4].mxu0  ;;  %v8475_v42 = vld [vmem:[#allocation6 + $0x304] ss:$16 sps:$4 sm:$0xff]   ;;  %v8476_v47 = vld [vmem:[#allocation6 + $0x308] ss:$16 sps:$4 sm:$0xff]  }
 0x183   :  { %v1135_v57 = vadd.f32 %v9861_v12, %v987_v52  ;;  %v989_v58 = vpop.f32.mrb[5].mxu0 }
 0x184   :  { %v1136_v59 = vadd.f32 %v9864_v13, %v989_v58  ;;  %2811 = vmatpush1.bf16.msra.mxu0 %v8443_v44  ;;  %2983 = vmatpush1.bf16.msra.mxu1 %v8446_v45  ;;  %v991_v60 = vpop.f32.mrb[6].mxu0 }
 0x185   :  { %v1151_v61 = vadd.f32 %v9861_v12, %v991_v60  ;;  %v993_v62 = vpop.f32.mrb[7].mxu0  ;;  %2812 = vmatprep.subr.bf16.mxu0 %v8451_v49  ;;  %2984 = vmatprep.subr.bf16.mxu1 %v8454_v50  ;;  %v1167_v2 = vmax.f32 %v1135_v57, 0.0  ;;  %v1058_v12 = vrot.slane %v9869_v16, %v9921_v56  ;;  %v8469_v16 = vld [vmem:[#allocation6 + $0x2e4] ss:$16 sps:$4 sm:$0xff]   ;;  %v8484_v60 = vld [vmem:[#allocation6 + $0x32c] ss:$16 sps:$4 sm:$0xff]  }
 0x186   :  { %v1168_v3 = vmax.f32 %v1136_v59, 0.0  ;;  %v1152_v5 = vadd.f32 %v9864_v13, %v993_v62  ;;  %v8481_v59 = vld [vmem:[#allocation6 + $0x324] ss:$16 sps:$4 sm:$0xff]  }
 0x187   :  { %v1183_v7 = vmax.f32 %v1151_v61, 0.0 }
 0x188   :  { %v1184_v10 = vmax.f32 %v1152_v5, 0.0  ;;  %2813 = vmatpush1.bf16.msra.mxu0 %v8449_v53  ;;  %2985 = vmatpush1.bf16.msra.mxu1 %v8452_v54 }
 0x189   :  { %v9931_v11 = vpack.c.bf16 %v1183_v7, %v1167_v2  ;;  %2814 = vmatprep.subr.bf16.mxu0 %v8457_v63  ;;  %2986 = vmatprep.subr.bf16.mxu1 %v8460_v1  ;;  %v772_v13 = vpop.f32.mrb[4].mxu1  ;;  %v8479_v63 = vld [vmem:[#allocation6 + $0x320] ss:$16 sps:$4 sm:$0xff]   ;;  %v8482_v1 = vld [vmem:[#allocation6 + $0x328] ss:$16 sps:$4 sm:$0xff]  }
 0x18a   :  { %v9933_v17 = vpack.c.bf16 %v1184_v10, %v1168_v3  ;;  %v1125_v26 = vadd.f32 %v1054_v8, %v772_v13  ;;  %v774_v27 = vpop.f32.mrb[5].mxu1  ;;  %v1086_v3 = vrot.slane %v9857_v9, %v9918_v55  ;;  %v8485_v10 = vld [vmem:[#allocation6 + $0x340] ss:$16 sps:$4 sm:$0xff]  }
 0x18b   :  { %v1126_v28 = vadd.f32 %v1058_v12, %v774_v27  ;;  %v776_v29 = vpop.f32.mrb[6].mxu1  ;;  %v8493_v27 = vld [vmem:[#allocation6 + $0x364] ss:$16 sps:$4 sm:$0xff]  }
 0x18c   :  { %2815 = vmatpush1.bf16.msra.mxu0 %v8455_v4  ;;  %2987 = vmatpush1.bf16.msra.mxu1 %v8458_v6  ;;  %v1141_v32 = vadd.f32 %v1054_v8, %v776_v29  ;;  %v778_v33 = vpop.f32.mrb[7].mxu1  ;;  %v1157_v34 = vmax.f32 %v1125_v26, 0.0  ;;  %v8487_v6 = vld [vmem:[#allocation6 + $0x344] ss:$16 sps:$4 sm:$0xff]  }
 0x18d   :  { %2816 = vmatprep.subr.bf16.mxu0 %v8463_v14  ;;  %2988 = vmatprep.subr.bf16.mxu1 %v8466_v15  ;;  %v1158_v18 = vmax.f32 %v1126_v28, 0.0  ;;  %v1142_v36 = vadd.f32 %v1058_v12, %v778_v33  ;;  %v8488_v12 = vld [vmem:[#allocation6 + $0x348] ss:$16 sps:$4 sm:$0xff]   ;;  %v8496_v28 = vld [vmem:[#allocation6 + $0x36c] ss:$16 sps:$4 sm:$0xff]  }
 0x18e   :  { %v1173_v19 = vmax.f32 %v1141_v32, 0.0  ;;  %v8491_v33 = vld [vmem:[#allocation6 + $0x360] ss:$16 sps:$4 sm:$0xff]  }
 0x18f   :  { %v1174_v37 = vmax.f32 %v1142_v36, 0.0  ;;  %v8499_v36 = vld [vmem:[#allocation6 + $0x384] ss:$16 sps:$4 sm:$0xff]  }
 0x190   :  { %2817 = vmatpush1.bf16.msra.mxu0 %v8461_v20  ;;  %2989 = vmatpush1.bf16.msra.mxu1 %v8464_v21  ;;  %v9935_v41 = vpack.c.bf16 %v1173_v19, %v1157_v34 }
 0x191   :  { %2818 = vmatprep.subr.bf16.mxu0 %v8469_v16  ;;  %2990 = vmatprep.subr.bf16.mxu1 %v8472_v0  ;;  %v1190_v44 = vpack.c.bf16 %v1174_v37, %v1158_v18  ;;  %v858_v45 = vpop.f32.mrb[12].mxu1  ;;  %v8494_v16 = vld [vmem:[#allocation6 + $0x368] ss:$16 sps:$4 sm:$0xff]   ;;  %v8497_v37 = vld [vmem:[#allocation6 + $0x380] ss:$16 sps:$4 sm:$0xff]  }
 0x192   :  { %v1129_v49 = vadd.f32 %v9880_v22, %v858_v45  ;;  %v860_v50 = vpop.f32.mrb[13].mxu1 }
 0x193   :  { %v1130_v52 = vadd.f32 %v9883_v23, %v860_v50  ;;  %v862_v53 = vpop.f32.mrb[14].mxu1  ;;  %2836 = vmatprep.mubr.bf16.mxu0 %v1190_v44  ;;  %3008 = vmatprep.mubr.bf16.mxu1 %v1190_v44 }
 0x194   :  { %2819 = vmatpush1.bf16.msra.mxu0 %v8467_v39  ;;  %2991 = vmatpush1.bf16.msra.mxu1 %v8470_v40  ;;  %v1161_v54 = vmax.f32 %v1129_v49, 0.0  ;;  %v1145_v57 = vadd.f32 %v9880_v22, %v862_v53  ;;  %v864_v58 = vpop.f32.mrb[15].mxu1  ;;  %v1090_v22 = vrot.slane %v9857_v9, %v9921_v56  ;;  %v8502_v39 = vld [vmem:[#allocation6 + $0x38c] ss:$16 sps:$4 sm:$0xff]  }
 0x195   :  { %v1162_v61 = vmax.f32 %v1130_v52, 0.0  ;;  %v1146_v62 = vadd.f32 %v9883_v23, %v864_v58  ;;  %2820 = vmatprep.subr.bf16.mxu0 %v8475_v42  ;;  %2992 = vmatprep.subr.bf16.mxu1 %v8478_v43  ;;  %v8490_v23 = vld [vmem:[#allocation6 + $0x34c] ss:$16 sps:$4 sm:$0xff]   ;;  %v8500_v42 = vld [vmem:[#allocation6 + $0x388] ss:$16 sps:$4 sm:$0xff]  }
 0x196   :  { %v1177_v2 = vmax.f32 %v1145_v57, 0.0  ;;  %v8505_v52 = vld [vmem:[#allocation6 + $0x3a4] ss:$16 sps:$4 sm:$0xff]   ;;  %v8508_v53 = vld [vmem:[#allocation6 + $0x3ac] ss:$16 sps:$4 sm:$0xff]  }
 0x197   :  { %v1178_v5 = vmax.f32 %v1146_v62, 0.0  ;;  %v8503_v58 = vld [vmem:[#allocation6 + $0x3a0] ss:$16 sps:$4 sm:$0xff]  }
 0x198   :  { %2821 = vmatpush1.bf16.msra.mxu0 %v8473_v46  ;;  %2993 = vmatpush1.bf16.msra.mxu1 %v8476_v47  ;;  %v9945_v4 = vpack.c.bf16 %v1177_v2, %v1161_v54  ;;  %v8509_v2 = vld [vmem:[#allocation6 + $0x3c0] ss:$16 sps:$4 sm:$0xff]  }
 0x199   :  { %2822 = vmatprep.subr.bf16.mxu0 %v8481_v59  ;;  %2994 = vmatprep.subr.bf16.mxu1 %v8484_v60  ;;  %v9947_v7 = vpack.c.bf16 %v1178_v5, %v1162_v61  ;;  %v944_v8 = vpop.f32.mrb[16].mxu1  ;;  %v8506_v59 = vld [vmem:[#allocation6 + $0x3a8] ss:$16 sps:$4 sm:$0xff]   ;;  %v8520_v5 = vld [vmem:[#allocation6 + $0x3ec] ss:$16 sps:$4 sm:$0xff]  }
 0x19a   :  { %v1133_v14 = vadd.f32 %v1086_v3, %v944_v8  ;;  %v946_v15 = vpop.f32.mrb[17].mxu1  ;;  %v8526_v8 = vld [vmem:[#allocation6 + $0x40c] ss:$16 sps:$4 sm:$0xff]  }
 0x19b   :  { %v1134_v13 = vadd.f32 %v1090_v22, %v946_v15  ;;  %v948_v20 = vpop.f32.mrb[18].mxu1  ;;  %v8532_v15 = vld [vmem:[#allocation6 + $0x42c] ss:$16 sps:$4 sm:$0xff]  }
 0x19c   :  { %2823 = vmatpush1.bf16.msra.mxu0 %v8479_v63  ;;  %2995 = vmatpush1.bf16.msra.mxu1 %v8482_v1  ;;  %v1165_v21 = vmax.f32 %v1133_v14, 0.0  ;;  %v1149_v26 = vadd.f32 %v1086_v3, %v948_v20  ;;  %v950_v9 = vpop.f32.mrb[19].mxu1  ;;  %v8511_v63 = vld [vmem:[#allocation6 + $0x3c4] ss:$16 sps:$4 sm:$0xff]   ;;  %v8512_v3 = vld [vmem:[#allocation6 + $0x3c8] ss:$16 sps:$4 sm:$0xff]  }
 0x19d   :  { %2824 = vmatprep.subr.bf16.mxu0 %v8487_v6  ;;  %2996 = vmatprep.subr.bf16.mxu1 %v8490_v23  ;;  %v1166_v29 = vmax.f32 %v1134_v13, 0.0  ;;  %v1150_v32 = vadd.f32 %v1090_v22, %v950_v9  ;;  %v8515_v22 = vld [vmem:[#allocation6 + $0x3e0] ss:$16 sps:$4 sm:$0xff]   ;;  %v8518_v6 = vld [vmem:[#allocation6 + $0x3e8] ss:$16 sps:$4 sm:$0xff]  }
 0x19e   :  { %v1181_v0 = vmax.f32 %v1149_v26, 0.0  ;;  %v8523_v23 = vld [vmem:[#allocation6 + $0x404] ss:$16 sps:$4 sm:$0xff]   ;;  %v8527_v13 = vld [vmem:[#allocation6 + $0x420] ss:$16 sps:$4 sm:$0xff]  }
 0x19f   :  { %v1182_v34 = vmax.f32 %v1150_v32, 0.0  ;;  %v8529_v14 = vld [vmem:[#allocation6 + $0x424] ss:$16 sps:$4 sm:$0xff]   ;;  %v8530_v20 = vld [vmem:[#allocation6 + $0x428] ss:$16 sps:$4 sm:$0xff]  }
 0x1a0   :  { %2825 = vmatpush1.bf16.msra.mxu0 %v8485_v10  ;;  %2997 = vmatpush1.bf16.msra.mxu1 %v8488_v12  ;;  %v9949_v18 = vpack.c.bf16 %v1181_v0, %v1165_v21  ;;  %v8521_v10 = vld [vmem:[#allocation6 + $0x400] ss:$16 sps:$4 sm:$0xff]   ;;  %v8524_v12 = vld [vmem:[#allocation6 + $0x408] ss:$16 sps:$4 sm:$0xff]   ;;  %v8535_v21 = vld [vmem:[#allocation6 + $0x444] ss:$16 sps:$4 sm:$0xff]  }
 0x1a1   :  { %2826 = vmatprep.subr.bf16.mxu0 %v8493_v27  ;;  %2998 = vmatprep.subr.bf16.mxu1 %v8496_v28  ;;  %v9951_v40 = vpack.c.bf16 %v1182_v34, %v1166_v29  ;;  %v1030_v19 = vpop.f32.mrb[20].mxu1  ;;  %v8538_v26 = vld [vmem:[#allocation6 + $0x44c] ss:$16 sps:$4 sm:$0xff]   ;;  %v8533_v9 = vld [vmem:[#allocation6 + $0x440] ss:$16 sps:$4 sm:$0xff]  }
 0x1a2   :  { %v1137_v43 = vadd.f32 %v9886_v24, %v1030_v19  ;;  %v1032_v44 = vpop.f32.mrb[21].mxu1  ;;  %v8536_v27 = vld [vmem:[#allocation6 + $0x448] ss:$16 sps:$4 sm:$0xff]   ;;  %v8541_v28 = vld [vmem:[#allocation6 + $0x464] ss:$16 sps:$4 sm:$0xff]  }
 0x1a3   :  { %v1138_v45 = vadd.f32 %v9889_v25, %v1032_v44  ;;  %v1034_v46 = vpop.f32.mrb[22].mxu1  ;;  %v8544_v29 = vld [vmem:[#allocation6 + $0x46c] ss:$16 sps:$4 sm:$0xff]   ;;  %v8542_v32 = vld [vmem:[#allocation6 + $0x468] ss:$16 sps:$4 sm:$0xff]  }
 0x1a4   :  { %2827 = vmatpush1.bf16.msra.mxu0 %v8491_v33  ;;  %2999 = vmatpush1.bf16.msra.mxu1 %v8494_v16  ;;  %v1169_v47 = vmax.f32 %v1137_v43, 0.0  ;;  %v1153_v49 = vadd.f32 %v9886_v24, %v1034_v46  ;;  %v1036_v50 = vpop.f32.mrb[23].mxu1  ;;  %v8514_v24 = vld [vmem:[#allocation6 + $0x3cc] ss:$16 sps:$4 sm:$0xff]   ;;  %v8547_v33 = vld [vmem:[#allocation6 + $0x484] ss:$16 sps:$4 sm:$0xff]  }
 0x1a5   :  { %2828 = vmatprep.subr.bf16.mxu0 %v8499_v36  ;;  %3000 = vmatprep.subr.bf16.mxu1 %v8502_v39  ;;  %v1170_v54 = vmax.f32 %v1138_v45, 0.0  ;;  %v1154_v57 = vadd.f32 %v9889_v25, %v1036_v50  ;;  %v8517_v25 = vld [vmem:[#allocation6 + $0x3e4] ss:$16 sps:$4 sm:$0xff]   ;;  %v8545_v16 = vld [vmem:[#allocation6 + $0x480] ss:$16 sps:$4 sm:$0xff]  }
 0x1a6   :  { %v1185_v60 = vmax.f32 %v1153_v49, 0.0  ;;  %v8548_v0 = vld [vmem:[#allocation6 + $0x488] ss:$16 sps:$4 sm:$0xff]   ;;  %v8553_v34 = vld [vmem:[#allocation6 + $0x4a4] ss:$16 sps:$4 sm:$0xff]  }
 0x1a7   :  { %v1186_v61 = vmax.f32 %v1154_v57, 0.0  ;;  %v8551_v36 = vld [vmem:[#allocation6 + $0x4a0] ss:$16 sps:$4 sm:$0xff]   ;;  %v8556_v39 = vld [vmem:[#allocation6 + $0x4ac] ss:$16 sps:$4 sm:$0xff]  }
 0x1a8   :  { %2829 = vmatpush1.bf16.msra.mxu0 %v8497_v37  ;;  %3001 = vmatpush1.bf16.msra.mxu1 %v8500_v42  ;;  %v9957_v62 = vpack.c.bf16 %v1185_v60, %v1169_v47  ;;  %v8554_v19 = vld [vmem:[#allocation6 + $0x4a8] ss:$16 sps:$4 sm:$0xff]   ;;  %v8559_v37 = vld [vmem:[#allocation6 + $0x4c4] ss:$16 sps:$4 sm:$0xff]   ;;  %v8557_v42 = vld [vmem:[#allocation6 + $0x4c0] ss:$16 sps:$4 sm:$0xff]  }
 0x1a9   :  { %2830 = vmatprep.subr.bf16.mxu0 %v8505_v52  ;;  %3002 = vmatprep.subr.bf16.mxu1 %v8508_v53  ;;  %v9959_v1 = vpack.c.bf16 %v1186_v61, %v1170_v54  ;;  %v8562_v43 = vld [vmem:[#allocation6 + $0x4cc] ss:$16 sps:$4 sm:$0xff]   ;;  %v8560_v44 = vld [vmem:[#allocation6 + $0x4c8] ss:$16 sps:$4 sm:$0xff]   ;;  %v8565_v45 = vld [vmem:[#allocation6 + $0x4e4] ss:$16 sps:$4 sm:$0xff]  }
 0x1aa   :  { %v8563_v46 = vld [vmem:[#allocation6 + $0x4e0] ss:$16 sps:$4 sm:$0xff]   ;;  %v8568_v47 = vld [vmem:[#allocation6 + $0x4ec] ss:$16 sps:$4 sm:$0xff]   ;;  %v8566_v49 = vld [vmem:[#allocation6 + $0x4e8] ss:$16 sps:$4 sm:$0xff]  }
 0x1ab   :  { %v8571_v50 = vld [vmem:[#allocation6 + $0x504] ss:$16 sps:$4 sm:$0xff]   ;;  %v8569_v52 = vld [vmem:[#allocation6 + $0x500] ss:$16 sps:$4 sm:$0xff]   ;;  %v8574_v53 = vld [vmem:[#allocation6 + $0x50c] ss:$16 sps:$4 sm:$0xff]  }
 0x1ac   :  { %2831 = vmatpush1.bf16.msra.mxu0 %v8503_v58  ;;  %3003 = vmatpush1.bf16.msra.mxu1 %v8506_v59  ;;  %v8572_v54 = vld [vmem:[#allocation6 + $0x508] ss:$16 sps:$4 sm:$0xff]   ;;  %v8577_v57 = vld [vmem:[#allocation6 + $0x524] ss:$16 sps:$4 sm:$0xff]   ;;  %v8575_v58 = vld [vmem:[#allocation6 + $0x520] ss:$16 sps:$4 sm:$0xff]  }
 0x1ad   :  { %2832 = vmatprep.subr.bf16.mxu0 %v8511_v63  ;;  %3004 = vmatprep.subr.bf16.mxu1 %v8514_v24  ;;  %v8580_v59 = vld [vmem:[#allocation6 + $0x52c] ss:$16 sps:$4 sm:$0xff]   ;;  %v8578_v60 = vld [vmem:[#allocation6 + $0x528] ss:$16 sps:$4 sm:$0xff]   ;;  %v8583_v61 = vld [vmem:[#allocation6 + $0x544] ss:$16 sps:$4 sm:$0xff]  }
 0x1ae   :  { %v8581_v63 = vld [vmem:[#allocation6 + $0x540] ss:$16 sps:$4 sm:$0xff]   ;;  %v8586_v24 = vld [vmem:[#allocation6 + $0x54c] ss:$16 sps:$4 sm:$0xff]  }
 0x1b0   :  { %2833 = vmatpush1.bf16.msra.mxu0 %v8509_v2  ;;  %3005 = vmatpush1.bf16.msra.mxu1 %v8512_v3  ;;  %v8584_v2 = vld [vmem:[#allocation6 + $0x548] ss:$16 sps:$4 sm:$0xff]   ;;  %v8589_v3 = vld [vmem:[#allocation6 + $0x564] ss:$16 sps:$4 sm:$0xff]  }
 0x1b1   :  { %2834 = vmatprep.subr.bf16.mxu0 %v8517_v25  ;;  %3006 = vmatprep.subr.bf16.mxu1 %v8520_v5  ;;  %v8587_v25 = vld [vmem:[#allocation6 + $0x560] ss:$16 sps:$4 sm:$0xff]   ;;  %v8592_v5 = vld [vmem:[#allocation6 + $0x56c] ss:$16 sps:$4 sm:$0xff]  }
 0x1b4   :  { %2835 = vmatpush1.bf16.msra.mxu0 %v8515_v22  ;;  %3007 = vmatpush1.bf16.msra.mxu1 %v8518_v6  ;;  %v8590_v22 = vld [vmem:[#allocation6 + $0x568] ss:$16 sps:$4 sm:$0xff]   ;;  %v8595_v6 = vld [vmem:[#allocation6 + $0x584] ss:$16 sps:$4 sm:$0xff]  }
 0x1b5   :  { %2847 = vmatprep.subr.bf16.mxu0 %v8523_v23  ;;  %3019 = vmatprep.subr.bf16.mxu1 %v8526_v8  ;;  %v8593_v23 = vld [vmem:[#allocation6 + $0x580] ss:$16 sps:$4 sm:$0xff]   ;;  %v8598_v8 = vld [vmem:[#allocation6 + $0x58c] ss:$16 sps:$4 sm:$0xff]  }
 0x1b7   :  { %2837 = vmatmul.mubr.bf16.vlgmr.msra.gmra.mrb[16].mxu0 %v9935_v41  ;;  %3009 = vmatmul.mubr.bf16.vlgmr.msra.gmra.mrb[24].mxu1 %v9935_v41  ;;  %v8539_v41 = vld [vmem:[#allocation6 + $0x460] ss:$16 sps:$4 sm:$0xff]  }
 0x1b8   :  { %2848 = vmatpush1.bf16.msra.mxu0 %v8521_v10  ;;  %2879 = vmatprep.mubr.bf16.mxu0 %v9911_v38  ;;  %v8596_v10 = vld [vmem:[#allocation6 + $0x588] ss:$16 sps:$4 sm:$0xff]  }
 0x1b9   :  { %3020 = vmatpush1.bf16.msra.mxu1 %v8524_v12  ;;  %3051 = vmatprep.mubr.bf16.mxu1 %v9911_v38  ;;  %v8550_v38 = vld [vmem:[#allocation6 + $0x48c] ss:$16 sps:$4 sm:$0xff]   ;;  %v8601_v12 = vld [vmem:[#allocation6 + $0x5a4] ss:$16 sps:$4 sm:$0xff]  }
 0x1ba   :  { %2849 = vmatprep.subr.bf16.mxu0 %v8529_v14  ;;  %3021 = vmatprep.subr.bf16.mxu1 %v8532_v15  ;;  %v8599_v14 = vld [vmem:[#allocation6 + $0x5a0] ss:$16 sps:$4 sm:$0xff]   ;;  %v8604_v15 = vld [vmem:[#allocation6 + $0x5ac] ss:$16 sps:$4 sm:$0xff]  }
 0x1bc   :  { %2850 = vmatpush1.bf16.msra.mxu0 %v8527_v13  ;;  %v8602_v13 = vld [vmem:[#allocation6 + $0x5a8] ss:$16 sps:$4 sm:$0xff]  }
 0x1bd   :  { %3022 = vmatpush1.bf16.msra.mxu1 %v8530_v20  ;;  %2851 = vmatprep.subr.bf16.mxu0 %v8535_v21  ;;  %v8607_v20 = vld [vmem:[#allocation6 + $0x5c4] ss:$16 sps:$4 sm:$0xff]   ;;  %v8605_v21 = vld [vmem:[#allocation6 + $0x5c0] ss:$16 sps:$4 sm:$0xff]  }
 0x1be   :  { %3023 = vmatprep.subr.bf16.mxu1 %v8538_v26  ;;  %v8610_v26 = vld [vmem:[#allocation6 + $0x5cc] ss:$16 sps:$4 sm:$0xff]  }
 0x1c0   :  { %2852 = vmatpush1.bf16.msra.mxu0 %v8533_v9  ;;  %v8608_v9 = vld [vmem:[#allocation6 + $0x5c8] ss:$16 sps:$4 sm:$0xff]  }
 0x1c1   :  { %3024 = vmatpush1.bf16.msra.mxu1 %v8536_v27  ;;  %2853 = vmatprep.subr.bf16.mxu0 %v8541_v28  ;;  %v8613_v27 = vld [vmem:[#allocation6 + $0x5e4] ss:$16 sps:$4 sm:$0xff]   ;;  %v8611_v28 = vld [vmem:[#allocation6 + $0x5e0] ss:$16 sps:$4 sm:$0xff]  }
 0x1c2   :  { %3025 = vmatprep.subr.bf16.mxu1 %v8544_v29  ;;  %v8614_v29 = vld [vmem:[#allocation6 + $0x5e8] ss:$16 sps:$4 sm:$0xff]  }
 0x1c4   :  { %2854 = vmatpush1.bf16.msra.mxu0 %v8539_v41  ;;  %v8616_v41 = vld [vmem:[#allocation6 + $0x5ec] ss:$16 sps:$4 sm:$0xff]  }
 0x1c5   :  { %3026 = vmatpush1.bf16.msra.mxu1 %v8542_v32  ;;  %2855 = vmatprep.subr.bf16.mxu0 %v8547_v33  ;;  %v8619_v32 = vld [vmem:[#allocation6 + $0x604] ss:$16 sps:$4 sm:$0xff]   ;;  %v8622_v33 = vld [vmem:[#allocation6 + $0x60c] ss:$16 sps:$4 sm:$0xff]  }
 0x1c6   :  { %3027 = vmatprep.subr.bf16.mxu1 %v8550_v38  ;;  %v8620_v38 = vld [vmem:[#allocation6 + $0x608] ss:$16 sps:$4 sm:$0xff]  }
 0x1c8   :  { %2856 = vmatpush1.bf16.msra.mxu0 %v8545_v16  ;;  %v8617_v16 = vld [vmem:[#allocation6 + $0x600] ss:$16 sps:$4 sm:$0xff]  }
 0x1c9   :  { %3028 = vmatpush1.bf16.msra.mxu1 %v8548_v0  ;;  %2857 = vmatprep.subr.bf16.mxu0 %v8553_v34  ;;  %v8625_v0 = vld [vmem:[#allocation6 + $0x624] ss:$16 sps:$4 sm:$0xff]   ;;  %v8623_v34 = vld [vmem:[#allocation6 + $0x620] ss:$16 sps:$4 sm:$0xff]  }
 0x1ca   :  { %3029 = vmatprep.subr.bf16.mxu1 %v8556_v39  ;;  %v8628_v39 = vld [vmem:[#allocation6 + $0x62c] ss:$16 sps:$4 sm:$0xff]  }
 0x1cc   :  { %2858 = vmatpush1.bf16.msra.mxu0 %v8551_v36  ;;  %v8626_v36 = vld [vmem:[#allocation6 + $0x628] ss:$16 sps:$4 sm:$0xff]  }
 0x1cd   :  { %3030 = vmatpush1.bf16.msra.mxu1 %v8554_v19  ;;  %2859 = vmatprep.subr.bf16.mxu0 %v8559_v37  ;;  %v8631_v19 = vld [vmem:[#allocation6 + $0x644] ss:$16 sps:$4 sm:$0xff]   ;;  %v8634_v37 = vld [vmem:[#allocation6 + $0x64c] ss:$16 sps:$4 sm:$0xff]  }
 0x1ce   :  { %3031 = vmatprep.subr.bf16.mxu1 %v8562_v43  ;;  %v8632_v43 = vld [vmem:[#allocation6 + $0x648] ss:$16 sps:$4 sm:$0xff]  }
 0x1d0   :  { %2860 = vmatpush1.bf16.msra.mxu0 %v8557_v42  ;;  %v8629_v42 = vld [vmem:[#allocation6 + $0x640] ss:$16 sps:$4 sm:$0xff]  }
 0x1d1   :  { %3032 = vmatpush1.bf16.msra.mxu1 %v8560_v44  ;;  %2861 = vmatprep.subr.bf16.mxu0 %v8565_v45  ;;  %v8637_v44 = vld [vmem:[#allocation6 + $0x664] ss:$16 sps:$4 sm:$0xff]   ;;  %v8635_v45 = vld [vmem:[#allocation6 + $0x660] ss:$16 sps:$4 sm:$0xff]  }
 0x1d2   :  { %3033 = vmatprep.subr.bf16.mxu1 %v8568_v47  ;;  %v8643_v47 = vld [vmem:[#allocation6 + $0x684] ss:$16 sps:$4 sm:$0xff]  }
 0x1d4   :  { %2862 = vmatpush1.bf16.msra.mxu0 %v8563_v46  ;;  %v8640_v46 = vld [vmem:[#allocation6 + $0x66c] ss:$16 sps:$4 sm:$0xff]  }
 0x1d5   :  { %3034 = vmatpush1.bf16.msra.mxu1 %v8566_v49  ;;  %2863 = vmatprep.subr.bf16.mxu0 %v8571_v50  ;;  %v8641_v49 = vld [vmem:[#allocation6 + $0x680] ss:$16 sps:$4 sm:$0xff]   ;;  %v8644_v50 = vld [vmem:[#allocation6 + $0x688] ss:$16 sps:$4 sm:$0xff]  }
 0x1d6   :  { %3035 = vmatprep.subr.bf16.mxu1 %v8574_v53  ;;  %v8647_v53 = vld [vmem:[#allocation6 + $0x6a0] ss:$16 sps:$4 sm:$0xff]  }
 0x1d8   :  { %2864 = vmatpush1.bf16.msra.mxu0 %v8569_v52  ;;  %v8649_v52 = vld [vmem:[#allocation6 + $0x6a4] ss:$16 sps:$4 sm:$0xff]  }
 0x1d9   :  { %3036 = vmatpush1.bf16.msra.mxu1 %v8572_v54  ;;  %2865 = vmatprep.subr.bf16.mxu0 %v8577_v57  ;;  %v8652_v54 = vld [vmem:[#allocation6 + $0x6ac] ss:$16 sps:$4 sm:$0xff]   ;;  %v8650_v57 = vld [vmem:[#allocation6 + $0x6a8] ss:$16 sps:$4 sm:$0xff]  }
 0x1da   :  { %3037 = vmatprep.subr.bf16.mxu1 %v8580_v59  ;;  %v8653_v59 = vld [vmem:[#allocation6 + $0x6c0] ss:$16 sps:$4 sm:$0xff]  }
 0x1dc   :  { %2866 = vmatpush1.bf16.msra.mxu0 %v8575_v58  ;;  %v8655_v58 = vld [vmem:[#allocation6 + $0x6c4] ss:$16 sps:$4 sm:$0xff]  }
 0x1dd   :  { %3038 = vmatpush1.bf16.msra.mxu1 %v8578_v60  ;;  %2867 = vmatprep.subr.bf16.mxu0 %v8583_v61  ;;  %v8658_v60 = vld [vmem:[#allocation6 + $0x6cc] ss:$16 sps:$4 sm:$0xff]   ;;  %v8656_v61 = vld [vmem:[#allocation6 + $0x6c8] ss:$16 sps:$4 sm:$0xff]  }
 0x1de   :  { %3039 = vmatprep.subr.bf16.mxu1 %v8586_v24  ;;  %v8659_v24 = vld [vmem:[#allocation6 + $0x6e0] ss:$16 sps:$4 sm:$0xff]  }
 0x1e0   :  { %2868 = vmatpush1.bf16.msra.mxu0 %v8581_v63  ;;  %v8661_v63 = vld [vmem:[#allocation6 + $0x6e4] ss:$16 sps:$4 sm:$0xff]  }
 0x1e1   :  { %3040 = vmatpush1.bf16.msra.mxu1 %v8584_v2  ;;  %2869 = vmatprep.subr.bf16.mxu0 %v8589_v3  ;;  %v8664_v2 = vld [vmem:[#allocation6 + $0x6ec] ss:$16 sps:$4 sm:$0xff]   ;;  %v8662_v3 = vld [vmem:[#allocation6 + $0x6e8] ss:$16 sps:$4 sm:$0xff]  }
 0x1e2   :  { %3041 = vmatprep.subr.bf16.mxu1 %v8592_v5  ;;  %v8665_v5 = vld [vmem:[#allocation6 + $0x700] ss:$16 sps:$4 sm:$0xff]  }
 0x1e4   :  { %2870 = vmatpush1.bf16.msra.mxu0 %v8587_v25  ;;  %v8667_v25 = vld [vmem:[#allocation6 + $0x704] ss:$16 sps:$4 sm:$0xff]  }
 0x1e5   :  { %3042 = vmatpush1.bf16.msra.mxu1 %v8590_v22  ;;  %2871 = vmatprep.subr.bf16.mxu0 %v8595_v6  ;;  %v8670_v22 = vld [vmem:[#allocation6 + $0x70c] ss:$16 sps:$4 sm:$0xff]   ;;  %v8668_v6 = vld [vmem:[#allocation6 + $0x708] ss:$16 sps:$4 sm:$0xff]  }
 0x1e6   :  { %3043 = vmatprep.subr.bf16.mxu1 %v8598_v8  ;;  %v8671_v8 = vld [vmem:[#allocation6 + $0x720] ss:$16 sps:$4 sm:$0xff]  }
 0x1e8   :  { %2872 = vmatpush1.bf16.msra.mxu0 %v8593_v23  ;;  %v8673_v23 = vld [vmem:[#allocation6 + $0x724] ss:$16 sps:$4 sm:$0xff]  }
 0x1e9   :  { %3044 = vmatpush1.bf16.msra.mxu1 %v8596_v10  ;;  %2873 = vmatprep.subr.bf16.mxu0 %v8601_v12  ;;  %v8676_v10 = vld [vmem:[#allocation6 + $0x72c] ss:$16 sps:$4 sm:$0xff]   ;;  %v8674_v12 = vld [vmem:[#allocation6 + $0x728] ss:$16 sps:$4 sm:$0xff]  }
 0x1ea   :  { %3045 = vmatprep.subr.bf16.mxu1 %v8604_v15  ;;  %v8677_v15 = vld [vmem:[#allocation6 + $0x740] ss:$16 sps:$4 sm:$0xff]  }
 0x1ec   :  { %2874 = vmatpush1.bf16.msra.mxu0 %v8599_v14  ;;  %v8679_v14 = vld [vmem:[#allocation6 + $0x744] ss:$16 sps:$4 sm:$0xff]  }
 0x1ed   :  { %3046 = vmatpush1.bf16.msra.mxu1 %v8602_v13  ;;  %2875 = vmatprep.subr.bf16.mxu0 %v8607_v20  ;;  %v8682_v13 = vld [vmem:[#allocation6 + $0x74c] ss:$16 sps:$4 sm:$0xff]   ;;  %v8680_v20 = vld [vmem:[#allocation6 + $0x748] ss:$16 sps:$4 sm:$0xff]  }
 0x1ee   :  { %3047 = vmatprep.subr.bf16.mxu1 %v8610_v26  ;;  %v8683_v26 = vld [vmem:[#allocation6 + $0x760] ss:$16 sps:$4 sm:$0xff]  }
 0x1f0   :  { %2876 = vmatpush1.bf16.msra.mxu0 %v8605_v21  ;;  %v8685_v21 = vld [vmem:[#allocation6 + $0x764] ss:$16 sps:$4 sm:$0xff]  }
 0x1f1   :  { %3048 = vmatpush1.bf16.msra.mxu1 %v8608_v9  ;;  %2877 = vmatprep.subr.bf16.mxu0 %v8613_v27  ;;  %v8688_v9 = vld [vmem:[#allocation6 + $0x76c] ss:$16 sps:$4 sm:$0xff]   ;;  %v8686_v27 = vld [vmem:[#allocation6 + $0x768] ss:$16 sps:$4 sm:$0xff]  }
 0x1f2   :  { %3049 = vmatprep.subr.bf16.mxu1 %v8616_v41  ;;  %v8689_v41 = vld [vmem:[#allocation6 + $0x780] ss:$16 sps:$4 sm:$0xff]  }
 0x1f4   :  { %2878 = vmatpush1.bf16.msra.mxu0 %v8611_v28  ;;  %v8691_v28 = vld [vmem:[#allocation6 + $0x784] ss:$16 sps:$4 sm:$0xff]  }
 0x1f5   :  { %3050 = vmatpush1.bf16.msra.mxu1 %v8614_v29  ;;  %2890 = vmatprep.subr.bf16.mxu0 %v8619_v32  ;;  %v8694_v29 = vld [vmem:[#allocation6 + $0x78c] ss:$16 sps:$4 sm:$0xff]   ;;  %v8692_v32 = vld [vmem:[#allocation6 + $0x788] ss:$16 sps:$4 sm:$0xff]  }
 0x1f6   :  { %3062 = vmatprep.subr.bf16.mxu1 %v8622_v33  ;;  %v8697_v33 = vld [vmem:[#allocation6 + $0x7a4] ss:$16 sps:$4 sm:$0xff]  }
 0x1f7   :  { %2880 = vmatmul.mubr.bf16.vlgmr.msra.gmra.mrb[16].mxu0 %v9909_v35 }
 0x1f8   :  { %3052 = vmatmul.mubr.bf16.vlgmr.msra.gmra.mrb[24].mxu1 %v9909_v35  ;;  %2891 = vmatpush1.bf16.msra.mxu0 %v8617_v16  ;;  %v8638_v35 = vld [vmem:[#allocation6 + $0x668] ss:$16 sps:$4 sm:$0xff]   ;;  %v8695_v16 = vld [vmem:[#allocation6 + $0x7a0] ss:$16 sps:$4 sm:$0xff]  }
 0x1f9   :  { %2922 = vmatprep.mubr.bf16.mxu0 %v9947_v7  ;;  %3063 = vmatpush1.bf16.msra.mxu1 %v8620_v38  ;;  %v8700_v38 = vld [vmem:[#allocation6 + $0x7ac] ss:$16 sps:$4 sm:$0xff]  }
 0x1fa   :  { %3094 = vmatprep.mubr.bf16.mxu1 %v9947_v7  ;;  %2892 = vmatprep.subr.bf16.mxu0 %v8625_v0  ;;  %v8646_v7 = vld [vmem:[#allocation6 + $0x68c] ss:$16 sps:$4 sm:$0xff]   ;;  %v8698_v0 = vld [vmem:[#allocation6 + $0x7a8] ss:$16 sps:$4 sm:$0xff]  }
 0x1fb   :  { %3064 = vmatprep.subr.bf16.mxu1 %v8628_v39  ;;  %v8701_v39 = vld [vmem:[#allocation6 + $0x7c0] ss:$16 sps:$4 sm:$0xff]  }
 0x1fc   :  { %2893 = vmatpush1.bf16.msra.mxu0 %v8623_v34  ;;  %v8703_v34 = vld [vmem:[#allocation6 + $0x7c4] ss:$16 sps:$4 sm:$0xff]  }
 0x1fd   :  { %3065 = vmatpush1.bf16.msra.mxu1 %v8626_v36  ;;  %2894 = vmatprep.subr.bf16.mxu0 %v8631_v19  ;;  %v8706_v36 = vld [vmem:[#allocation6 + $0x7cc] ss:$16 sps:$4 sm:$0xff]   ;;  %v8704_v19 = vld [vmem:[#allocation6 + $0x7c8] ss:$16 sps:$4 sm:$0xff]  }
 0x1fe   :  { %3066 = vmatprep.subr.bf16.mxu1 %v8634_v37  ;;  %v8709_v37 = vld [vmem:[#allocation6 + $0x7e4] ss:$16 sps:$4 sm:$0xff]  }
 0x200   :  { %2895 = vmatpush1.bf16.msra.mxu0 %v8629_v42  ;;  %v8712_v42 = vld [vmem:[#allocation6 + $0x7ec] ss:$16 sps:$4 sm:$0xff]  }
 0x201   :  { %3067 = vmatpush1.bf16.msra.mxu1 %v8632_v43  ;;  %2896 = vmatprep.subr.bf16.mxu0 %v8637_v44  ;;  %v8707_v43 = vld [vmem:[#allocation6 + $0x7e0] ss:$16 sps:$4 sm:$0xff]   ;;  %v8710_v44 = vld [vmem:[#allocation6 + $0x7e8] ss:$16 sps:$4 sm:$0xff]  }
 0x202   :  { %3068 = vmatprep.subr.bf16.mxu1 %v8640_v46  ;;  %v8718_v46 = vld [vmem:[#allocation7 + $0xc] ss:$16 sps:$4 sm:$0xff]  }
 0x204   :  { %2897 = vmatpush1.bf16.msra.mxu0 %v8635_v45  ;;  %v8715_v45 = vld [vmem:[#allocation7 + $0x4] ss:$16 sps:$4 sm:$0xff]  }
 0x205   :  { %3069 = vmatpush1.bf16.msra.mxu1 %v8638_v35  ;;  %2898 = vmatprep.subr.bf16.mxu0 %v8643_v47  ;;  %v8713_v35 = vld [vmem:[#allocation7] ss:$16 sps:$4 sm:$0xff]   ;;  %v8716_v47 = vld [vmem:[#allocation7 + $0x8] ss:$16 sps:$4 sm:$0xff]  }
 0x206   :  { %3070 = vmatprep.subr.bf16.mxu1 %v8646_v7  ;;  %v8724_v7 = vld [vmem:[#allocation7 + $0x2c] ss:$16 sps:$4 sm:$0xff]  }
 0x208   :  { %2899 = vmatpush1.bf16.msra.mxu0 %v8641_v49  ;;  %v8721_v49 = vld [vmem:[#allocation7 + $0x24] ss:$16 sps:$4 sm:$0xff]  }
 0x209   :  { %3071 = vmatpush1.bf16.msra.mxu1 %v8644_v50  ;;  %2900 = vmatprep.subr.bf16.mxu0 %v8649_v52  ;;  %v8719_v50 = vld [vmem:[#allocation7 + $0x20] ss:$16 sps:$4 sm:$0xff]   ;;  %v8722_v52 = vld [vmem:[#allocation7 + $0x28] ss:$16 sps:$4 sm:$0xff]  }
 0x20a   :  { %3072 = vmatprep.subr.bf16.mxu1 %v8652_v54  ;;  %v8730_v54 = vld [vmem:[#allocation7 + $0x4c] ss:$16 sps:$4 sm:$0xff]  }
 0x20c   :  { %2901 = vmatpush1.bf16.msra.mxu0 %v8647_v53  ;;  %v8727_v53 = vld [vmem:[#allocation7 + $0x44] ss:$16 sps:$4 sm:$0xff]  }
 0x20d   :  { %3073 = vmatpush1.bf16.msra.mxu1 %v8650_v57  ;;  %2902 = vmatprep.subr.bf16.mxu0 %v8655_v58  ;;  %v8725_v57 = vld [vmem:[#allocation7 + $0x40] ss:$16 sps:$4 sm:$0xff]   ;;  %v8728_v58 = vld [vmem:[#allocation7 + $0x48] ss:$16 sps:$4 sm:$0xff]  }
 0x20e   :  { %3074 = vmatprep.subr.bf16.mxu1 %v8658_v60  ;;  %v8731_v60 = vld [vmem:[#allocation7 + $0x60] ss:$16 sps:$4 sm:$0xff]  }
 0x210   :  { %2903 = vmatpush1.bf16.msra.mxu0 %v8653_v59  ;;  %v8733_v59 = vld [vmem:[#allocation7 + $0x64] ss:$16 sps:$4 sm:$0xff]  }
 0x211   :  { %3075 = vmatpush1.bf16.msra.mxu1 %v8656_v61  ;;  %2904 = vmatprep.subr.bf16.mxu0 %v8661_v63  ;;  %v8734_v61 = vld [vmem:[#allocation7 + $0x68] ss:$16 sps:$4 sm:$0xff]   ;;  %v8739_v63 = vld [vmem:[#allocation7 + $0x84] ss:$16 sps:$4 sm:$0xff]  }
 0x212   :  { %3076 = vmatprep.subr.bf16.mxu1 %v8664_v2  ;;  %v8740_v2 = vld [vmem:[#allocation7 + $0x88] ss:$16 sps:$4 sm:$0xff]  }
 0x214   :  { %2905 = vmatpush1.bf16.msra.mxu0 %v8659_v24  ;;  %v8742_v24 = vld [vmem:[#allocation7 + $0x8c] ss:$16 sps:$4 sm:$0xff]  }
 0x215   :  { %3077 = vmatpush1.bf16.msra.mxu1 %v8662_v3  ;;  %2906 = vmatprep.subr.bf16.mxu0 %v8667_v25  ;;  %v8745_v3 = vld [vmem:[#allocation7 + $0xa4] ss:$16 sps:$4 sm:$0xff]   ;;  %v8748_v25 = vld [vmem:[#allocation7 + $0xac] ss:$16 sps:$4 sm:$0xff]  }
 0x216   :  { %3078 = vmatprep.subr.bf16.mxu1 %v8670_v22  ;;  %v8746_v22 = vld [vmem:[#allocation7 + $0xa8] ss:$16 sps:$4 sm:$0xff]  }
 0x218   :  { %2907 = vmatpush1.bf16.msra.mxu0 %v8665_v5  ;;  %v8743_v5 = vld [vmem:[#allocation7 + $0xa0] ss:$16 sps:$4 sm:$0xff]  }
 0x219   :  { %3079 = vmatpush1.bf16.msra.mxu1 %v8668_v6  ;;  %2908 = vmatprep.subr.bf16.mxu0 %v8673_v23  ;;  %v8751_v6 = vld [vmem:[#allocation7 + $0xc4] ss:$16 sps:$4 sm:$0xff]   ;;  %v8754_v23 = vld [vmem:[#allocation7 + $0xcc] ss:$16 sps:$4 sm:$0xff]  }
 0x21a   :  { %3080 = vmatprep.subr.bf16.mxu1 %v8676_v10  ;;  %v8752_v10 = vld [vmem:[#allocation7 + $0xc8] ss:$16 sps:$4 sm:$0xff]  }
 0x21c   :  { %2909 = vmatpush1.bf16.msra.mxu0 %v8671_v8  ;;  %v8749_v8 = vld [vmem:[#allocation7 + $0xc0] ss:$16 sps:$4 sm:$0xff]  }
 0x21d   :  { %3081 = vmatpush1.bf16.msra.mxu1 %v8674_v12  ;;  %2910 = vmatprep.subr.bf16.mxu0 %v8679_v14  ;;  %v8757_v12 = vld [vmem:[#allocation7 + $0xe4] ss:$16 sps:$4 sm:$0xff]   ;;  %v8760_v14 = vld [vmem:[#allocation7 + $0xec] ss:$16 sps:$4 sm:$0xff]  }
 0x21e   :  { %3082 = vmatprep.subr.bf16.mxu1 %v8682_v13  ;;  %v8758_v13 = vld [vmem:[#allocation7 + $0xe8] ss:$16 sps:$4 sm:$0xff]  }
 0x220   :  { %2911 = vmatpush1.bf16.msra.mxu0 %v8677_v15  ;;  %v8755_v15 = vld [vmem:[#allocation7 + $0xe0] ss:$16 sps:$4 sm:$0xff]  }
 0x221   :  { %3083 = vmatpush1.bf16.msra.mxu1 %v8680_v20  ;;  %2912 = vmatprep.subr.bf16.mxu0 %v8685_v21  ;;  %v8763_v20 = vld [vmem:[#allocation7 + $0x104] ss:$16 sps:$4 sm:$0xff]   ;;  %v8766_v21 = vld [vmem:[#allocation7 + $0x10c] ss:$16 sps:$4 sm:$0xff]  }
 0x222   :  { %3084 = vmatprep.subr.bf16.mxu1 %v8688_v9  ;;  %v8764_v9 = vld [vmem:[#allocation7 + $0x108] ss:$16 sps:$4 sm:$0xff]  }
 0x224   :  { %2913 = vmatpush1.bf16.msra.mxu0 %v8683_v26  ;;  %v8761_v26 = vld [vmem:[#allocation7 + $0x100] ss:$16 sps:$4 sm:$0xff]  }
 0x225   :  { %3085 = vmatpush1.bf16.msra.mxu1 %v8686_v27  ;;  %2914 = vmatprep.subr.bf16.mxu0 %v8691_v28  ;;  %v8769_v27 = vld [vmem:[#allocation7 + $0x124] ss:$16 sps:$4 sm:$0xff]   ;;  %v8772_v28 = vld [vmem:[#allocation7 + $0x12c] ss:$16 sps:$4 sm:$0xff]  }
 0x226   :  { %3086 = vmatprep.subr.bf16.mxu1 %v8694_v29  ;;  %v8770_v29 = vld [vmem:[#allocation7 + $0x128] ss:$16 sps:$4 sm:$0xff]  }
 0x228   :  { %2915 = vmatpush1.bf16.msra.mxu0 %v8689_v41  ;;  %v8767_v41 = vld [vmem:[#allocation7 + $0x120] ss:$16 sps:$4 sm:$0xff]  }
 0x229   :  { %3087 = vmatpush1.bf16.msra.mxu1 %v8692_v32  ;;  %2916 = vmatprep.subr.bf16.mxu0 %v8697_v33  ;;  %v8775_v32 = vld [vmem:[#allocation7 + $0x144] ss:$16 sps:$4 sm:$0xff]   ;;  %v8778_v33 = vld [vmem:[#allocation7 + $0x14c] ss:$16 sps:$4 sm:$0xff]  }
 0x22a   :  { %3088 = vmatprep.subr.bf16.mxu1 %v8700_v38  ;;  %v8776_v38 = vld [vmem:[#allocation7 + $0x148] ss:$16 sps:$4 sm:$0xff]  }
 0x22c   :  { %2917 = vmatpush1.bf16.msra.mxu0 %v8695_v16  ;;  %v8773_v16 = vld [vmem:[#allocation7 + $0x140] ss:$16 sps:$4 sm:$0xff]  }
 0x22d   :  { %3089 = vmatpush1.bf16.msra.mxu1 %v8698_v0  ;;  %2918 = vmatprep.subr.bf16.mxu0 %v8703_v34  ;;  %v8781_v0 = vld [vmem:[#allocation7 + $0x164] ss:$16 sps:$4 sm:$0xff]   ;;  %v8784_v34 = vld [vmem:[#allocation7 + $0x16c] ss:$16 sps:$4 sm:$0xff]  }
 0x22e   :  { %3090 = vmatprep.subr.bf16.mxu1 %v8706_v36  ;;  %v8779_v36 = vld [vmem:[#allocation7 + $0x160] ss:$16 sps:$4 sm:$0xff]  }
 0x230   :  { %2919 = vmatpush1.bf16.msra.mxu0 %v8701_v39  ;;  %v8782_v39 = vld [vmem:[#allocation7 + $0x168] ss:$16 sps:$4 sm:$0xff]  }
 0x231   :  { %3091 = vmatpush1.bf16.msra.mxu1 %v8704_v19  ;;  %2920 = vmatprep.subr.bf16.mxu0 %v8709_v37  ;;  %v8787_v19 = vld [vmem:[#allocation7 + $0x184] ss:$16 sps:$4 sm:$0xff]   ;;  %v8790_v37 = vld [vmem:[#allocation7 + $0x18c] ss:$16 sps:$4 sm:$0xff]  }
 0x232   :  { %3092 = vmatprep.subr.bf16.mxu1 %v8712_v42  ;;  %v8785_v42 = vld [vmem:[#allocation7 + $0x180] ss:$16 sps:$4 sm:$0xff]  }
 0x234   :  { %2921 = vmatpush1.bf16.msra.mxu0 %v8707_v43  ;;  %v8788_v43 = vld [vmem:[#allocation7 + $0x188] ss:$16 sps:$4 sm:$0xff]  }
 0x235   :  { %3093 = vmatpush1.bf16.msra.mxu1 %v8710_v44  ;;  %4675 = vmatprep.subr.bf16.mxu0 %v8715_v45  ;;  %v8793_v44 = vld [vmem:[#allocation7 + $0x1a4] ss:$16 sps:$4 sm:$0xff]   ;;  %v8796_v45 = vld [vmem:[#allocation7 + $0x1ac] ss:$16 sps:$4 sm:$0xff]  }
 0x236   :  { %4847 = vmatprep.subr.bf16.mxu1 %v8718_v46  ;;  %v8791_v46 = vld [vmem:[#allocation7 + $0x1a0] ss:$16 sps:$4 sm:$0xff]  }
 0x237   :  { %2923 = vmatmul.mubr.bf16.vlgmr.msra.gmra.mrb[16].mxu0 %v9945_v4 }
 0x238   :  { %3095 = vmatmul.mubr.bf16.vlgmr.msra.gmra.mrb[24].mxu1 %v9945_v4  ;;  %4676 = vmatpush1.bf16.msra.mxu0 %v8713_v35  ;;  %v8736_v4 = vld [vmem:[#allocation7 + $0x6c] ss:$16 sps:$4 sm:$0xff]   ;;  %v8794_v35 = vld [vmem:[#allocation7 + $0x1a8] ss:$16 sps:$4 sm:$0xff]  }
 0x239   :  { %4707 = vmatprep.mubr.bf16.mxu0 %v9915_v51  ;;  %4848 = vmatpush1.bf16.msra.mxu1 %v8716_v47  ;;  %v8799_v47 = vld [vmem:[#allocation7 + $0x1c4] ss:$16 sps:$4 sm:$0xff]  }
 0x23a   :  { %4879 = vmatprep.mubr.bf16.mxu1 %v9915_v51  ;;  %4677 = vmatprep.subr.bf16.mxu0 %v8721_v49  ;;  %v8737_v51 = vld [vmem:[#allocation7 + $0x80] ss:$16 sps:$4 sm:$0xff]   ;;  %v8802_v49 = vld [vmem:[#allocation7 + $0x1cc] ss:$16 sps:$4 sm:$0xff]  }
 0x23b   :  { %4849 = vmatprep.subr.bf16.mxu1 %v8724_v7  ;;  %v8797_v7 = vld [vmem:[#allocation7 + $0x1c0] ss:$16 sps:$4 sm:$0xff]  }
 0x23c   :  { %4678 = vmatpush1.bf16.msra.mxu0 %v8719_v50  ;;  %v8800_v50 = vld [vmem:[#allocation7 + $0x1c8] ss:$16 sps:$4 sm:$0xff]  }
 0x23d   :  { %4850 = vmatpush1.bf16.msra.mxu1 %v8722_v52  ;;  %4679 = vmatprep.subr.bf16.mxu0 %v8727_v53  ;;  %v8805_v52 = vld [vmem:[#allocation7 + $0x1e4] ss:$16 sps:$4 sm:$0xff]   ;;  %v8808_v53 = vld [vmem:[#allocation7 + $0x1ec] ss:$16 sps:$4 sm:$0xff]  }
 0x23e   :  { %4851 = vmatprep.subr.bf16.mxu1 %v8730_v54  ;;  %v8803_v54 = vld [vmem:[#allocation7 + $0x1e0] ss:$16 sps:$4 sm:$0xff]  }
 0x240   :  { %4680 = vmatpush1.bf16.msra.mxu0 %v8725_v57  ;;  %v8806_v57 = vld [vmem:[#allocation7 + $0x1e8] ss:$16 sps:$4 sm:$0xff]  }
 0x241   :  { %4852 = vmatpush1.bf16.msra.mxu1 %v8728_v58  ;;  %4681 = vmatprep.subr.bf16.mxu0 %v8733_v59  ;;  %v8811_v58 = vld [vmem:[#allocation7 + $0x204] ss:$16 sps:$4 sm:$0xff]   ;;  %v8814_v59 = vld [vmem:[#allocation7 + $0x20c] ss:$16 sps:$4 sm:$0xff]  }
 0x242   :  { %4853 = vmatprep.subr.bf16.mxu1 %v8736_v4  ;;  %v8809_v4 = vld [vmem:[#allocation7 + $0x200] ss:$16 sps:$4 sm:$0xff]  }
 0x244   :  { %4682 = vmatpush1.bf16.msra.mxu0 %v8731_v60  ;;  %v8812_v60 = vld [vmem:[#allocation7 + $0x208] ss:$16 sps:$4 sm:$0xff]  }
 0x245   :  { %4854 = vmatpush1.bf16.msra.mxu1 %v8734_v61  ;;  %4683 = vmatprep.subr.bf16.mxu0 %v8739_v63  ;;  %v8817_v61 = vld [vmem:[#allocation7 + $0x224] ss:$16 sps:$4 sm:$0xff]   ;;  %v8820_v63 = vld [vmem:[#allocation7 + $0x22c] ss:$16 sps:$4 sm:$0xff]  }
 0x246   :  { %4855 = vmatprep.subr.bf16.mxu1 %v8742_v24  ;;  %v8815_v24 = vld [vmem:[#allocation7 + $0x220] ss:$16 sps:$4 sm:$0xff]  }
 0x248   :  { %4684 = vmatpush1.bf16.msra.mxu0 %v8737_v51  ;;  %v8818_v51 = vld [vmem:[#allocation7 + $0x228] ss:$16 sps:$4 sm:$0xff]  }
 0x249   :  { %4856 = vmatpush1.bf16.msra.mxu1 %v8740_v2  ;;  %4685 = vmatprep.subr.bf16.mxu0 %v8745_v3  ;;  %v8823_v2 = vld [vmem:[#allocation7 + $0x244] ss:$16 sps:$4 sm:$0xff]   ;;  %v8826_v3 = vld [vmem:[#allocation7 + $0x24c] ss:$16 sps:$4 sm:$0xff]  }
 0x24a   :  { %4857 = vmatprep.subr.bf16.mxu1 %v8748_v25  ;;  %v8821_v25 = vld [vmem:[#allocation7 + $0x240] ss:$16 sps:$4 sm:$0xff]  }
 0x24c   :  { %4686 = vmatpush1.bf16.msra.mxu0 %v8743_v5  ;;  %v8824_v5 = vld [vmem:[#allocation7 + $0x248] ss:$16 sps:$4 sm:$0xff]  }
 0x24d   :  { %4858 = vmatpush1.bf16.msra.mxu1 %v8746_v22  ;;  %4687 = vmatprep.subr.bf16.mxu0 %v8751_v6  ;;  %v8829_v22 = vld [vmem:[#allocation7 + $0x264] ss:$16 sps:$4 sm:$0xff]   ;;  %v8827_v6 = vld [vmem:[#allocation7 + $0x260] ss:$16 sps:$4 sm:$0xff]  }
 0x24e   :  { %4859 = vmatprep.subr.bf16.mxu1 %v8754_v23  ;;  %v8830_v23 = vld [vmem:[#allocation7 + $0x268] ss:$16 sps:$4 sm:$0xff]  }
 0x250   :  { %4688 = vmatpush1.bf16.msra.mxu0 %v8749_v8  ;;  %v8835_v8 = vld [vmem:[#allocation7 + $0x284] ss:$16 sps:$4 sm:$0xff]  }
 0x251   :  { %4860 = vmatpush1.bf16.msra.mxu1 %v8752_v10  ;;  %4689 = vmatprep.subr.bf16.mxu0 %v8757_v12  ;;  %v8838_v10 = vld [vmem:[#allocation7 + $0x28c] ss:$16 sps:$4 sm:$0xff]   ;;  %v8836_v12 = vld [vmem:[#allocation7 + $0x288] ss:$16 sps:$4 sm:$0xff]  }
 0x252   :  { %4861 = vmatprep.subr.bf16.mxu1 %v8760_v14  ;;  %v8841_v14 = vld [vmem:[#allocation7 + $0x2a4] ss:$16 sps:$4 sm:$0xff]  }
 0x254   :  { %4690 = vmatpush1.bf16.msra.mxu0 %v8755_v15  ;;  %v8844_v15 = vld [vmem:[#allocation7 + $0x2ac] ss:$16 sps:$4 sm:$0xff]  }
 0x255   :  { %4862 = vmatpush1.bf16.msra.mxu1 %v8758_v13  ;;  %4691 = vmatprep.subr.bf16.mxu0 %v8763_v20  ;;  %v8839_v13 = vld [vmem:[#allocation7 + $0x2a0] ss:$16 sps:$4 sm:$0xff]   ;;  %v8842_v20 = vld [vmem:[#allocation7 + $0x2a8] ss:$16 sps:$4 sm:$0xff]  }
 0x256   :  { %4863 = vmatprep.subr.bf16.mxu1 %v8766_v21  ;;  %v8847_v21 = vld [vmem:[#allocation7 + $0x2c4] ss:$16 sps:$4 sm:$0xff]  }
 0x258   :  { %4692 = vmatpush1.bf16.msra.mxu0 %v8761_v26  ;;  %v8850_v26 = vld [vmem:[#allocation7 + $0x2cc] ss:$16 sps:$4 sm:$0xff]  }
 0x259   :  { %4864 = vmatpush1.bf16.msra.mxu1 %v8764_v9  ;;  %4693 = vmatprep.subr.bf16.mxu0 %v8769_v27  ;;  %v8845_v9 = vld [vmem:[#allocation7 + $0x2c0] ss:$16 sps:$4 sm:$0xff]   ;;  %v8848_v27 = vld [vmem:[#allocation7 + $0x2c8] ss:$16 sps:$4 sm:$0xff]  }
 0x25a   :  { %4865 = vmatprep.subr.bf16.mxu1 %v8772_v28  ;;  %v8853_v28 = vld [vmem:[#allocation7 + $0x2e4] ss:$16 sps:$4 sm:$0xff]  }
 0x25c   :  { %4694 = vmatpush1.bf16.msra.mxu0 %v8767_v41  ;;  %v8856_v41 = vld [vmem:[#allocation7 + $0x2ec] ss:$16 sps:$4 sm:$0xff]  }
 0x25d   :  { %4866 = vmatpush1.bf16.msra.mxu1 %v8770_v29  ;;  %4695 = vmatprep.subr.bf16.mxu0 %v8775_v32  ;;  %v8851_v29 = vld [vmem:[#allocation7 + $0x2e0] ss:$16 sps:$4 sm:$0xff]   ;;  %v8854_v32 = vld [vmem:[#allocation7 + $0x2e8] ss:$16 sps:$4 sm:$0xff]  }
 0x25e   :  { %4867 = vmatprep.subr.bf16.mxu1 %v8778_v33  ;;  %v8859_v33 = vld [vmem:[#allocation7 + $0x304] ss:$16 sps:$4 sm:$0xff]  }
 0x260   :  { %4696 = vmatpush1.bf16.msra.mxu0 %v8773_v16  ;;  %v8862_v16 = vld [vmem:[#allocation7 + $0x30c] ss:$16 sps:$4 sm:$0xff]  }
 0x261   :  { %4868 = vmatpush1.bf16.msra.mxu1 %v8776_v38  ;;  %4697 = vmatprep.subr.bf16.mxu0 %v8781_v0  ;;  %v8857_v38 = vld [vmem:[#allocation7 + $0x300] ss:$16 sps:$4 sm:$0xff]   ;;  %v8860_v0 = vld [vmem:[#allocation7 + $0x308] ss:$16 sps:$4 sm:$0xff]  }
 0x262   :  { %4869 = vmatprep.subr.bf16.mxu1 %v8784_v34  ;;  %v8865_v34 = vld [vmem:[#allocation7 + $0x324] ss:$16 sps:$4 sm:$0xff]  }
 0x264   :  { %4698 = vmatpush1.bf16.msra.mxu0 %v8779_v36  ;;  %v8868_v36 = vld [vmem:[#allocation7 + $0x32c] ss:$16 sps:$4 sm:$0xff]  }
 0x265   :  { %4870 = vmatpush1.bf16.msra.mxu1 %v8782_v39  ;;  %4699 = vmatprep.subr.bf16.mxu0 %v8787_v19  ;;  %v8863_v39 = vld [vmem:[#allocation7 + $0x320] ss:$16 sps:$4 sm:$0xff]   ;;  %v8866_v19 = vld [vmem:[#allocation7 + $0x328] ss:$16 sps:$4 sm:$0xff]  }
 0x266   :  { %4871 = vmatprep.subr.bf16.mxu1 %v8790_v37  ;;  %v8871_v37 = vld [vmem:[#allocation7 + $0x344] ss:$16 sps:$4 sm:$0xff]  }
 0x268   :  { %4700 = vmatpush1.bf16.msra.mxu0 %v8785_v42  ;;  %v8874_v42 = vld [vmem:[#allocation7 + $0x34c] ss:$16 sps:$4 sm:$0xff]  }
 0x269   :  { %4872 = vmatpush1.bf16.msra.mxu1 %v8788_v43  ;;  %4701 = vmatprep.subr.bf16.mxu0 %v8793_v44  ;;  %v8869_v43 = vld [vmem:[#allocation7 + $0x340] ss:$16 sps:$4 sm:$0xff]   ;;  %v8872_v44 = vld [vmem:[#allocation7 + $0x348] ss:$16 sps:$4 sm:$0xff]  }
 0x26a   :  { %4873 = vmatprep.subr.bf16.mxu1 %v8796_v45  ;;  %v8877_v45 = vld [vmem:[#allocation7 + $0x364] ss:$16 sps:$4 sm:$0xff]  }
 0x26c   :  { %4702 = vmatpush1.bf16.msra.mxu0 %v8791_v46  ;;  %v8880_v46 = vld [vmem:[#allocation7 + $0x36c] ss:$16 sps:$4 sm:$0xff]  }
 0x26d   :  { %4874 = vmatpush1.bf16.msra.mxu1 %v8794_v35  ;;  %4703 = vmatprep.subr.bf16.mxu0 %v8799_v47  ;;  %v8875_v35 = vld [vmem:[#allocation7 + $0x360] ss:$16 sps:$4 sm:$0xff]   ;;  %v8878_v47 = vld [vmem:[#allocation7 + $0x368] ss:$16 sps:$4 sm:$0xff]  }
 0x26e   :  { %4875 = vmatprep.subr.bf16.mxu1 %v8802_v49  ;;  %v8883_v49 = vld [vmem:[#allocation7 + $0x384] ss:$16 sps:$4 sm:$0xff]  }
 0x270   :  { %4704 = vmatpush1.bf16.msra.mxu0 %v8797_v7  ;;  %v8886_v7 = vld [vmem:[#allocation7 + $0x38c] ss:$16 sps:$4 sm:$0xff]  }
 0x271   :  { %4876 = vmatpush1.bf16.msra.mxu1 %v8800_v50  ;;  %4705 = vmatprep.subr.bf16.mxu0 %v8805_v52  ;;  %v8881_v50 = vld [vmem:[#allocation7 + $0x380] ss:$16 sps:$4 sm:$0xff]   ;;  %v8884_v52 = vld [vmem:[#allocation7 + $0x388] ss:$16 sps:$4 sm:$0xff]  }
 0x272   :  { %4877 = vmatprep.subr.bf16.mxu1 %v8808_v53  ;;  %v8889_v53 = vld [vmem:[#allocation7 + $0x3a4] ss:$16 sps:$4 sm:$0xff]  }
 0x274   :  { %4706 = vmatpush1.bf16.msra.mxu0 %v8803_v54  ;;  %v8892_v54 = vld [vmem:[#allocation7 + $0x3ac] ss:$16 sps:$4 sm:$0xff]  }
 0x275   :  { %4878 = vmatpush1.bf16.msra.mxu1 %v8806_v57  ;;  %4718 = vmatprep.subr.bf16.mxu0 %v8811_v58  ;;  %v8887_v57 = vld [vmem:[#allocation7 + $0x3a0] ss:$16 sps:$4 sm:$0xff]   ;;  %v8890_v58 = vld [vmem:[#allocation7 + $0x3a8] ss:$16 sps:$4 sm:$0xff]  }
 0x276   :  { %4890 = vmatprep.subr.bf16.mxu1 %v8814_v59  ;;  %v8895_v59 = vld [vmem:[#allocation7 + $0x3c4] ss:$16 sps:$4 sm:$0xff]  }
 0x277   :  { %4708 = vmatmul.mubr.bf16.vlgmr.msra.gmra.mrb[20].mxu0 %v9913_v48 }
 0x278   :  { %4880 = vmatmul.mubr.bf16.vlgmr.msra.gmra.mrb[28].mxu1 %v9913_v48  ;;  %4719 = vmatpush1.bf16.msra.mxu0 %v8809_v4  ;;  %v8832_v48 = vld [vmem:[#allocation7 + $0x26c] ss:$16 sps:$4 sm:$0xff]  }
 0x279   :  { %4750 = vmatprep.mubr.bf16.mxu0 %v9951_v40  ;;  %4891 = vmatpush1.bf16.msra.mxu1 %v8812_v60  ;;  %v8898_v4 = vld [vmem:[#allocation7 + $0x3cc] ss:$16 sps:$4 sm:$0xff]   ;;  %v8893_v60 = vld [vmem:[#allocation7 + $0x3c0] ss:$16 sps:$4 sm:$0xff]  }
 0x27a   :  { %4922 = vmatprep.mubr.bf16.mxu1 %v9951_v40  ;;  %4720 = vmatprep.subr.bf16.mxu0 %v8817_v61  ;;  %v8833_v40 = vld [vmem:[#allocation7 + $0x280] ss:$16 sps:$4 sm:$0xff]   ;;  %v8896_v61 = vld [vmem:[#allocation7 + $0x3c8] ss:$16 sps:$4 sm:$0xff]  }
 0x27b   :  { %4892 = vmatprep.subr.bf16.mxu1 %v8820_v63  ;;  %v8901_v63 = vld [vmem:[#allocation7 + $0x3e4] ss:$16 sps:$4 sm:$0xff]  }
 0x27c   :  { %4721 = vmatpush1.bf16.msra.mxu0 %v8815_v24  ;;  %v8904_v24 = vld [vmem:[#allocation7 + $0x3ec] ss:$16 sps:$4 sm:$0xff]  }
 0x27d   :  { %4893 = vmatpush1.bf16.msra.mxu1 %v8818_v51  ;;  %4722 = vmatprep.subr.bf16.mxu0 %v8823_v2  ;;  %v8899_v51 = vld [vmem:[#allocation7 + $0x3e0] ss:$16 sps:$4 sm:$0xff]   ;;  %v8902_v2 = vld [vmem:[#allocation7 + $0x3e8] ss:$16 sps:$4 sm:$0xff]  }
 0x27e   :  { %4894 = vmatprep.subr.bf16.mxu1 %v8826_v3  ;;  %v8907_v3 = vld [vmem:[#allocation7 + $0x404] ss:$16 sps:$4 sm:$0xff]  }
 0x280   :  { %4723 = vmatpush1.bf16.msra.mxu0 %v8821_v25  ;;  %v8910_v25 = vld [vmem:[#allocation7 + $0x40c] ss:$16 sps:$4 sm:$0xff]  }
 0x281   :  { %4895 = vmatpush1.bf16.msra.mxu1 %v8824_v5  ;;  %4724 = vmatprep.subr.bf16.mxu0 %v8829_v22  ;;  %v8905_v5 = vld [vmem:[#allocation7 + $0x400] ss:$16 sps:$4 sm:$0xff]   ;;  %v8908_v22 = vld [vmem:[#allocation7 + $0x408] ss:$16 sps:$4 sm:$0xff]  }
 0x282   :  { %4896 = vmatprep.subr.bf16.mxu1 %v8832_v48  ;;  %v8913_v48 = vld [vmem:[#allocation7 + $0x424] ss:$16 sps:$4 sm:$0xff]  }
 0x284   :  { %4725 = vmatpush1.bf16.msra.mxu0 %v8827_v6  ;;  %v8916_v6 = vld [vmem:[#allocation7 + $0x42c] ss:$16 sps:$4 sm:$0xff]  }
 0x285   :  { %4897 = vmatpush1.bf16.msra.mxu1 %v8830_v23  ;;  %4726 = vmatprep.subr.bf16.mxu0 %v8835_v8  ;;  %v8911_v23 = vld [vmem:[#allocation7 + $0x420] ss:$16 sps:$4 sm:$0xff]   ;;  %v8914_v8 = vld [vmem:[#allocation7 + $0x428] ss:$16 sps:$4 sm:$0xff]  }
 0x286   :  { %4898 = vmatprep.subr.bf16.mxu1 %v8838_v10  ;;  %v8919_v10 = vld [vmem:[#allocation7 + $0x444] ss:$16 sps:$4 sm:$0xff]  }
 0x288   :  { %4727 = vmatpush1.bf16.msra.mxu0 %v8833_v40  ;;  %v8922_v40 = vld [vmem:[#allocation7 + $0x44c] ss:$16 sps:$4 sm:$0xff]  }
 0x289   :  { %4899 = vmatpush1.bf16.msra.mxu1 %v8836_v12  ;;  %4728 = vmatprep.subr.bf16.mxu0 %v8841_v14  ;;  %v8917_v12 = vld [vmem:[#allocation7 + $0x440] ss:$16 sps:$4 sm:$0xff]   ;;  %v8920_v14 = vld [vmem:[#allocation7 + $0x448] ss:$16 sps:$4 sm:$0xff]  }
 0x28a   :  { %4900 = vmatprep.subr.bf16.mxu1 %v8844_v15  ;;  %v8925_v15 = vld [vmem:[#allocation7 + $0x464] ss:$16 sps:$4 sm:$0xff]  }
 0x28c   :  { %4729 = vmatpush1.bf16.msra.mxu0 %v8839_v13  ;;  %v8923_v13 = vld [vmem:[#allocation7 + $0x460] ss:$16 sps:$4 sm:$0xff]  }
 0x28d   :  { %4901 = vmatpush1.bf16.msra.mxu1 %v8842_v20  ;;  %4730 = vmatprep.subr.bf16.mxu0 %v8847_v21  ;;  %v8926_v20 = vld [vmem:[#allocation7 + $0x468] ss:$16 sps:$4 sm:$0xff]   ;;  %v8931_v21 = vld [vmem:[#allocation7 + $0x484] ss:$16 sps:$4 sm:$0xff]  }
 0x28e   :  { %4902 = vmatprep.subr.bf16.mxu1 %v8850_v26  ;;  %v8934_v26 = vld [vmem:[#allocation7 + $0x48c] ss:$16 sps:$4 sm:$0xff]  }
 0x290   :  { %4731 = vmatpush1.bf16.msra.mxu0 %v8845_v9  ;;  %v8932_v9 = vld [vmem:[#allocation7 + $0x488] ss:$16 sps:$4 sm:$0xff]  }
 0x291   :  { %4903 = vmatpush1.bf16.msra.mxu1 %v8848_v27  ;;  %4732 = vmatprep.subr.bf16.mxu0 %v8853_v28  ;;  %v8937_v27 = vld [vmem:[#allocation7 + $0x4a4] ss:$16 sps:$4 sm:$0xff]   ;;  %v8940_v28 = vld [vmem:[#allocation7 + $0x4ac] ss:$16 sps:$4 sm:$0xff]  }
 0x292   :  { %4904 = vmatprep.subr.bf16.mxu1 %v8856_v41  ;;  %v8935_v41 = vld [vmem:[#allocation7 + $0x4a0] ss:$16 sps:$4 sm:$0xff]  }
 0x294   :  { %4733 = vmatpush1.bf16.msra.mxu0 %v8851_v29  ;;  %v8938_v29 = vld [vmem:[#allocation7 + $0x4a8] ss:$16 sps:$4 sm:$0xff]  }
 0x295   :  { %4905 = vmatpush1.bf16.msra.mxu1 %v8854_v32  ;;  %4734 = vmatprep.subr.bf16.mxu0 %v8859_v33  ;;  %v8943_v32 = vld [vmem:[#allocation7 + $0x4c4] ss:$16 sps:$4 sm:$0xff]   ;;  %v8946_v33 = vld [vmem:[#allocation7 + $0x4cc] ss:$16 sps:$4 sm:$0xff]  }
 0x296   :  { %4906 = vmatprep.subr.bf16.mxu1 %v8862_v16  ;;  %v8941_v16 = vld [vmem:[#allocation7 + $0x4c0] ss:$16 sps:$4 sm:$0xff]  }
 0x298   :  { %4735 = vmatpush1.bf16.msra.mxu0 %v8857_v38  ;;  %v8944_v38 = vld [vmem:[#allocation7 + $0x4c8] ss:$16 sps:$4 sm:$0xff]  }
 0x299   :  { %4907 = vmatpush1.bf16.msra.mxu1 %v8860_v0  ;;  %4736 = vmatprep.subr.bf16.mxu0 %v8865_v34  ;;  %v8949_v0 = vld [vmem:[#allocation7 + $0x4e4] ss:$16 sps:$4 sm:$0xff]   ;;  %v8952_v34 = vld [vmem:[#allocation7 + $0x4ec] ss:$16 sps:$4 sm:$0xff]  }
 0x29a   :  { %4908 = vmatprep.subr.bf16.mxu1 %v8868_v36  ;;  %v8947_v36 = vld [vmem:[#allocation7 + $0x4e0] ss:$16 sps:$4 sm:$0xff]  }
 0x29c   :  { %4737 = vmatpush1.bf16.msra.mxu0 %v8863_v39  ;;  %v8950_v39 = vld [vmem:[#allocation7 + $0x4e8] ss:$16 sps:$4 sm:$0xff]  }
 0x29d   :  { %4909 = vmatpush1.bf16.msra.mxu1 %v8866_v19  ;;  %4738 = vmatprep.subr.bf16.mxu0 %v8871_v37  ;;  %v8955_v19 = vld [vmem:[#allocation7 + $0x504] ss:$16 sps:$4 sm:$0xff]   ;;  %v8958_v37 = vld [vmem:[#allocation7 + $0x50c] ss:$16 sps:$4 sm:$0xff]  }
 0x29e   :  { %4910 = vmatprep.subr.bf16.mxu1 %v8874_v42  ;;  %v8953_v42 = vld [vmem:[#allocation7 + $0x500] ss:$16 sps:$4 sm:$0xff]  }
 0x2a0   :  { %4739 = vmatpush1.bf16.msra.mxu0 %v8869_v43  ;;  %v8956_v43 = vld [vmem:[#allocation7 + $0x508] ss:$16 sps:$4 sm:$0xff]  }
 0x2a1   :  { %4911 = vmatpush1.bf16.msra.mxu1 %v8872_v44  ;;  %4740 = vmatprep.subr.bf16.mxu0 %v8877_v45  ;;  %v8961_v44 = vld [vmem:[#allocation7 + $0x524] ss:$16 sps:$4 sm:$0xff]   ;;  %v8964_v45 = vld [vmem:[#allocation7 + $0x52c] ss:$16 sps:$4 sm:$0xff]  }
 0x2a2   :  { %4912 = vmatprep.subr.bf16.mxu1 %v8880_v46  ;;  %v8959_v46 = vld [vmem:[#allocation7 + $0x520] ss:$16 sps:$4 sm:$0xff]  }
 0x2a4   :  { %4741 = vmatpush1.bf16.msra.mxu0 %v8875_v35  ;;  %v8962_v35 = vld [vmem:[#allocation7 + $0x528] ss:$16 sps:$4 sm:$0xff]  }
 0x2a5   :  { %4913 = vmatpush1.bf16.msra.mxu1 %v8878_v47  ;;  %4742 = vmatprep.subr.bf16.mxu0 %v8883_v49  ;;  %v8967_v47 = vld [vmem:[#allocation7 + $0x544] ss:$16 sps:$4 sm:$0xff]   ;;  %v8970_v49 = vld [vmem:[#allocation7 + $0x54c] ss:$16 sps:$4 sm:$0xff]  }
 0x2a6   :  { %4914 = vmatprep.subr.bf16.mxu1 %v8886_v7  ;;  %v8965_v7 = vld [vmem:[#allocation7 + $0x540] ss:$16 sps:$4 sm:$0xff]  }
 0x2a8   :  { %4743 = vmatpush1.bf16.msra.mxu0 %v8881_v50  ;;  %v8968_v50 = vld [vmem:[#allocation7 + $0x548] ss:$16 sps:$4 sm:$0xff]  }
 0x2a9   :  { %4915 = vmatpush1.bf16.msra.mxu1 %v8884_v52  ;;  %4744 = vmatprep.subr.bf16.mxu0 %v8889_v53  ;;  %v8973_v52 = vld [vmem:[#allocation7 + $0x564] ss:$16 sps:$4 sm:$0xff]   ;;  %v8976_v53 = vld [vmem:[#allocation7 + $0x56c] ss:$16 sps:$4 sm:$0xff]  }
 0x2aa   :  { %4916 = vmatprep.subr.bf16.mxu1 %v8892_v54  ;;  %v8971_v54 = vld [vmem:[#allocation7 + $0x560] ss:$16 sps:$4 sm:$0xff]  }
 0x2ac   :  { %4745 = vmatpush1.bf16.msra.mxu0 %v8887_v57  ;;  %v8974_v57 = vld [vmem:[#allocation7 + $0x568] ss:$16 sps:$4 sm:$0xff]  }
 0x2ad   :  { %4917 = vmatpush1.bf16.msra.mxu1 %v8890_v58  ;;  %4746 = vmatprep.subr.bf16.mxu0 %v8895_v59  ;;  %v8979_v58 = vld [vmem:[#allocation7 + $0x584] ss:$16 sps:$4 sm:$0xff]   ;;  %v8982_v59 = vld [vmem:[#allocation7 + $0x58c] ss:$16 sps:$4 sm:$0xff]  }
 0x2ae   :  { %4918 = vmatprep.subr.bf16.mxu1 %v8898_v4  ;;  %v8977_v4 = vld [vmem:[#allocation7 + $0x580] ss:$16 sps:$4 sm:$0xff]  }
 0x2b0   :  { %4747 = vmatpush1.bf16.msra.mxu0 %v8893_v60  ;;  %v8980_v60 = vld [vmem:[#allocation7 + $0x588] ss:$16 sps:$4 sm:$0xff]  }
 0x2b1   :  { %4919 = vmatpush1.bf16.msra.mxu1 %v8896_v61  ;;  %4748 = vmatprep.subr.bf16.mxu0 %v8901_v63  ;;  %v8985_v61 = vld [vmem:[#allocation7 + $0x5a4] ss:$16 sps:$4 sm:$0xff]   ;;  %v8988_v63 = vld [vmem:[#allocation7 + $0x5ac] ss:$16 sps:$4 sm:$0xff]  }
 0x2b2   :  { %4920 = vmatprep.subr.bf16.mxu1 %v8904_v24  ;;  %v8983_v24 = vld [vmem:[#allocation7 + $0x5a0] ss:$16 sps:$4 sm:$0xff]  }
 0x2b4   :  { %4749 = vmatpush1.bf16.msra.mxu0 %v8899_v51  ;;  %v8986_v51 = vld [vmem:[#allocation7 + $0x5a8] ss:$16 sps:$4 sm:$0xff]  }
 0x2b5   :  { %4921 = vmatpush1.bf16.msra.mxu1 %v8902_v2  ;;  %4761 = vmatprep.subr.bf16.mxu0 %v8907_v3  ;;  %v8991_v2 = vld [vmem:[#allocation7 + $0x5c4] ss:$16 sps:$4 sm:$0xff]   ;;  %v8994_v3 = vld [vmem:[#allocation7 + $0x5cc] ss:$16 sps:$4 sm:$0xff]  }
 0x2b6   :  { %4933 = vmatprep.subr.bf16.mxu1 %v8910_v25  ;;  %v8989_v25 = vld [vmem:[#allocation7 + $0x5c0] ss:$16 sps:$4 sm:$0xff]  }
 0x2b7   :  { %4751 = vmatmul.mubr.bf16.vlgmr.msra.gmra.mrb[20].mxu0 %v9949_v18 }
 0x2b8   :  { %4923 = vmatmul.mubr.bf16.vlgmr.msra.gmra.mrb[28].mxu1 %v9949_v18  ;;  %4762 = vmatpush1.bf16.msra.mxu0 %v8905_v5  ;;  %v8928_v18 = vld [vmem:[#allocation7 + $0x46c] ss:$16 sps:$4 sm:$0xff]   ;;  %v8992_v5 = vld [vmem:[#allocation7 + $0x5c8] ss:$16 sps:$4 sm:$0xff]  }
 0x2b9   :  { %4793 = vmatprep.mubr.bf16.mxu0 %v9933_v17  ;;  %4934 = vmatpush1.bf16.msra.mxu1 %v8908_v22  ;;  %v8997_v22 = vld [vmem:[#allocation7 + $0x5e4] ss:$16 sps:$4 sm:$0xff]  }
 0x2ba   :  { %4965 = vmatprep.mubr.bf16.mxu1 %v9933_v17  ;;  %4763 = vmatprep.subr.bf16.mxu0 %v8913_v48  ;;  %v8929_v17 = vld [vmem:[#allocation7 + $0x480] ss:$16 sps:$4 sm:$0xff]   ;;  %v9000_v48 = vld [vmem:[#allocation7 + $0x5ec] ss:$16 sps:$4 sm:$0xff]  }
 0x2bb   :  { %4935 = vmatprep.subr.bf16.mxu1 %v8916_v6  ;;  %v8995_v6 = vld [vmem:[#allocation7 + $0x5e0] ss:$16 sps:$4 sm:$0xff]  }
 0x2bc   :  { %4764 = vmatpush1.bf16.msra.mxu0 %v8911_v23  ;;  %v8998_v23 = vld [vmem:[#allocation7 + $0x5e8] ss:$16 sps:$4 sm:$0xff]  }
 0x2bd   :  { %4936 = vmatpush1.bf16.msra.mxu1 %v8914_v8  ;;  %4765 = vmatprep.subr.bf16.mxu0 %v8919_v10  ;;  %v9003_v8 = vld [vmem:[#allocation7 + $0x604] ss:$16 sps:$4 sm:$0xff]   ;;  %v9006_v10 = vld [vmem:[#allocation7 + $0x60c] ss:$16 sps:$4 sm:$0xff]  }
 0x2be   :  { %4937 = vmatprep.subr.bf16.mxu1 %v8922_v40  ;;  %v9001_v40 = vld [vmem:[#allocation7 + $0x600] ss:$16 sps:$4 sm:$0xff]  }
 0x2c0   :  { %4766 = vmatpush1.bf16.msra.mxu0 %v8917_v12  ;;  %v9004_v12 = vld [vmem:[#allocation7 + $0x608] ss:$16 sps:$4 sm:$0xff]  }
 0x2c1   :  { %4938 = vmatpush1.bf16.msra.mxu1 %v8920_v14  ;;  %4767 = vmatprep.subr.bf16.mxu0 %v8925_v15  ;;  %v9009_v14 = vld [vmem:[#allocation7 + $0x624] ss:$16 sps:$4 sm:$0xff]   ;;  %v9012_v15 = vld [vmem:[#allocation7 + $0x62c] ss:$16 sps:$4 sm:$0xff]  }
 0x2c2   :  { %4939 = vmatprep.subr.bf16.mxu1 %v8928_v18  ;;  %v9007_v18 = vld [vmem:[#allocation7 + $0x620] ss:$16 sps:$4 sm:$0xff]  }
 0x2c4   :  { %4768 = vmatpush1.bf16.msra.mxu0 %v8923_v13  ;;  %v9010_v13 = vld [vmem:[#allocation7 + $0x628] ss:$16 sps:$4 sm:$0xff]  }
 0x2c5   :  { %4940 = vmatpush1.bf16.msra.mxu1 %v8926_v20  ;;  %4769 = vmatprep.subr.bf16.mxu0 %v8931_v21  ;;  %v9015_v20 = vld [vmem:[#allocation7 + $0x644] ss:$16 sps:$4 sm:$0xff]   ;;  %v9018_v21 = vld [vmem:[#allocation7 + $0x64c] ss:$16 sps:$4 sm:$0xff]  }
 0x2c6   :  { %4941 = vmatprep.subr.bf16.mxu1 %v8934_v26  ;;  %v9013_v26 = vld [vmem:[#allocation7 + $0x640] ss:$16 sps:$4 sm:$0xff]  }
 0x2c8   :  { %4770 = vmatpush1.bf16.msra.mxu0 %v8929_v17  ;;  %v9016_v17 = vld [vmem:[#allocation7 + $0x648] ss:$16 sps:$4 sm:$0xff]  }
 0x2c9   :  { %4942 = vmatpush1.bf16.msra.mxu1 %v8932_v9  ;;  %4771 = vmatprep.subr.bf16.mxu0 %v8937_v27  ;;  %v9021_v9 = vld [vmem:[#allocation7 + $0x664] ss:$16 sps:$4 sm:$0xff]   ;;  %v9019_v27 = vld [vmem:[#allocation7 + $0x660] ss:$16 sps:$4 sm:$0xff]  }
 0x2ca   :  { %4943 = vmatprep.subr.bf16.mxu1 %v8940_v28  ;;  %v9022_v28 = vld [vmem:[#allocation7 + $0x668] ss:$16 sps:$4 sm:$0xff]  }
 0x2cc   :  { %4772 = vmatpush1.bf16.msra.mxu0 %v8935_v41  ;;  %v9027_v41 = vld [vmem:[#allocation7 + $0x684] ss:$16 sps:$4 sm:$0xff]  }
 0x2cd   :  { %4944 = vmatpush1.bf16.msra.mxu1 %v8938_v29  ;;  %4773 = vmatprep.subr.bf16.mxu0 %v8943_v32  ;;  %v9030_v29 = vld [vmem:[#allocation7 + $0x68c] ss:$16 sps:$4 sm:$0xff]   ;;  %v1459_v32 = vld [vmem:[%s10057_s6] sm:$0xf] }
 0x2ce   :  { %4945 = vmatprep.subr.bf16.mxu1 %v8946_v33  ;;  %v9028_v33 = vld [vmem:[#allocation7 + $0x688] ss:$16 sps:$4 sm:$0xff]  }
 0x2d0   :  { %4774 = vmatpush1.bf16.msra.mxu0 %v8941_v16  ;;  %v9033_v16 = vld [vmem:[#allocation7 + $0x6a4] ss:$16 sps:$4 sm:$0xff]  }
 0x2d1   :  { %4946 = vmatpush1.bf16.msra.mxu1 %v8944_v38  ;;  %4775 = vmatprep.subr.bf16.mxu0 %v8949_v0  ;;  %v9036_v38 = vld [vmem:[#allocation7 + $0x6ac] ss:$16 sps:$4 sm:$0xff]   ;;  %v1464_v0 = vrot.slane %v1459_v32, %v9892_v30 }
 0x2d2   :  { %4947 = vmatprep.subr.bf16.mxu1 %v8952_v34  ;;  %v1472_v34 = vrot.slane %v1459_v32, %v9918_v55 }
 0x2d4   :  { %4776 = vmatpush1.bf16.msra.mxu0 %v8947_v36  ;;  %v1468_v36 = vrot.slane %v1459_v32, %v9895_v31 }
 0x2d5   :  { %4948 = vmatpush1.bf16.msra.mxu1 %v8950_v39  ;;  %4777 = vmatprep.subr.bf16.mxu0 %v8955_v19  ;;  %v9031_v39 = vld [vmem:[#allocation7 + $0x6a0] ss:$16 sps:$4 sm:$0xff]   ;;  %v1476_v19 = vrot.slane %v1459_v32, %v9921_v56  ;;  %v9072_v32 = vld [vmem:[#allocation7 + $0x76c] ss:$16 sps:$4 sm:$0xff]  }
 0x2d6   :  { %4949 = vmatprep.subr.bf16.mxu1 %v8958_v37  ;;  %v9034_v37 = vld [vmem:[#allocation7 + $0x6a8] ss:$16 sps:$4 sm:$0xff]  }
 0x2d8   :  { %4778 = vmatpush1.bf16.msra.mxu0 %v8953_v42  ;;  %v9039_v42 = vld [vmem:[#allocation7 + $0x6c4] ss:$16 sps:$4 sm:$0xff]  }
 0x2d9   :  { %4950 = vmatpush1.bf16.msra.mxu1 %v8956_v43  ;;  %4779 = vmatprep.subr.bf16.mxu0 %v8961_v44  ;;  %v9042_v44 = vld [vmem:[#allocation7 + $0x6cc] ss:$16 sps:$4 sm:$0xff]  }
 0x2da   :  { %4951 = vmatprep.subr.bf16.mxu1 %v8964_v45 }
 0x2dc   :  { %4780 = vmatpush1.bf16.msra.mxu0 %v8959_v46 }
 0x2dd   :  { %4952 = vmatpush1.bf16.msra.mxu1 %v8962_v35  ;;  %4781 = vmatprep.subr.bf16.mxu0 %v8967_v47 }
 0x2de   :  { %4953 = vmatprep.subr.bf16.mxu1 %v8970_v49 }
 0x2e0   :  { %4782 = vmatpush1.bf16.msra.mxu0 %v8965_v7 }
 0x2e1   :  { %4954 = vmatpush1.bf16.msra.mxu1 %v8968_v50  ;;  %4783 = vmatprep.subr.bf16.mxu0 %v8973_v52  ;;  %v9037_v52 = vld [vmem:[#allocation7 + $0x6c0] ss:$16 sps:$4 sm:$0xff]  }
 0x2e2   :  { %4955 = vmatprep.subr.bf16.mxu1 %v8976_v53 }
 0x2e4   :  { %4784 = vmatpush1.bf16.msra.mxu0 %v8971_v54 }
 0x2e5   :  { %4956 = vmatpush1.bf16.msra.mxu1 %v8974_v57  ;;  %4785 = vmatprep.subr.bf16.mxu0 %v8979_v58 }
 0x2e6   :  { %4957 = vmatprep.subr.bf16.mxu1 %v8982_v59  ;;  %v9040_v59 = vld [vmem:[#allocation7 + $0x6c8] ss:$16 sps:$4 sm:$0xff]  }
 0x2e8   :  { %4786 = vmatpush1.bf16.msra.mxu0 %v8977_v4  ;;  %v9045_v4 = vld [vmem:[#allocation7 + $0x6e4] ss:$16 sps:$4 sm:$0xff]  }
 0x2e9   :  { %4958 = vmatpush1.bf16.msra.mxu1 %v8980_v60  ;;  %4787 = vmatprep.subr.bf16.mxu0 %v8985_v61 }
 0x2ea   :  { %4959 = vmatprep.subr.bf16.mxu1 %v8988_v63 }
 0x2ec   :  { %4788 = vmatpush1.bf16.msra.mxu0 %v8983_v24  ;;  %v9048_v24 = vld [vmem:[#allocation7 + $0x6ec] ss:$16 sps:$4 sm:$0xff]  }
 0x2ed   :  { %4960 = vmatpush1.bf16.msra.mxu1 %v8986_v51  ;;  %4789 = vmatprep.subr.bf16.mxu0 %v8991_v2 }
 0x2ee   :  { %4961 = vmatprep.subr.bf16.mxu1 %v8994_v3 }
 0x2f0   :  { %4790 = vmatpush1.bf16.msra.mxu0 %v8989_v25 }
 0x2f1   :  { %4962 = vmatpush1.bf16.msra.mxu1 %v8992_v5  ;;  %4791 = vmatprep.subr.bf16.mxu0 %v8997_v22 }
 0x2f2   :  { %4963 = vmatprep.subr.bf16.mxu1 %v9000_v48 }
 0x2f4   :  { %4792 = vmatpush1.bf16.msra.mxu0 %v8995_v6  ;;  %v9043_v6 = vld [vmem:[#allocation7 + $0x6e0] ss:$16 sps:$4 sm:$0xff]  }
 0x2f5   :  { %4964 = vmatpush1.bf16.msra.mxu1 %v8998_v23  ;;  %4804 = vmatprep.subr.bf16.mxu0 %v9003_v8 }
 0x2f6   :  { %4976 = vmatprep.subr.bf16.mxu1 %v9006_v10 }
 0x2f7   :  { %4794 = vmatmul.mubr.bf16.vlgmr.msra.gmra.mrb[20].mxu0 %v9931_v11 }
 0x2f8   :  { %4966 = vmatmul.mubr.bf16.vlgmr.msra.gmra.mrb[28].mxu1 %v9931_v11  ;;  %4805 = vmatpush1.bf16.msra.mxu0 %v9001_v40  ;;  %v9024_v11 = vld [vmem:[#allocation7 + $0x66c] ss:$16 sps:$4 sm:$0xff]   ;;  %v9046_v40 = vld [vmem:[#allocation7 + $0x6e8] ss:$16 sps:$4 sm:$0xff]  }
 0x2f9   :  { %4836 = vmatprep.mubr.bf16.mxu0 %v9959_v1  ;;  %4977 = vmatpush1.bf16.msra.mxu1 %v9004_v12  ;;  %v9051_v12 = vld [vmem:[#allocation7 + $0x704] ss:$16 sps:$4 sm:$0xff]  }
 0x2fa   :  { %5008 = vmatprep.mubr.bf16.mxu1 %v9959_v1  ;;  %4806 = vmatprep.subr.bf16.mxu0 %v9009_v14  ;;  %v9025_v1 = vld [vmem:[#allocation7 + $0x680] ss:$16 sps:$4 sm:$0xff]  }
 0x2fb   :  { %4978 = vmatprep.subr.bf16.mxu1 %v9012_v15 }
 0x2fc   :  { %4807 = vmatpush1.bf16.msra.mxu0 %v9007_v18  ;;  %v9054_v18 = vld [vmem:[#allocation7 + $0x70c] ss:$16 sps:$4 sm:$0xff]  }
 0x2fd   :  { %4979 = vmatpush1.bf16.msra.mxu1 %v9010_v13  ;;  %4808 = vmatprep.subr.bf16.mxu0 %v9015_v20  ;;  %v9049_v20 = vld [vmem:[#allocation7 + $0x700] ss:$16 sps:$4 sm:$0xff]  }
 0x2fe   :  { %4980 = vmatprep.subr.bf16.mxu1 %v9018_v21  ;;  %v9052_v21 = vld [vmem:[#allocation7 + $0x708] ss:$16 sps:$4 sm:$0xff]  }
 0x300   :  { %4809 = vmatpush1.bf16.msra.mxu0 %v9013_v26  ;;  %v9057_v26 = vld [vmem:[#allocation7 + $0x724] ss:$16 sps:$4 sm:$0xff]  }
 0x301   :  { %4981 = vmatpush1.bf16.msra.mxu1 %v9016_v17  ;;  %4810 = vmatprep.subr.bf16.mxu0 %v9021_v9  ;;  %v9060_v17 = vld [vmem:[#allocation7 + $0x72c] ss:$16 sps:$4 sm:$0xff]   ;;  %v9055_v9 = vld [vmem:[#allocation7 + $0x720] ss:$16 sps:$4 sm:$0xff]  }
 0x302   :  { %4982 = vmatprep.subr.bf16.mxu1 %v9024_v11  ;;  %v9058_v11 = vld [vmem:[#allocation7 + $0x728] ss:$16 sps:$4 sm:$0xff]  }
 0x304   :  { %4811 = vmatpush1.bf16.msra.mxu0 %v9019_v27  ;;  %v9063_v27 = vld [vmem:[#allocation7 + $0x744] ss:$16 sps:$4 sm:$0xff]  }
 0x305   :  { %4983 = vmatpush1.bf16.msra.mxu1 %v9022_v28  ;;  %4812 = vmatprep.subr.bf16.mxu0 %v9027_v41  ;;  %v9066_v28 = vld [vmem:[#allocation7 + $0x74c] ss:$16 sps:$4 sm:$0xff]   ;;  %v9061_v41 = vld [vmem:[#allocation7 + $0x740] ss:$16 sps:$4 sm:$0xff]  }
 0x306   :  { %4984 = vmatprep.subr.bf16.mxu1 %v9030_v29  ;;  %v9064_v29 = vld [vmem:[#allocation7 + $0x748] ss:$16 sps:$4 sm:$0xff]  }
 0x308   :  { %4813 = vmatpush1.bf16.msra.mxu0 %v9025_v1  ;;  %v9069_v1 = vld [vmem:[#allocation7 + $0x764] ss:$16 sps:$4 sm:$0xff]  }
 0x309   :  { %4985 = vmatpush1.bf16.msra.mxu1 %v9028_v33  ;;  %4814 = vmatprep.subr.bf16.mxu0 %v9033_v16  ;;  %v9067_v33 = vld [vmem:[#allocation7 + $0x760] ss:$16 sps:$4 sm:$0xff]   ;;  %v9070_v16 = vld [vmem:[#allocation7 + $0x768] ss:$16 sps:$4 sm:$0xff]  }
 0x30a   :  { %v2924_v43 = vpop.f32.mrb[16].mxu0  ;;  %4986 = vmatprep.subr.bf16.mxu1 %v9036_v38  ;;  %v9075_v38 = vld [vmem:[#allocation7 + $0x784] ss:$16 sps:$4 sm:$0xff]  }
 0x30b   :  { %v8194_v45 = vadd.f32 %v2924_v43, %v1464_v0  ;;  %v3096_v46 = vpop.f32.mrb[24].mxu1  ;;  %v2926_v35 = vpop.f32.mrb[17].mxu0  ;;  %v9087_v43 = vld [vmem:[#allocation7 + $0x7c4] ss:$16 sps:$4 sm:$0xff]  }
 0x30c   :  { %v8198_v47 = vadd.f32 %v3096_v46, %v1472_v34  ;;  %v8195_v49 = vadd.f32 %v2926_v35, %v1468_v36  ;;  %v3098_v7 = vpop.f32.mrb[25].mxu1  ;;  %v2928_v50 = vpop.f32.mrb[18].mxu0  ;;  %4815 = vmatpush1.bf16.msra.mxu0 %v9031_v39  ;;  %v9081_v39 = vld [vmem:[#allocation7 + $0x7a4] ss:$16 sps:$4 sm:$0xff]   ;;  %v9088_v46 = vld [vmem:[#allocation7 + $0x7c8] ss:$16 sps:$4 sm:$0xff]  }
 0x30d   :  { %v8199_v53 = vadd.f32 %v3098_v7, %v1476_v19  ;;  %v8196_v54 = vadd.f32 %v2928_v50, %v1464_v0  ;;  %v3100_v57 = vpop.f32.mrb[26].mxu1  ;;  %4987 = vmatpush1.bf16.msra.mxu1 %v9034_v37  ;;  %v2930_v58 = vpop.f32.mrb[19].mxu0  ;;  %4816 = vmatprep.subr.bf16.mxu0 %v9039_v42  ;;  %v3105_v51 = vmax.f32 %v8194_v45, 0.0  ;;  %v9078_v0 = vld [vmem:[#allocation7 + $0x78c] ss:$16 sps:$4 sm:$0xff]  }
 0x30e   :  { %v8200_v60 = vadd.f32 %v3100_v57, %v1472_v34  ;;  %v8197_v61 = vadd.f32 %v2930_v58, %v1468_v36  ;;  %v3102_v63 = vpop.f32.mrb[27].mxu1  ;;  %4988 = vmatprep.subr.bf16.mxu1 %v9042_v44  ;;  %v3107_v25 = vmax.f32 %v8198_v47, 0.0  ;;  %v3106_v5 = vmax.f32 %v8195_v49, 0.0  ;;  %v9073_v34 = vld [vmem:[#allocation7 + $0x780] ss:$16 sps:$4 sm:$0xff]  }
 0x30f   :  { %v3109_v2 = vmax.f32 %v8196_v54, 0.0  ;;  %v8201_v3 = vadd.f32 %v3102_v63, %v1476_v19  ;;  %v3108_v23 = vmax.f32 %v8199_v53, 0.0  ;;  %v9076_v36 = vld [vmem:[#allocation7 + $0x788] ss:$16 sps:$4 sm:$0xff]   ;;  %v9084_v19 = vld [vmem:[#allocation7 + $0x7ac] ss:$16 sps:$4 sm:$0xff]  }
 0x310   :  { %v3111_v22 = vmax.f32 %v8200_v60, 0.0  ;;  %v3110_v48 = vmax.f32 %v8197_v61, 0.0  ;;  %4817 = vmatpush1.bf16.msra.mxu0 %v9037_v52  ;;  %v9079_v37 = vld [vmem:[#allocation7 + $0x7a0] ss:$16 sps:$4 sm:$0xff]   ;;  %v9082_v42 = vld [vmem:[#allocation7 + $0x7a8] ss:$16 sps:$4 sm:$0xff]  }
 0x311   :  { %v9992_v8 = vpack.c.bf16 %v3109_v2, %v3105_v51  ;;  %v3112_v10 = vmax.f32 %v8201_v3, 0.0  ;;  %4989 = vmatpush1.bf16.msra.mxu1 %v9040_v59  ;;  %4818 = vmatprep.subr.bf16.mxu0 %v9045_v4  ;;  %v9090_v44 = vld [vmem:[#allocation7 + $0x7cc] ss:$16 sps:$4 sm:$0xff]   ;;  %v9085_v45 = vld [vmem:[#allocation7 + $0x7c0] ss:$16 sps:$4 sm:$0xff]  }
 0x312   :  { %v9994_v14 = vpack.c.bf16 %v3111_v22, %v3107_v25  ;;  %v9996_v15 = vpack.c.bf16 %v3110_v48, %v3106_v5  ;;  %4990 = vmatprep.subr.bf16.mxu1 %v9048_v24  ;;  %v9093_v35 = vld [vmem:[#allocation7 + $0x7e4] ss:$16 sps:$4 sm:$0xff]   ;;  %v9096_v47 = vld [vmem:[#allocation7 + $0x7ec] ss:$16 sps:$4 sm:$0xff]   ;;  %v9091_v49 = vld [vmem:[#allocation7 + $0x7e0] ss:$16 sps:$4 sm:$0xff]  }
 0x313   :  { %v9998_v13 = vpack.c.bf16 %v3112_v10, %v3108_v23  ;;  %v9094_v7 = vld [vmem:[#allocation7 + $0x7e8] ss:$16 sps:$4 sm:$0xff]   ;;  %v9099_v50 = vld [vmem:[#allocation9 + $0x4] ss:$12 sps:$4 sm:$0xff]   ;;  %v9097_v53 = vld [vmem:[#allocation9] ss:$12 sps:$4 sm:$0xff]  }
 0x314   :  { %4819 = vmatpush1.bf16.msra.mxu0 %v9043_v6  ;;  %v9100_v52 = vld [vmem:[#allocation9 + $0xc8] ss:$12 sps:$4 sm:$0xff]   ;;  %v9105_v58 = vld [vmem:[#allocation9 + $0xe0] ss:$12 sps:$4 sm:$0xff]   ;;  %v9102_v59 = vld [vmem:[#allocation9 + $0x18] ss:$12 sps:$4 sm:$0xff]  }
 0x315   :  { %4991 = vmatpush1.bf16.msra.mxu1 %v9046_v40  ;;  %4820 = vmatprep.subr.bf16.mxu0 %v9051_v12  ;;  %v9101_v54 = vld [vmem:[#allocation9 + $0x8] ss:$12 sps:$4 sm:$0xff]   ;;  %v9106_v4 = vld [vmem:[#allocation9 + $0x20] ss:$12 sps:$4 sm:$0xff]   ;;  %v9110_v61 = vld [vmem:[#allocation9 + $0xf8] ss:$12 sps:$4 sm:$0xff]  }
 0x316   :  { %4992 = vmatprep.subr.bf16.mxu1 %v9054_v18  ;;  %v9104_v57 = vld [vmem:[#allocation9 + $0x1c] ss:$12 sps:$4 sm:$0xff]   ;;  %v9109_v60 = vld [vmem:[#allocation9 + $0x34] ss:$12 sps:$4 sm:$0xff]   ;;  %v9111_v24 = vld [vmem:[#allocation9 + $0x38] ss:$12 sps:$4 sm:$0xff]  }
 0x317   :  { %v9107_v63 = vld [vmem:[#allocation9 + $0x30] ss:$12 sps:$4 sm:$0xff]   ;;  %v9114_v51 = vld [vmem:[#allocation9 + $0x4c] ss:$12 sps:$4 sm:$0xff]   ;;  %v9112_v2 = vld [vmem:[#allocation9 + $0x48] ss:$12 sps:$4 sm:$0xff]  }
 0x318   :  { %4821 = vmatpush1.bf16.msra.mxu0 %v9049_v20  ;;  %v9116_v3 = vld [vmem:[#allocation9 + $0x50] ss:$12 sps:$4 sm:$0xff]   ;;  %v9120_v5 = vld [vmem:[#allocation9 + $0x128] ss:$12 sps:$4 sm:$0xff]   ;;  %v9117_v22 = vld [vmem:[#allocation9 + $0x60] ss:$12 sps:$4 sm:$0xff]  }
 0x319   :  { %4993 = vmatpush1.bf16.msra.mxu1 %v9052_v21  ;;  %4822 = vmatprep.subr.bf16.mxu0 %v9057_v26  ;;  %v9119_v25 = vld [vmem:[#allocation9 + $0x64] ss:$12 sps:$4 sm:$0xff]   ;;  %v9121_v48 = vld [vmem:[#allocation9 + $0x68] ss:$12 sps:$4 sm:$0xff]   ;;  %v9125_v23 = vld [vmem:[#allocation9 + $0x140] ss:$12 sps:$4 sm:$0xff]  }
 0x31a   :  { %4994 = vmatprep.subr.bf16.mxu1 %v9060_v17  ;;  %v9124_v6 = vld [vmem:[#allocation9 + $0x7c] ss:$12 sps:$4 sm:$0xff]   ;;  %v9122_v10 = vld [vmem:[#allocation9 + $0x78] ss:$12 sps:$4 sm:$0xff]   ;;  %v9126_v40 = vld [vmem:[#allocation9 + $0x80] ss:$12 sps:$4 sm:$0xff]  }
 0x31b   :  { %v9129_v12 = vld [vmem:[#allocation9 + $0x94] ss:$12 sps:$4 sm:$0xff]   ;;  %v9127_v18 = vld [vmem:[#allocation9 + $0x90] ss:$12 sps:$4 sm:$0xff]   ;;  %v9131_v20 = vld [vmem:[#allocation9 + $0x98] ss:$12 sps:$4 sm:$0xff]  }
 0x31c   :  { %4823 = vmatpush1.bf16.msra.mxu0 %v9055_v9  ;;  %v9134_v21 = vld [vmem:[#allocation9 + $0xac] ss:$12 sps:$4 sm:$0xff]   ;;  %v9135_v26 = vld [vmem:[#allocation9 + $0x170] ss:$12 sps:$4 sm:$0xff]   ;;  %v9132_v17 = vld [vmem:[#allocation9 + $0xa8] ss:$12 sps:$4 sm:$0xff]  }
 0x31d   :  { %4995 = vmatpush1.bf16.msra.mxu1 %v9058_v11  ;;  %4824 = vmatprep.subr.bf16.mxu0 %v9063_v27  ;;  %v9136_v9 = vld [vmem:[#allocation9 + $0xb0] ss:$12 sps:$4 sm:$0xff]   ;;  %v9140_v27 = vld [vmem:[#allocation9 + $0x248] ss:$12 sps:$4 sm:$0xff]  }
 0x31e   :  { %4996 = vmatprep.subr.bf16.mxu1 %v9066_v28  ;;  %v9139_v11 = vld [vmem:[#allocation9 + $0xc4] ss:$12 sps:$4 sm:$0xff]   ;;  %v9137_v28 = vld [vmem:[#allocation9 + $0xc0] ss:$12 sps:$4 sm:$0xff]  }
 0x320   :  { %4825 = vmatpush1.bf16.msra.mxu0 %v9061_v41  ;;  %v9141_v41 = vld [vmem:[#allocation9 + $0x188] ss:$12 sps:$4 sm:$0xff]  }
 0x321   :  { %4997 = vmatpush1.bf16.msra.mxu1 %v9064_v29  ;;  %4826 = vmatprep.subr.bf16.mxu0 %v9069_v1  ;;  %v9144_v29 = vld [vmem:[#allocation9 + $0xdc] ss:$12 sps:$4 sm:$0xff]   ;;  %v9145_v1 = vld [vmem:[#allocation9 + $0x260] ss:$12 sps:$4 sm:$0xff]  }
 0x322   :  { %4998 = vmatprep.subr.bf16.mxu1 %v9072_v32  ;;  %v9142_v32 = vld [vmem:[#allocation9 + $0xd8] ss:$12 sps:$4 sm:$0xff]  }
 0x324   :  { %4827 = vmatpush1.bf16.msra.mxu0 %v9067_v33  ;;  %v9146_v33 = vld [vmem:[#allocation9 + $0x1a0] ss:$12 sps:$4 sm:$0xff]  }
 0x325   :  { %4999 = vmatpush1.bf16.msra.mxu1 %v9070_v16  ;;  %4828 = vmatprep.subr.bf16.mxu0 %v9075_v38  ;;  %v9149_v16 = vld [vmem:[#allocation9 + $0xf4] ss:$12 sps:$4 sm:$0xff]   ;;  %v9150_v38 = vld [vmem:[#allocation9 + $0x278] ss:$12 sps:$4 sm:$0xff]  }
 0x326   :  { %5000 = vmatprep.subr.bf16.mxu1 %v9078_v0  ;;  %v9147_v0 = vld [vmem:[#allocation9 + $0xf0] ss:$12 sps:$4 sm:$0xff]  }
 0x328   :  { %4829 = vmatpush1.bf16.msra.mxu0 %v9073_v34  ;;  %v9151_v34 = vld [vmem:[#allocation9 + $0x1b8] ss:$12 sps:$4 sm:$0xff]  }
 0x329   :  { %5001 = vmatpush1.bf16.msra.mxu1 %v9076_v36  ;;  %4830 = vmatprep.subr.bf16.mxu0 %v9081_v39  ;;  %v9154_v36 = vld [vmem:[#allocation9 + $0x10c] ss:$12 sps:$4 sm:$0xff]   ;;  %v9155_v39 = vld [vmem:[#allocation9 + $0x290] ss:$12 sps:$4 sm:$0xff]  }
 0x32a   :  { %5002 = vmatprep.subr.bf16.mxu1 %v9084_v19  ;;  %v9152_v19 = vld [vmem:[#allocation9 + $0x108] ss:$12 sps:$4 sm:$0xff]  }
 0x32c   :  { %4831 = vmatpush1.bf16.msra.mxu0 %v9079_v37  ;;  %v9156_v37 = vld [vmem:[#allocation9 + $0x1d0] ss:$12 sps:$4 sm:$0xff]  }
 0x32d   :  { %5003 = vmatpush1.bf16.msra.mxu1 %v9082_v42  ;;  %4832 = vmatprep.subr.bf16.mxu0 %v9087_v43  ;;  %v9159_v42 = vld [vmem:[#allocation9 + $0x124] ss:$12 sps:$4 sm:$0xff]   ;;  %v9160_v43 = vld [vmem:[#allocation9 + $0x2a8] ss:$12 sps:$4 sm:$0xff]  }
 0x32e   :  { %5004 = vmatprep.subr.bf16.mxu1 %v9090_v44  ;;  %v9157_v44 = vld [vmem:[#allocation9 + $0x120] ss:$12 sps:$4 sm:$0xff]  }
 0x330   :  { %4833 = vmatpush1.bf16.msra.mxu0 %v9085_v45  ;;  %v9161_v45 = vld [vmem:[#allocation9 + $0x1e8] ss:$12 sps:$4 sm:$0xff]  }
 0x331   :  { %5005 = vmatpush1.bf16.msra.mxu1 %v9088_v46  ;;  %4834 = vmatprep.subr.bf16.mxu0 %v9093_v35  ;;  %v9164_v46 = vld [vmem:[#allocation9 + $0x13c] ss:$12 sps:$4 sm:$0xff]   ;;  %v9165_v35 = vld [vmem:[#allocation9 + $0x2c0] ss:$12 sps:$4 sm:$0xff]  }
 0x332   :  { %5006 = vmatprep.subr.bf16.mxu1 %v9096_v47  ;;  %v9162_v47 = vld [vmem:[#allocation9 + $0x138] ss:$12 sps:$4 sm:$0xff]  }
 0x334   :  { %4835 = vmatpush1.bf16.msra.mxu0 %v9091_v49  ;;  %v9166_v49 = vld [vmem:[#allocation9 + $0x200] ss:$12 sps:$4 sm:$0xff]  }
 0x335   :  { %5007 = vmatpush1.bf16.msra.mxu1 %v9094_v7  ;;  %5688 = vmatprep.subr.bf16.mxu0 %v9099_v50  ;;  %v9169_v7 = vld [vmem:[#allocation9 + $0x154] ss:$12 sps:$4 sm:$0xff]   ;;  %v9170_v50 = vld [vmem:[#allocation9 + $0x2d8] ss:$12 sps:$4 sm:$0xff]  }
 0x336   :  { %8032 = vmatprep.subr.bf16.mxu1 %v9100_v52  ;;  %v9167_v52 = vld [vmem:[#allocation9 + $0x150] ss:$12 sps:$4 sm:$0xff]  }
 0x337   :  { %4837 = vmatmul.mubr.bf16.vlgmr.msra.gmra.mrb[20].mxu0 %v9957_v62 }
 0x338   :  { %5009 = vmatmul.mubr.bf16.vlgmr.msra.gmra.mrb[28].mxu1 %v9957_v62  ;;  %5689 = vmatpush1.bf16.msra.mxu0 %v9097_v53  ;;  %v9115_v62 = vld [vmem:[#allocation9 + $0x110] ss:$12 sps:$4 sm:$0xff]   ;;  %v9171_v53 = vld [vmem:[#allocation9 + $0x218] ss:$12 sps:$4 sm:$0xff]  }
 0x339   :  { %5720 = vmatprep.mubr.bf16.mxu0 %v9996_v15  ;;  %8033 = vmatpush3.bf16.msra.mxu1 %v9101_v54  ;;  %v9174_v54 = vld [vmem:[#allocation9 + $0x16c] ss:$12 sps:$4 sm:$0xff]  }
 0x33a   :  { %5806 = vmatprep.mubr.bf16.mxu1 %v9996_v15  ;;  %5690 = vmatprep.subr.bf16.mxu0 %v9104_v57  ;;  %v9130_v15 = vld [vmem:[#allocation9 + $0x158] ss:$12 sps:$4 sm:$0xff]   ;;  %v9175_v57 = vld [vmem:[#allocation9 + $0x2f0] ss:$12 sps:$4 sm:$0xff]  }
 0x33b   :  { %8034 = vmatprep.subr.bf16.mxu1 %v9105_v58  ;;  %v9172_v58 = vld [vmem:[#allocation9 + $0x168] ss:$12 sps:$4 sm:$0xff]  }
 0x33c   :  { %5691 = vmatpush1.bf16.msra.mxu0 %v9102_v59  ;;  %v9176_v59 = vld [vmem:[#allocation9 + $0x230] ss:$12 sps:$4 sm:$0xff]  }
 0x33d   :  { %8035 = vmatpush3.bf16.msra.mxu1 %v9106_v4  ;;  %5692 = vmatprep.subr.bf16.mxu0 %v9109_v60  ;;  %v9179_v4 = vld [vmem:[#allocation9 + $0x184] ss:$12 sps:$4 sm:$0xff]  }
 0x33e   :  { %8036 = vmatprep.subr.bf16.mxu1 %v9110_v61  ;;  %v9227_v60 = vld [vmem:[#allocation10 + $0x4] ss:$12 sps:$4 sm:$0xff]   ;;  %v9177_v61 = vld [vmem:[#allocation9 + $0x180] ss:$12 sps:$4 sm:$0xff]  }
 0x340   :  { %5693 = vmatpush1.bf16.msra.mxu0 %v9107_v63  ;;  %v9182_v63 = vld [vmem:[#allocation9 + $0x19c] ss:$12 sps:$4 sm:$0xff]  }
 0x341   :  { %8037 = vmatpush3.bf16.msra.mxu1 %v9111_v24  ;;  %5694 = vmatprep.subr.bf16.mxu0 %v9114_v51  ;;  %v9225_v24 = vld [vmem:[#allocation10] ss:$12 sps:$4 sm:$0xff]   ;;  %v9230_v51 = vld [vmem:[#allocation10 + $0x1c] ss:$12 sps:$4 sm:$0xff]  }
 0x342   :  { %8038 = vmatprep.subr.bf16.mxu1 %v9115_v62  ;;  %v9180_v62 = vld [vmem:[#allocation9 + $0x198] ss:$12 sps:$4 sm:$0xff]  }
 0x344   :  { %5695 = vmatpush1.bf16.msra.mxu0 %v9112_v2  ;;  %v9185_v2 = vld [vmem:[#allocation9 + $0x1b4] ss:$12 sps:$4 sm:$0xff]  }
 0x345   :  { %8039 = vmatpush3.bf16.msra.mxu1 %v9116_v3  ;;  %5696 = vmatprep.subr.bf16.mxu0 %v9119_v25  ;;  %v9228_v3 = vld [vmem:[#allocation10 + $0x18] ss:$12 sps:$4 sm:$0xff]   ;;  %v9233_v25 = vld [vmem:[#allocation10 + $0x34] ss:$12 sps:$4 sm:$0xff]  }
 0x346   :  { %8040 = vmatprep.subr.bf16.mxu1 %v9120_v5  ;;  %v9183_v5 = vld [vmem:[#allocation9 + $0x1b0] ss:$12 sps:$4 sm:$0xff]  }
 0x348   :  { %5697 = vmatpush1.bf16.msra.mxu0 %v9117_v22  ;;  %v9188_v22 = vld [vmem:[#allocation9 + $0x1cc] ss:$12 sps:$4 sm:$0xff]  }
 0x349   :  { %8041 = vmatpush3.bf16.msra.mxu1 %v9121_v48  ;;  %5698 = vmatprep.subr.bf16.mxu0 %v9124_v6  ;;  %v9231_v48 = vld [vmem:[#allocation10 + $0x30] ss:$12 sps:$4 sm:$0xff]   ;;  %v9186_v6 = vld [vmem:[#allocation9 + $0x1c8] ss:$12 sps:$4 sm:$0xff]  }
 0x34a   :  { %8042 = vmatprep.subr.bf16.mxu1 %v9125_v23  ;;  %v9191_v23 = vld [vmem:[#allocation9 + $0x1e4] ss:$12 sps:$4 sm:$0xff]  }
 0x34c   :  { %5699 = vmatpush1.bf16.msra.mxu0 %v9122_v10  ;;  %v9239_v10 = vld [vmem:[#allocation10 + $0x64] ss:$12 sps:$4 sm:$0xff]  }
 0x34d   :  { %8043 = vmatpush3.bf16.msra.mxu1 %v9126_v40  ;;  %5700 = vmatprep.subr.bf16.mxu0 %v9129_v12  ;;  %v9189_v40 = vld [vmem:[#allocation9 + $0x1e0] ss:$12 sps:$4 sm:$0xff]   ;;  %v9194_v12 = vld [vmem:[#allocation9 + $0x1fc] ss:$12 sps:$4 sm:$0xff]  }
 0x34e   :  { %8044 = vmatprep.subr.bf16.mxu1 %v9130_v15  ;;  %v9237_v15 = vld [vmem:[#allocation10 + $0x60] ss:$12 sps:$4 sm:$0xff]  }
 0x350   :  { %5701 = vmatpush1.bf16.msra.mxu0 %v9127_v18  ;;  %v9242_v18 = vld [vmem:[#allocation10 + $0x7c] ss:$12 sps:$4 sm:$0xff]  }
 0x351   :  { %8045 = vmatpush3.bf16.msra.mxu1 %v9131_v20  ;;  %5702 = vmatprep.subr.bf16.mxu0 %v9134_v21  ;;  %v9192_v20 = vld [vmem:[#allocation9 + $0x1f8] ss:$12 sps:$4 sm:$0xff]   ;;  %v9197_v21 = vld [vmem:[#allocation9 + $0x214] ss:$12 sps:$4 sm:$0xff]  }
 0x352   :  { %8046 = vmatprep.subr.bf16.mxu1 %v9135_v26  ;;  %v9240_v26 = vld [vmem:[#allocation10 + $0x78] ss:$12 sps:$4 sm:$0xff]  }
 0x354   :  { %5703 = vmatpush1.bf16.msra.mxu0 %v9132_v17  ;;  %v9245_v17 = vld [vmem:[#allocation10 + $0x94] ss:$12 sps:$4 sm:$0xff]  }
 0x355   :  { %8047 = vmatpush3.bf16.msra.mxu1 %v9136_v9  ;;  %5704 = vmatprep.subr.bf16.mxu0 %v9139_v11  ;;  %v9195_v9 = vld [vmem:[#allocation9 + $0x210] ss:$12 sps:$4 sm:$0xff]   ;;  %v9200_v11 = vld [vmem:[#allocation9 + $0x22c] ss:$12 sps:$4 sm:$0xff]  }
 0x356   :  { %8054 = vmatprep.subr.bf16.mxu1 %v9140_v27  ;;  %v9243_v27 = vld [vmem:[#allocation10 + $0x90] ss:$12 sps:$4 sm:$0xff]  }
 0x358   :  { %5807 = vmatmul.mubr.bf16.vlgmr.msra.gmra.mrb[32].mxu1 %v9992_v8  ;;  %5705 = vmatpush1.bf16.msra.mxu0 %v9137_v28  ;;  %v9248_v28 = vld [vmem:[#allocation10 + $0xac] ss:$12 sps:$4 sm:$0xff]  }
 0x359   :  { %8055 = vmatpush3.bf16.msra.mxu1 %v9141_v41  ;;  %5847 = vmatprep.mubr.bf16.mxu1 %v9998_v13  ;;  %v9198_v41 = vld [vmem:[#allocation9 + $0x228] ss:$12 sps:$4 sm:$0xff]  }
 0x35a   :  { %5706 = vmatprep.subr.bf16.mxu0 %v9144_v29  ;;  %8056 = vmatprep.subr.bf16.mxu1 %v9145_v1  ;;  %v9203_v29 = vld [vmem:[#allocation9 + $0x244] ss:$12 sps:$4 sm:$0xff]   ;;  %v9246_v1 = vld [vmem:[#allocation10 + $0xa8] ss:$12 sps:$4 sm:$0xff]  }
 0x35c   :  { %5707 = vmatpush1.bf16.msra.mxu0 %v9142_v32  ;;  %v9251_v32 = vld [vmem:[#allocation10 + $0xc4] ss:$12 sps:$4 sm:$0xff]  }
 0x35d   :  { %8057 = vmatpush3.bf16.msra.mxu1 %v9146_v33  ;;  %5708 = vmatprep.subr.bf16.mxu0 %v9149_v16  ;;  %v9201_v33 = vld [vmem:[#allocation9 + $0x240] ss:$12 sps:$4 sm:$0xff]   ;;  %v9206_v16 = vld [vmem:[#allocation9 + $0x25c] ss:$12 sps:$4 sm:$0xff]  }
 0x35e   :  { %8058 = vmatprep.subr.bf16.mxu1 %v9150_v38  ;;  %v9249_v38 = vld [vmem:[#allocation10 + $0xc0] ss:$12 sps:$4 sm:$0xff]  }
 0x360   :  { %5709 = vmatpush1.bf16.msra.mxu0 %v9147_v0  ;;  %v9256_v0 = vld [vmem:[#allocation10 + $0xdc] ss:$12 sps:$4 sm:$0xff]  }
 0x361   :  { %8059 = vmatpush3.bf16.msra.mxu1 %v9151_v34  ;;  %5710 = vmatprep.subr.bf16.mxu0 %v9154_v36  ;;  %v9204_v34 = vld [vmem:[#allocation9 + $0x258] ss:$12 sps:$4 sm:$0xff]   ;;  %v9209_v36 = vld [vmem:[#allocation9 + $0x274] ss:$12 sps:$4 sm:$0xff]  }
 0x362   :  { %8060 = vmatprep.subr.bf16.mxu1 %v9155_v39  ;;  %v9254_v39 = vld [vmem:[#allocation10 + $0xd8] ss:$12 sps:$4 sm:$0xff]  }
 0x364   :  { %5711 = vmatpush1.bf16.msra.mxu0 %v9152_v19  ;;  %v9261_v19 = vld [vmem:[#allocation10 + $0xf4] ss:$12 sps:$4 sm:$0xff]  }
 0x365   :  { %8061 = vmatpush3.bf16.msra.mxu1 %v9156_v37  ;;  %5712 = vmatprep.subr.bf16.mxu0 %v9159_v42  ;;  %v9207_v37 = vld [vmem:[#allocation9 + $0x270] ss:$12 sps:$4 sm:$0xff]   ;;  %v9212_v42 = vld [vmem:[#allocation9 + $0x28c] ss:$12 sps:$4 sm:$0xff]  }
 0x366   :  { %8062 = vmatprep.subr.bf16.mxu1 %v9160_v43  ;;  %v9259_v43 = vld [vmem:[#allocation10 + $0xf0] ss:$12 sps:$4 sm:$0xff]  }
 0x368   :  { %5713 = vmatpush1.bf16.msra.mxu0 %v9157_v44  ;;  %v9266_v44 = vld [vmem:[#allocation10 + $0x10c] ss:$12 sps:$4 sm:$0xff]  }
 0x369   :  { %8063 = vmatpush3.bf16.msra.mxu1 %v9161_v45  ;;  %5714 = vmatprep.subr.bf16.mxu0 %v9164_v46  ;;  %v9210_v45 = vld [vmem:[#allocation9 + $0x288] ss:$12 sps:$4 sm:$0xff]   ;;  %v9215_v46 = vld [vmem:[#allocation9 + $0x2a4] ss:$12 sps:$4 sm:$0xff]  }
 0x36a   :  { %8064 = vmatprep.subr.bf16.mxu1 %v9165_v35  ;;  %v9264_v35 = vld [vmem:[#allocation10 + $0x108] ss:$12 sps:$4 sm:$0xff]  }
 0x36c   :  { %5715 = vmatpush1.bf16.msra.mxu0 %v9162_v47  ;;  %v9271_v47 = vld [vmem:[#allocation10 + $0x124] ss:$12 sps:$4 sm:$0xff]  }
 0x36d   :  { %8065 = vmatpush3.bf16.msra.mxu1 %v9166_v49  ;;  %5716 = vmatprep.subr.bf16.mxu0 %v9169_v7  ;;  %v9213_v49 = vld [vmem:[#allocation9 + $0x2a0] ss:$12 sps:$4 sm:$0xff]   ;;  %v9218_v7 = vld [vmem:[#allocation9 + $0x2bc] ss:$12 sps:$4 sm:$0xff]  }
 0x36e   :  { %8066 = vmatprep.subr.bf16.mxu1 %v9170_v50  ;;  %v9269_v50 = vld [vmem:[#allocation10 + $0x120] ss:$12 sps:$4 sm:$0xff]  }
 0x370   :  { %5717 = vmatpush1.bf16.msra.mxu0 %v9167_v52  ;;  %v9276_v52 = vld [vmem:[#allocation10 + $0x13c] ss:$12 sps:$4 sm:$0xff]  }
 0x371   :  { %8067 = vmatpush3.bf16.msra.mxu1 %v9171_v53  ;;  %5718 = vmatprep.subr.bf16.mxu0 %v9174_v54  ;;  %v9216_v53 = vld [vmem:[#allocation9 + $0x2b8] ss:$12 sps:$4 sm:$0xff]   ;;  %v9221_v54 = vld [vmem:[#allocation9 + $0x2d4] ss:$12 sps:$4 sm:$0xff]  }
 0x372   :  { %8068 = vmatprep.subr.bf16.mxu1 %v9175_v57  ;;  %v9274_v57 = vld [vmem:[#allocation10 + $0x138] ss:$12 sps:$4 sm:$0xff]  }
 0x374   :  { %5719 = vmatpush1.bf16.msra.mxu0 %v9172_v58  ;;  %v9281_v58 = vld [vmem:[#allocation10 + $0x154] ss:$12 sps:$4 sm:$0xff]  }
 0x375   :  { %8069 = vmatpush3.bf16.msra.mxu1 %v9176_v59  ;;  %5731 = vmatprep.subr.bf16.mxu0 %v9179_v4  ;;  %v9219_v59 = vld [vmem:[#allocation9 + $0x2d0] ss:$12 sps:$4 sm:$0xff]   ;;  %v9224_v4 = vld [vmem:[#allocation9 + $0x2ec] ss:$12 sps:$4 sm:$0xff]  }
 0x376   :  { %6522 = vmatprep.subr.bf16.mxu1 %v9227_v60  ;;  %v9279_v60 = vld [vmem:[#allocation10 + $0x150] ss:$12 sps:$4 sm:$0xff]  }
 0x377   :  { %5721 = vmatmul.mubr.bf16.vlgmr.msra.gmra.mrb[24].mxu0 %v9992_v8  ;;  %v9236_v8 = vld [vmem:[#allocation10 + $0x4c] ss:$12 sps:$4 sm:$0xff]  }
 0x378   :  { %5848 = vmatmul.mubr.bf16.vlgmr.msra.gmra.mrb[36].mxu1 %v9994_v14  ;;  %5732 = vmatpush1.bf16.msra.mxu0 %v9177_v61  ;;  %v9286_v61 = vld [vmem:[#allocation10 + $0x16c] ss:$12 sps:$4 sm:$0xff]  }
 0x379   :  { %5763 = vmatprep.mubr.bf16.mxu0 %v9998_v13  ;;  %5733 = vmatprep.subr.bf16.mxu0 %v9182_v63  ;;  %v9234_v13 = vld [vmem:[#allocation10 + $0x48] ss:$12 sps:$4 sm:$0xff]  }
 0x37a   :  { %6523 = vmatpush1.bf16.msra.mxu1 %v9225_v24  ;;  %v9222_v63 = vld [vmem:[#allocation9 + $0x2e8] ss:$12 sps:$4 sm:$0xff]  }
 0x37b   :  { %6524 = vmatprep.subr.bf16.mxu1 %v9230_v51  ;;  %v9252_v24 = vld [vmem:[#allocation10 + $0xc8] ss:$12 sps:$4 sm:$0xff]  }
 0x37c   :  { %5734 = vmatpush1.bf16.msra.mxu0 %v9180_v62  ;;  %v9284_v51 = vld [vmem:[#allocation10 + $0x168] ss:$12 sps:$4 sm:$0xff]   ;;  %v9291_v62 = vld [vmem:[#allocation10 + $0x184] ss:$12 sps:$4 sm:$0xff]  }
 0x37d   :  { %5735 = vmatprep.subr.bf16.mxu0 %v9185_v2  ;;  %v9253_v2 = vld [vmem:[#allocation10 + $0x8] ss:$12 sps:$4 sm:$0xff]  }
 0x37e   :  { %6525 = vmatpush1.bf16.msra.mxu1 %v9228_v3  ;;  %v9257_v3 = vld [vmem:[#allocation10 + $0xe0] ss:$12 sps:$4 sm:$0xff]  }
 0x37f   :  { %6526 = vmatprep.subr.bf16.mxu1 %v9233_v25  ;;  %v9258_v25 = vld [vmem:[#allocation10 + $0x20] ss:$12 sps:$4 sm:$0xff]  }
 0x380   :  { %5736 = vmatpush1.bf16.msra.mxu0 %v9183_v5  ;;  %v9262_v5 = vld [vmem:[#allocation10 + $0xf8] ss:$12 sps:$4 sm:$0xff]  }
 0x381   :  { %5737 = vmatprep.subr.bf16.mxu0 %v9188_v22  ;;  %v9263_v22 = vld [vmem:[#allocation10 + $0x38] ss:$12 sps:$4 sm:$0xff]  }
 0x382   :  { %6527 = vmatpush1.bf16.msra.mxu1 %v9231_v48  ;;  %v9267_v48 = vld [vmem:[#allocation10 + $0x110] ss:$12 sps:$4 sm:$0xff]  }
 0x383   :  { %6528 = vmatprep.subr.bf16.mxu1 %v9236_v8  ;;  %v9268_v8 = vld [vmem:[#allocation10 + $0x50] ss:$12 sps:$4 sm:$0xff]  }
 0x384   :  { %5738 = vmatpush1.bf16.msra.mxu0 %v9186_v6  ;;  %v9272_v6 = vld [vmem:[#allocation10 + $0x128] ss:$12 sps:$4 sm:$0xff]  }
 0x385   :  { %5739 = vmatprep.subr.bf16.mxu0 %v9191_v23  ;;  %v9273_v23 = vld [vmem:[#allocation10 + $0x68] ss:$12 sps:$4 sm:$0xff]  }
 0x386   :  { %6529 = vmatpush1.bf16.msra.mxu1 %v9234_v13  ;;  %v9277_v13 = vld [vmem:[#allocation10 + $0x140] ss:$12 sps:$4 sm:$0xff]  }
 0x387   :  { %6530 = vmatprep.subr.bf16.mxu1 %v9239_v10  ;;  %v9278_v10 = vld [vmem:[#allocation10 + $0x80] ss:$12 sps:$4 sm:$0xff]  }
 0x388   :  { %5740 = vmatpush1.bf16.msra.mxu0 %v9189_v40  ;;  %v9283_v40 = vld [vmem:[#allocation10 + $0x98] ss:$12 sps:$4 sm:$0xff]  }
 0x389   :  { %5741 = vmatprep.subr.bf16.mxu0 %v9194_v12  ;;  %v9287_v12 = vld [vmem:[#allocation10 + $0x170] ss:$12 sps:$4 sm:$0xff]  }
 0x38a   :  { %6531 = vmatpush1.bf16.msra.mxu1 %v9237_v15  ;;  %v9288_v15 = vld [vmem:[#allocation10 + $0xb0] ss:$12 sps:$4 sm:$0xff]  }
 0x38b   :  { %6532 = vmatprep.subr.bf16.mxu1 %v9242_v18  ;;  %v9292_v18 = vld [vmem:[#allocation10 + $0x248] ss:$12 sps:$4 sm:$0xff]  }
 0x38c   :  { %5742 = vmatpush1.bf16.msra.mxu0 %v9192_v20  ;;  %v3373_v20 = vld [vmem:[%s10059_s8] sm:$0xf] }
 0x38d   :  { %5743 = vmatprep.subr.bf16.mxu0 %v9197_v21  ;;  %v3378_v21 = vrot.slane %v3373_v20, %v9892_v30 }
 0x38e   :  { %6533 = vmatpush1.bf16.msra.mxu1 %v9240_v26  ;;  %v3386_v26 = vrot.slane %v3373_v20, %v9918_v55 }
 0x38f   :  { %6534 = vmatprep.subr.bf16.mxu1 %v9245_v17  ;;  %v3382_v17 = vrot.slane %v3373_v20, %v9895_v31 }
 0x390   :  { %5744 = vmatpush1.bf16.msra.mxu0 %v9195_v9  ;;  %v3390_v9 = vrot.slane %v3373_v20, %v9921_v56  ;;  %v9327_v20 = vld [vmem:[#allocation10 + $0x2f0] ss:$12 sps:$4 sm:$0xff]  }
 0x391   :  { %5745 = vmatprep.subr.bf16.mxu0 %v9200_v11 }
 0x392   :  { %6535 = vmatpush1.bf16.msra.mxu1 %v9243_v27 }
 0x393   :  { %6536 = vmatprep.subr.bf16.mxu1 %v9248_v28 }
 0x394   :  { %5746 = vmatpush1.bf16.msra.mxu0 %v9198_v41 }
 0x395   :  { %5747 = vmatprep.subr.bf16.mxu0 %v9203_v29 }
 0x396   :  { %6537 = vmatpush1.bf16.msra.mxu1 %v9246_v1 }
 0x397   :  { %6538 = vmatprep.subr.bf16.mxu1 %v9251_v32 }
 0x398   :  { %5748 = vmatpush1.bf16.msra.mxu0 %v9201_v33 }
 0x399   :  { %5749 = vmatprep.subr.bf16.mxu0 %v9206_v16 }
 0x39a   :  { %6539 = vmatpush1.bf16.msra.mxu1 %v9249_v38 }
 0x39b   :  { %6540 = vmatprep.subr.bf16.mxu1 %v9256_v0 }
 0x39c   :  { %5750 = vmatpush1.bf16.msra.mxu0 %v9204_v34 }
 0x39d   :  { %5751 = vmatprep.subr.bf16.mxu0 %v9209_v36 }
 0x39e   :  { %6541 = vmatpush1.bf16.msra.mxu1 %v9254_v39 }
 0x39f   :  { %6542 = vmatprep.subr.bf16.mxu1 %v9261_v19 }
 0x3a0   :  { %5752 = vmatpush1.bf16.msra.mxu0 %v9207_v37 }
 0x3a1   :  { %5753 = vmatprep.subr.bf16.mxu0 %v9212_v42 }
 0x3a2   :  { %6543 = vmatpush1.bf16.msra.mxu1 %v9259_v43 }
 0x3a3   :  { %6544 = vmatprep.subr.bf16.mxu1 %v9266_v44 }
 0x3a4   :  { %5754 = vmatpush1.bf16.msra.mxu0 %v9210_v45 }
 0x3a5   :  { %5755 = vmatprep.subr.bf16.mxu0 %v9215_v46 }
 0x3a6   :  { %6545 = vmatpush1.bf16.msra.mxu1 %v9264_v35 }
 0x3a7   :  { %6546 = vmatprep.subr.bf16.mxu1 %v9271_v47 }
 0x3a8   :  { %5756 = vmatpush1.bf16.msra.mxu0 %v9213_v49 }
 0x3a9   :  { %5757 = vmatprep.subr.bf16.mxu0 %v9218_v7 }
 0x3aa   :  { %6547 = vmatpush1.bf16.msra.mxu1 %v9269_v50 }
 0x3ab   :  { %6548 = vmatprep.subr.bf16.mxu1 %v9276_v52  ;;  %v9289_v52 = vld [vmem:[#allocation10 + $0x180] ss:$12 sps:$4 sm:$0xff]  }
 0x3ac   :  { %5758 = vmatpush1.bf16.msra.mxu0 %v9216_v53  ;;  %v9293_v53 = vld [vmem:[#allocation10 + $0x188] ss:$12 sps:$4 sm:$0xff]  }
 0x3ad   :  { %5759 = vmatprep.subr.bf16.mxu0 %v9221_v54 }
 0x3ae   :  { %6549 = vmatpush1.bf16.msra.mxu1 %v9274_v57  ;;  %v9296_v57 = vld [vmem:[#allocation10 + $0x19c] ss:$12 sps:$4 sm:$0xff]  }
 0x3af   :  { %6550 = vmatprep.subr.bf16.mxu1 %v9281_v58  ;;  %v9297_v58 = vld [vmem:[#allocation10 + $0x260] ss:$12 sps:$4 sm:$0xff]  }
 0x3b0   :  { %5760 = vmatpush1.bf16.msra.mxu0 %v9219_v59  ;;  %v9294_v59 = vld [vmem:[#allocation10 + $0x198] ss:$12 sps:$4 sm:$0xff]  }
 0x3b1   :  { %5761 = vmatprep.subr.bf16.mxu0 %v9224_v4  ;;  %v9298_v4 = vld [vmem:[#allocation10 + $0x1a0] ss:$12 sps:$4 sm:$0xff]  }
 0x3b2   :  { %6551 = vmatpush1.bf16.msra.mxu1 %v9279_v60  ;;  %v9301_v60 = vld [vmem:[#allocation10 + $0x1b4] ss:$12 sps:$4 sm:$0xff]  }
 0x3b3   :  { %6552 = vmatprep.subr.bf16.mxu1 %v9286_v61  ;;  %v9302_v61 = vld [vmem:[#allocation10 + $0x278] ss:$12 sps:$4 sm:$0xff]  }
 0x3b4   :  { %5762 = vmatpush1.bf16.msra.mxu0 %v9222_v63  ;;  %v9299_v63 = vld [vmem:[#allocation10 + $0x1b0] ss:$12 sps:$4 sm:$0xff]  }
 0x3b5   :  { %8076 = vmatprep.subr.bf16.mxu0 %v9252_v24  ;;  %v9303_v24 = vld [vmem:[#allocation10 + $0x1b8] ss:$12 sps:$4 sm:$0xff]  }
 0x3b6   :  { %6553 = vmatpush1.bf16.msra.mxu1 %v9284_v51  ;;  %v9306_v51 = vld [vmem:[#allocation10 + $0x1cc] ss:$12 sps:$4 sm:$0xff]  }
 0x3b7   :  { %5764 = vmatmul.mubr.bf16.vlgmr.msra.gmra.mrb[24].mxu0 %v9994_v14  ;;  %6565 = vmatprep.subr.bf16.mxu1 %v9291_v62  ;;  %v9282_v14 = vld [vmem:[#allocation10 + $0x158] ss:$12 sps:$4 sm:$0xff]   ;;  %v9307_v62 = vld [vmem:[#allocation10 + $0x290] ss:$12 sps:$4 sm:$0xff]  }
 0x3b8   :  { %8077 = vmatpush3.bf16.msra.mxu0 %v9253_v2  ;;  %v9304_v2 = vld [vmem:[#allocation10 + $0x1c8] ss:$12 sps:$4 sm:$0xff]  }
 0x3b9   :  { %8078 = vmatprep.subr.bf16.mxu0 %v9257_v3  ;;  %v9308_v3 = vld [vmem:[#allocation10 + $0x1d0] ss:$12 sps:$4 sm:$0xff]  }
 0x3bc   :  { %8079 = vmatpush3.bf16.msra.mxu0 %v9258_v25  ;;  %v9311_v25 = vld [vmem:[#allocation10 + $0x1e4] ss:$12 sps:$4 sm:$0xff]  }
 0x3bd   :  { %8080 = vmatprep.subr.bf16.mxu0 %v9262_v5  ;;  %v9312_v5 = vld [vmem:[#allocation10 + $0x2a8] ss:$12 sps:$4 sm:$0xff]  }
 0x3c0   :  { %8081 = vmatpush3.bf16.msra.mxu0 %v9263_v22  ;;  %v9309_v22 = vld [vmem:[#allocation10 + $0x1e0] ss:$12 sps:$4 sm:$0xff]  }
 0x3c1   :  { %8082 = vmatprep.subr.bf16.mxu0 %v9267_v48  ;;  %v9313_v48 = vld [vmem:[#allocation10 + $0x1e8] ss:$12 sps:$4 sm:$0xff]  }
 0x3c4   :  { %8083 = vmatpush3.bf16.msra.mxu0 %v9268_v8  ;;  %v9316_v8 = vld [vmem:[#allocation10 + $0x1fc] ss:$12 sps:$4 sm:$0xff]  }
 0x3c5   :  { %8084 = vmatprep.subr.bf16.mxu0 %v9272_v6  ;;  %v9317_v6 = vld [vmem:[#allocation10 + $0x2c0] ss:$12 sps:$4 sm:$0xff]  }
 0x3c8   :  { %8085 = vmatpush3.bf16.msra.mxu0 %v9273_v23  ;;  %v9314_v23 = vld [vmem:[#allocation10 + $0x1f8] ss:$12 sps:$4 sm:$0xff]  }
 0x3c9   :  { %8086 = vmatprep.subr.bf16.mxu0 %v9277_v13  ;;  %v9318_v13 = vld [vmem:[#allocation10 + $0x200] ss:$12 sps:$4 sm:$0xff]  }
 0x3cc   :  { %8087 = vmatpush3.bf16.msra.mxu0 %v9278_v10  ;;  %v9321_v10 = vld [vmem:[#allocation10 + $0x214] ss:$12 sps:$4 sm:$0xff]  }
 0x3cd   :  { %8088 = vmatprep.subr.bf16.mxu0 %v9282_v14  ;;  %v9322_v14 = vld [vmem:[#allocation10 + $0x2d8] ss:$12 sps:$4 sm:$0xff]  }
 0x3d0   :  { %8089 = vmatpush3.bf16.msra.mxu0 %v9283_v40  ;;  %v9319_v40 = vld [vmem:[#allocation10 + $0x210] ss:$12 sps:$4 sm:$0xff]  }
 0x3d1   :  { %8090 = vmatprep.subr.bf16.mxu0 %v9287_v12  ;;  %v9323_v12 = vld [vmem:[#allocation10 + $0x218] ss:$12 sps:$4 sm:$0xff]  }
 0x3d4   :  { %8091 = vmatpush3.bf16.msra.mxu0 %v9288_v15 }
 0x3d5   :  { %8098 = vmatprep.subr.bf16.mxu0 %v9292_v18  ;;  %v9326_v18 = vld [vmem:[#allocation10 + $0x22c] ss:$12 sps:$4 sm:$0xff]  }
 0x40a   :  { %v4838_v11 = vpop.f32.mrb[20].mxu0 }
 0x40b   :  { %v8202_v27 = vadd.f32 %v4838_v11, %v3378_v21  ;;  %v5010_v28 = vpop.f32.mrb[28].mxu1  ;;  %v4840_v41 = vpop.f32.mrb[21].mxu0  ;;  %v9324_v11 = vld [vmem:[#allocation10 + $0x228] ss:$12 sps:$4 sm:$0xff]  }
 0x40c   :  { %v8206_v29 = vadd.f32 %v5010_v28, %v3386_v26  ;;  %v8203_v1 = vadd.f32 %v4840_v41, %v3382_v17  ;;  %v5012_v32 = vpop.f32.mrb[29].mxu1  ;;  %v4842_v33 = vpop.f32.mrb[22].mxu0  ;;  %v9331_v41 = vld [vmem:[#allocation10 + $0x244] ss:$12 sps:$4 sm:$0xff]  }
 0x40d   :  { %v8207_v16 = vadd.f32 %v5012_v32, %v3390_v9  ;;  %v8204_v38 = vadd.f32 %v4842_v33, %v3378_v21  ;;  %v5014_v0 = vpop.f32.mrb[30].mxu1  ;;  %v4844_v34 = vpop.f32.mrb[23].mxu0  ;;  %v5019_v37 = vmax.f32 %v8202_v27, 0.0  ;;  %v9328_v27 = vld [vmem:[#allocation10 + $0x230] ss:$12 sps:$4 sm:$0xff]   ;;  %v9354_v32 = vld [vmem:[#allocation12] sm:$0xff]  }
 0x40e   :  { %v8208_v36 = vadd.f32 %v5014_v0, %v3386_v26  ;;  %v8205_v39 = vadd.f32 %v4844_v34, %v3382_v17  ;;  %v5016_v19 = vpop.f32.mrb[31].mxu1  ;;  %v5021_v44 = vmax.f32 %v8206_v29, 0.0  ;;  %v5020_v56 = vmax.f32 %v8203_v1, 0.0  ;;  %v9353_v29 = vld [vmem:[#allocation12 + $0x40] sm:$0xff]   ;;  %v9334_v33 = vld [vmem:[#allocation10 + $0x25c] ss:$12 sps:$4 sm:$0xff]  }
 0x40f   :  { %v5023_v42 = vmax.f32 %v8204_v38, 0.0  ;;  %v8209_v43 = vadd.f32 %v5016_v19, %v3390_v9  ;;  %v5022_v35 = vmax.f32 %v8207_v16, 0.0  ;;  %v9329_v1 = vld [vmem:[#allocation10 + $0x240] ss:$12 sps:$4 sm:$0xff]   ;;  %v9332_v38 = vld [vmem:[#allocation10 + $0x258] ss:$12 sps:$4 sm:$0xff]  }
 0x410   :  { %v5025_v45 = vmax.f32 %v8208_v36, 0.0  ;;  %v5024_v46 = vmax.f32 %v8205_v39, 0.0  ;;  %v9355_v16 = vld [vmem:[#allocation12 + $0x48] sm:$0xff]   ;;  %v9337_v34 = vld [vmem:[#allocation10 + $0x274] ss:$12 sps:$4 sm:$0xff]  }
 0x411   :  { %v5027_v47 = vpack.c.bf16 %v5023_v42, %v5019_v37  ;;  %v5026_v49 = vmax.f32 %v8209_v43, 0.0  ;;  %v9356_v0 = vld [vmem:[#allocation12 + $0x8] sm:$0xff]   ;;  %v9357_v36 = vld [vmem:[#allocation12 + $0x50] sm:$0xff]   ;;  %v9359_v42 = vld [vmem:[#allocation12 + $0x58] sm:$0xff]  }
 0x412   :  { %v10017_v7 = vpack.c.bf16 %v5025_v45, %v5021_v44  ;;  %v5028_v50 = vpack.c.bf16 %v5024_v46, %v5020_v56  ;;  %v9335_v39 = vld [vmem:[#allocation10 + $0x270] ss:$12 sps:$4 sm:$0xff]   ;;  %v9340_v37 = vld [vmem:[#allocation10 + $0x28c] ss:$12 sps:$4 sm:$0xff]   ;;  %v9338_v43 = vld [vmem:[#allocation10 + $0x288] ss:$12 sps:$4 sm:$0xff]  }
 0x413   :  { %v5030_v54 = vpack.c.bf16 %v5026_v49, %v5022_v35  ;;  %v9358_v19 = vld [vmem:[#allocation12 + $0x10] sm:$0xff]   ;;  %v9360_v44 = vld [vmem:[#allocation12 + $0x18] sm:$0xff]   ;;  %v9361_v45 = vld [vmem:[#allocation12 + $0x60] sm:$0xff]  }
 0x414   :  { %6554 = vmatprep.mubr.bf16.mxu1 %v5028_v50  ;;  %6640 = vmatprep.mubr.bf16.mxu0 %v5028_v50  ;;  %v9343_v56 = vld [vmem:[#allocation10 + $0x2a4] ss:$12 sps:$4 sm:$0xff]   ;;  %v9341_v46 = vld [vmem:[#allocation10 + $0x2a0] ss:$12 sps:$4 sm:$0xff]  }
 0x415   :  { %6555 = vmatmul.mubr.bf16.vlgmr.msra.gmra.mrb[40].mxu1 %v5027_v47  ;;  %6641 = vmatmul.mubr.bf16.vlgmr.msra.gmra.mrb[28].mxu0 %v5027_v47  ;;  %v9362_v35 = vld [vmem:[#allocation12 + $0x20] sm:$0xff]   ;;  %v9346_v47 = vld [vmem:[#allocation10 + $0x2bc] ss:$12 sps:$4 sm:$0xff]  }
 0x416   :  { %6566 = vmatpush1.bf16.msra.mxu1 %v9289_v52  ;;  %8099 = vmatpush3.bf16.msra.mxu0 %v9293_v53  ;;  %v9363_v49 = vld [vmem:[#allocation12 + $0x68] sm:$0xff]   ;;  %v5159_v50 = vld [vmem:[%s10061_s10] sm:$0x7]  ;;  %v9344_v52 = vld [vmem:[#allocation10 + $0x2b8] ss:$12 sps:$4 sm:$0xff]  }
 0x417   :  { %6597 = vmatprep.mubr.bf16.mxu1 %v5030_v54  ;;  %6681 = vmatprep.mubr.bf16.mxu0 %v5030_v54  ;;  %v9364_v53 = vld [vmem:[#allocation12 + $0x28] sm:$0xff]   ;;  %v9349_v54 = vld [vmem:[#allocation10 + $0x2d4] ss:$12 sps:$4 sm:$0xff]  }
 0x418   :  { %6567 = vmatprep.subr.bf16.mxu1 %v9296_v57  ;;  %8100 = vmatprep.subr.bf16.mxu0 %v9297_v58  ;;  %v9365_v57 = vld [vmem:[#allocation12 + $0x70] sm:$0xff]   ;;  %v5172_v58 = vrot.slane %v5159_v50, %v9918_v55 }
 0x41a   :  { %6568 = vmatpush1.bf16.msra.mxu1 %v9294_v59  ;;  %8101 = vmatpush3.bf16.msra.mxu0 %v9298_v4  ;;  %v9347_v59 = vld [vmem:[#allocation10 + $0x2d0] ss:$12 sps:$4 sm:$0xff]  }
 0x41b   :  { %6569 = vmatprep.subr.bf16.mxu1 %v9301_v60  ;;  %8102 = vmatprep.subr.bf16.mxu0 %v9302_v61  ;;  %v9366_v4 = vld [vmem:[#allocation12 + $0x30] sm:$0xff]   ;;  %v9352_v61 = vld [vmem:[#allocation10 + $0x2ec] ss:$12 sps:$4 sm:$0xff]  }
 0x41e   :  { %6570 = vmatpush1.bf16.msra.mxu1 %v9299_v63  ;;  %8103 = vmatpush3.bf16.msra.mxu0 %v9303_v24  ;;  %v9367_v63 = vld [vmem:[#allocation12 + $0x78] sm:$0xff]  }
 0x41f   :  { %6571 = vmatprep.subr.bf16.mxu1 %v9306_v51  ;;  %8104 = vmatprep.subr.bf16.mxu0 %v9307_v62 }
 0x422   :  { %6572 = vmatpush1.bf16.msra.mxu1 %v9304_v2  ;;  %8105 = vmatpush3.bf16.msra.mxu0 %v9308_v3 }
 0x423   :  { %6573 = vmatprep.subr.bf16.mxu1 %v9311_v25  ;;  %8106 = vmatprep.subr.bf16.mxu0 %v9312_v5  ;;  %v9350_v25 = vld [vmem:[#allocation10 + $0x2e8] ss:$12 sps:$4 sm:$0xff]   ;;  %v9368_v5 = vld [vmem:[#allocation12 + $0x38] sm:$0xff]  }
 0x426   :  { %6574 = vmatpush1.bf16.msra.mxu1 %v9309_v22  ;;  %8107 = vmatpush3.bf16.msra.mxu0 %v9313_v48 }
 0x427   :  { %6575 = vmatprep.subr.bf16.mxu1 %v9316_v8  ;;  %8108 = vmatprep.subr.bf16.mxu0 %v9317_v6 }
 0x42a   :  { %6576 = vmatpush1.bf16.msra.mxu1 %v9314_v23  ;;  %8109 = vmatpush3.bf16.msra.mxu0 %v9318_v13 }
 0x42b   :  { %v8048_v15 = vpop.f32.mrb[32].mxu1  ;;  %6577 = vmatprep.subr.bf16.mxu1 %v9321_v10  ;;  %8110 = vmatprep.subr.bf16.mxu0 %v9322_v14  ;;  %v5164_v14 = vrot.slane %v5159_v50, %v9892_v30 }
 0x42c   :  { %v8049_v21 = vpop.f32.mrb[33].mxu1 }
 0x42d   :  { %v10019_v26 = vadd.f32 %v8049_v21, %v8048_v15  ;;  %v8051_v17 = vpop.f32.mrb[34].mxu1 }
 0x42e   :  { %v8052_v9 = vpop.f32.mrb[35].mxu1  ;;  %6578 = vmatpush1.bf16.msra.mxu1 %v9319_v40  ;;  %8111 = vmatpush3.bf16.msra.mxu0 %v9323_v12  ;;  %v5168_v40 = vrot.slane %v5159_v50, %v9895_v31  ;;  %v9388_v50 = vld [vmem:[#allocation12 + $0x120] sm:$0xff]  }
 0x42f   :  { %v10021_v28 = vadd.f32 %v8052_v9, %v8051_v17  ;;  %6579 = vmatprep.subr.bf16.mxu1 %v9326_v18  ;;  %8112 = vmatprep.subr.bf16.mxu0 %v9327_v20  ;;  %v5809_v51 = vadd.f32 %v10019_v26, %v5172_v58 }
 0x431   :  { %v5812_v22 = vadd.f32 %v10021_v28, %v5172_v58  ;;  %v9394_v58 = vld [vmem:[#allocation12 + $0x170] sm:$0xff]  }
 0x432   :  { %6580 = vmatpush1.bf16.msra.mxu1 %v9324_v11  ;;  %8113 = vmatpush3.bf16.msra.mxu0 %v9328_v27 }
 0x433   :  { %6581 = vmatprep.subr.bf16.mxu1 %v9331_v41  ;;  %8120 = vmatprep.subr.bf16.mxu0 %v9353_v29  ;;  %v9369_v29 = vld [vmem:[#allocation12 + $0xc0] sm:$0xff]  }
 0x435   :  { %6682 = vmatmul.mubr.bf16.vlgmr.msra.gmra.mrb[32].mxu0 %v10017_v7 }
 0x436   :  { %6582 = vmatpush1.bf16.msra.mxu1 %v9329_v1  ;;  %8121 = vmatpush3.bf16.msra.mxu0 %v9354_v32  ;;  %v9370_v1 = vld [vmem:[#allocation12 + $0x140] sm:$0xff]  }
 0x437   :  { %6583 = vmatprep.subr.bf16.mxu1 %v9334_v33  ;;  %8122 = vmatprep.subr.bf16.mxu0 %v9355_v16  ;;  %v9371_v32 = vld [vmem:[#allocation12 + $0x80] sm:$0xff]  }
 0x438   :  { %v9372_v16 = vld [vmem:[#allocation12 + $0x100] sm:$0xff]  }
 0x43a   :  { %6584 = vmatpush1.bf16.msra.mxu1 %v9332_v38  ;;  %8123 = vmatpush3.bf16.msra.mxu0 %v9356_v0  ;;  %v9373_v38 = vld [vmem:[#allocation12 + $0xc8] sm:$0xff]  }
 0x43b   :  { %6585 = vmatprep.subr.bf16.mxu1 %v9337_v34  ;;  %8124 = vmatprep.subr.bf16.mxu0 %v9357_v36  ;;  %v9374_v0 = vld [vmem:[#allocation12 + $0x148] sm:$0xff]   ;;  %v9377_v36 = vld [vmem:[#allocation12 + $0xd0] sm:$0xff]  }
 0x43c   :  { %v9375_v34 = vld [vmem:[#allocation12 + $0x88] sm:$0xff]  }
 0x43e   :  { %6586 = vmatpush1.bf16.msra.mxu1 %v9335_v39  ;;  %8125 = vmatpush3.bf16.msra.mxu0 %v9358_v19  ;;  %v9376_v39 = vld [vmem:[#allocation12 + $0x108] sm:$0xff]   ;;  %v9378_v19 = vld [vmem:[#allocation12 + $0x150] sm:$0xff]  }
 0x43f   :  { %6587 = vmatprep.subr.bf16.mxu1 %v9340_v37  ;;  %8126 = vmatprep.subr.bf16.mxu0 %v9359_v42  ;;  %v9379_v37 = vld [vmem:[#allocation12 + $0x90] sm:$0xff]   ;;  %v9381_v42 = vld [vmem:[#allocation12 + $0xd8] sm:$0xff]  }
 0x442   :  { %6588 = vmatpush1.bf16.msra.mxu1 %v9338_v43  ;;  %8127 = vmatpush3.bf16.msra.mxu0 %v9360_v44  ;;  %v9380_v43 = vld [vmem:[#allocation12 + $0x110] sm:$0xff]   ;;  %v9382_v44 = vld [vmem:[#allocation12 + $0x158] sm:$0xff]  }
 0x443   :  { %6589 = vmatprep.subr.bf16.mxu1 %v9343_v56  ;;  %8128 = vmatprep.subr.bf16.mxu0 %v9361_v45  ;;  %v9383_v56 = vld [vmem:[#allocation12 + $0x98] sm:$0xff]   ;;  %v9385_v45 = vld [vmem:[#allocation12 + $0xe0] sm:$0xff]  }
 0x446   :  { %6590 = vmatpush1.bf16.msra.mxu1 %v9341_v46  ;;  %8129 = vmatpush3.bf16.msra.mxu0 %v9362_v35  ;;  %v9384_v46 = vld [vmem:[#allocation12 + $0x118] sm:$0xff]   ;;  %v9386_v35 = vld [vmem:[#allocation12 + $0x160] sm:$0xff]  }
 0x447   :  { %6591 = vmatprep.subr.bf16.mxu1 %v9346_v47  ;;  %8130 = vmatprep.subr.bf16.mxu0 %v9363_v49  ;;  %v9387_v47 = vld [vmem:[#allocation12 + $0xa0] sm:$0xff]   ;;  %v9389_v49 = vld [vmem:[#allocation12 + $0xe8] sm:$0xff]  }
 0x44a   :  { %6592 = vmatpush1.bf16.msra.mxu1 %v9344_v52  ;;  %8131 = vmatpush3.bf16.msra.mxu0 %v9364_v53  ;;  %v9390_v52 = vld [vmem:[#allocation12 + $0x168] sm:$0xff]  }
 0x44b   :  { %v8070_v60 = vpop.f32.mrb[36].mxu1  ;;  %6593 = vmatprep.subr.bf16.mxu1 %v9349_v54  ;;  %8132 = vmatprep.subr.bf16.mxu0 %v9365_v57  ;;  %v9391_v53 = vld [vmem:[#allocation12 + $0xa8] sm:$0xff]   ;;  %v9393_v57 = vld [vmem:[#allocation12 + $0xf0] sm:$0xff]  }
 0x44c   :  { %v8071_v24 = vpop.f32.mrb[37].mxu1  ;;  %v9392_v54 = vld [vmem:[#allocation12 + $0x128] sm:$0xff]  }
 0x44d   :  { %v8072_v62 = vadd.f32 %v8071_v24, %v8070_v60  ;;  %v8073_v2 = vpop.f32.mrb[38].mxu1  ;;  %v9397_v60 = vld [vmem:[#allocation12 + $0xf8] sm:$0xff]  }
 0x44e   :  { %v8074_v3 = vpop.f32.mrb[39].mxu1  ;;  %6594 = vmatpush1.bf16.msra.mxu1 %v9347_v59  ;;  %8133 = vmatpush3.bf16.msra.mxu0 %v9366_v4  ;;  %v9395_v59 = vld [vmem:[#allocation12 + $0xb0] sm:$0xff]   ;;  %v9400_v24 = vld [vmem:[#allocation12 + $0x138] sm:$0xff]  }
 0x44f   :  { %v5850_v48 = vadd.f32 %v8072_v62, %v5809_v51  ;;  %v8075_v8 = vadd.f32 %v8074_v3, %v8073_v2  ;;  %6595 = vmatprep.subr.bf16.mxu1 %v9352_v61  ;;  %8134 = vmatprep.subr.bf16.mxu0 %v9367_v63  ;;  %v9396_v4 = vld [vmem:[#allocation12 + $0x130] sm:$0xff]   ;;  %v9398_v61 = vld [vmem:[#allocation12 + $0x178] sm:$0xff]  }
 0x450   :  { %v9399_v63 = vld [vmem:[#allocation12 + $0xb8] sm:$0xff]  }
 0x451   :  { %v5853_v6 = vadd.f32 %v8075_v8, %v5812_v22  ;;  %v5858_v23 = vmax.f32 %v5850_v48, 0.0  ;;  %v5993_v22 = vld [vmem:[%s10063_s12] sm:$0x7] }
 0x452   :  { %6596 = vmatpush1.bf16.msra.mxu1 %v9350_v25  ;;  %8135 = vmatpush3.bf16.msra.mxu0 %v9368_v5  ;;  %v6006_v48 = vrot.slane %v5993_v22, %v9918_v55 }
 0x453   :  { %v5861_v13 = vmax.f32 %v5853_v6, 0.0  ;;  %8142 = vmatprep.subr.bf16.mxu1 %v9369_v29  ;;  %8164 = vmatprep.subr.bf16.mxu0 %v9370_v1 }
 0x455   :  { %v10030_v10 = vpack.c.bf16 %v5861_v13, %v5858_v23  ;;  %6598 = vmatmul.mubr.bf16.vlgmr.msra.gmra.mrb[40].mxu1 %v10017_v7 }
 0x456   :  { %8143 = vmatpush3.bf16.msra.mxu1 %v9371_v32 }
 0x457   :  { %8144 = vmatprep.subr.bf16.mxu1 %v9373_v38 }
 0x45a   :  { %8145 = vmatpush3.bf16.msra.mxu1 %v9375_v34 }
 0x45b   :  { %8146 = vmatprep.subr.bf16.mxu1 %v9377_v36 }
 0x45e   :  { %8147 = vmatpush3.bf16.msra.mxu1 %v9379_v37 }
 0x45f   :  { %8148 = vmatprep.subr.bf16.mxu1 %v9381_v42 }
 0x462   :  { %8149 = vmatpush3.bf16.msra.mxu1 %v9383_v56 }
 0x463   :  { %8150 = vmatprep.subr.bf16.mxu1 %v9385_v45 }
 0x466   :  { %8151 = vmatpush3.bf16.msra.mxu1 %v9387_v47 }
 0x467   :  { %8152 = vmatprep.subr.bf16.mxu1 %v9389_v49 }
 0x46a   :  { %8153 = vmatpush3.bf16.msra.mxu1 %v9391_v53 }
 0x46b   :  { %8154 = vmatprep.subr.bf16.mxu1 %v9393_v57 }
 0x46e   :  { %8155 = vmatpush3.bf16.msra.mxu1 %v9395_v59 }
 0x46f   :  { %8156 = vmatprep.subr.bf16.mxu1 %v9397_v60 }
 0x472   :  { %8157 = vmatpush3.bf16.msra.mxu1 %v9399_v63 }
 0x48a   :  { %v5765_v12 = vpop.f32.mrb[24].mxu0 }
 0x48b   :  { %v8210_v15 = vadd.f32 %v5765_v12, %v5164_v14  ;;  %v5767_v18 = vpop.f32.mrb[25].mxu0 }
 0x48c   :  { %v8211_v20 = vadd.f32 %v5767_v18, %v5168_v40  ;;  %v5769_v21 = vpop.f32.mrb[26].mxu0 }
 0x48d   :  { %v8212_v26 = vadd.f32 %v5769_v21, %v5164_v14  ;;  %v5771_v17 = vpop.f32.mrb[27].mxu0  ;;  %v5856_v11 = vmax.f32 %v8210_v15, 0.0 }
 0x48e   :  { %v8213_v9 = vadd.f32 %v5771_v17, %v5168_v40  ;;  %v5857_v28 = vmax.f32 %v8211_v20, 0.0 }
 0x48f   :  { %v5859_v27 = vmax.f32 %v8212_v26, 0.0 }
 0x490   :  { %v5860_v41 = vmax.f32 %v8213_v9, 0.0  ;;  %v5998_v9 = vrot.slane %v5993_v22, %v9892_v30 }
 0x491   :  { %v5862_v7 = vpack.c.bf16 %v5859_v27, %v5856_v11  ;;  %v6002_v11 = vrot.slane %v5993_v22, %v9895_v31 }
 0x492   :  { %v5863_v33 = vpack.c.bf16 %v5860_v41, %v5857_v28 }
 0x494   :  { %7122 = vmatprep.mubr.bf16.mxu0 %v5863_v33 }
 0x495   :  { %7123 = vmatmul.mubr.bf16.vlgmr.msra.gmra.mrb[36].mxu0 %v5862_v7 }
 0x496   :  { %8165 = vmatpush3.bf16.msra.mxu0 %v9372_v16 }
 0x497   :  { %8166 = vmatprep.subr.bf16.mxu0 %v9374_v0 }
 0x49a   :  { %8167 = vmatpush3.bf16.msra.mxu0 %v9376_v39 }
 0x49b   :  { %8168 = vmatprep.subr.bf16.mxu0 %v9378_v19 }
 0x49e   :  { %8169 = vmatpush3.bf16.msra.mxu0 %v9380_v43  ;;  %v7983_v43 = vld [vmem:[%s10065_s14] ss:$0 sm:$0xff] }
 0x49f   :  { %8170 = vmatprep.subr.bf16.mxu0 %v9382_v44 }
 0x4a2   :  { %8171 = vmatpush3.bf16.msra.mxu0 %v9384_v46 }
 0x4a3   :  { %8172 = vmatprep.subr.bf16.mxu0 %v9386_v35 }
 0x4a6   :  { %8173 = vmatpush3.bf16.msra.mxu0 %v9388_v50 }
 0x4a7   :  { %8174 = vmatprep.subr.bf16.mxu0 %v9390_v52 }
 0x4aa   :  { %8175 = vmatpush3.bf16.msra.mxu0 %v9392_v54 }
 0x4ab   :  { %8176 = vmatprep.subr.bf16.mxu0 %v9394_v58 }
 0x4ae   :  { %8177 = vmatpush3.bf16.msra.mxu0 %v9396_v4 }
 0x4af   :  { %8178 = vmatprep.subr.bf16.mxu0 %v9398_v61 }
 0x4b2   :  { %8179 = vmatpush3.bf16.msra.mxu0 %v9400_v24 }
 0x4e8   :  { %v8092_v51 = vpop.f32.mrb[28].mxu0 }
 0x4e9   :  { %v8093_v62 = vpop.f32.mrb[29].mxu0 }
 0x4ea   :  { %v8094_v2 = vadd.f32 %v8093_v62, %v8092_v51  ;;  %v8095_v3 = vpop.f32.mrb[30].mxu0 }
 0x4eb   :  { %v8096_v25 = vpop.f32.mrb[31].mxu0 }
 0x4ec   :  { %v8097_v5 = vadd.f32 %v8096_v25, %v8095_v3  ;;  %v6643_v23 = vadd.f32 %v8094_v2, %v6006_v48 }
 0x4ee   :  { %v6646_v12 = vadd.f32 %v8097_v5, %v6006_v48 }
 0x508   :  { %v8114_v8 = vpop.f32.mrb[32].mxu0 }
 0x509   :  { %v8115_v6 = vpop.f32.mrb[33].mxu0 }
 0x50a   :  { %v8116_v13 = vadd.f32 %v8115_v6, %v8114_v8  ;;  %v8117_v14 = vpop.f32.mrb[34].mxu0 }
 0x50b   :  { %v8118_v40 = vpop.f32.mrb[35].mxu0 }
 0x50c   :  { %v6684_v15 = vadd.f32 %v8116_v13, %v6643_v23  ;;  %v8119_v18 = vadd.f32 %v8118_v40, %v8117_v14 }
 0x50e   :  { %v6687_v20 = vadd.f32 %v8119_v18, %v6646_v12  ;;  %v6692_v21 = vmax.f32 %v6684_v15, 0.0 }
 0x510   :  { %v6695_v26 = vmax.f32 %v6687_v20, 0.0 }
 0x512   :  { %v6698_v17 = vpack.c.bf16 %v6695_v26, %v6692_v21 }
 0x514   :  { %7204 = vmatprep.mubr.bf16.mxu0 %v6698_v17 }
 0x528   :  { %v6599_v27 = vpop.f32.mrb[40].mxu1 }
 0x529   :  { %v8214_v55 = vadd.f32 %v6599_v27, %v5998_v9  ;;  %v6601_v28 = vpop.f32.mrb[41].mxu1 }
 0x52a   :  { %v8215_v41 = vadd.f32 %v6601_v28, %v6002_v11  ;;  %v6603_v29 = vpop.f32.mrb[42].mxu1 }
 0x52b   :  { %v8216_v1 = vadd.f32 %v6603_v29, %v5998_v9  ;;  %v6605_v32 = vpop.f32.mrb[43].mxu1  ;;  %v6690_v33 = vmax.f32 %v8214_v55, 0.0 }
 0x52c   :  { %v8217_v7 = vadd.f32 %v6605_v32, %v6002_v11  ;;  %v6691_v38 = vmax.f32 %v8215_v41, 0.0 }
 0x52d   :  { %v6693_v16 = vmax.f32 %v8216_v1, 0.0 }
 0x52e   :  { %v6694_v0 = vmax.f32 %v8217_v7, 0.0 }
 0x52f   :  { %v6696_v34 = vpack.c.bf16 %v6693_v16, %v6690_v33 }
 0x530   :  { %v6697_v36 = vpack.c.bf16 %v6694_v0, %v6691_v38 }
 0x531   :  { %7163 = vmatprep.mubr.bf16.mxu1 %v6696_v34 }
 0x532   :  { %7164 = vmatmul.mubr.bf16.vlgmr.msra.gmra.mrb[44].mxu1 %v10030_v10  ;;  %7205 = vmatmul.mubr.bf16.vlgmr.msra.gmra.mrb[40].mxu0 %v6697_v36 }
 0x568   :  { %v8136_v30 = vpop.f32.mrb[36].mxu0 }
 0x569   :  { %v8137_v31 = vpop.f32.mrb[37].mxu0 }
 0x56a   :  { %v8138_v39 = vadd.f32 %v8137_v31, %v8136_v30  ;;  %v8139_v19 = vpop.f32.mrb[38].mxu0 }
 0x56b   :  { %v8140_v37 = vpop.f32.mrb[39].mxu0 }
 0x56c   :  { %v8141_v42 = vadd.f32 %v8140_v37, %v8139_v19  ;;  %v7125_v35 = vadd.f32 %v8138_v39, %v7983_v43 }
 0x56e   :  { %v7128_v54 = vadd.f32 %v8141_v42, %v7983_v43 }
 0x605   :  { %v8158_v44 = vpop.f32.mrb[44].mxu1  ;;  %v8180_v56 = vpop.f32.mrb[40].mxu0 }
 0x606   :  { %v8159_v45 = vpop.f32.mrb[45].mxu1  ;;  %v8181_v46 = vpop.f32.mrb[41].mxu0 }
 0x607   :  { %v8160_v47 = vadd.f32 %v8159_v45, %v8158_v44  ;;  %v8182_v49 = vadd.f32 %v8181_v46, %v8180_v56  ;;  %v8161_v50 = vpop.f32.mrb[46].mxu1  ;;  %v8183_v10 = vpop.f32.mrb[42].mxu0 }
 0x608   :  { %v8162_v52 = vpop.f32.mrb[47].mxu1  ;;  %v8184_v53 = vpop.f32.mrb[43].mxu0 }
 0x609   :  { %v7166_v57 = vadd.f32 %v8160_v47, %v7125_v35  ;;  %v8163_v58 = vadd.f32 %v8162_v52, %v8161_v50  ;;  %v8185_v59 = vadd.f32 %v8184_v53, %v8183_v10 }
 0x60b   :  { %v7207_v4 = vadd.f32 %v8182_v49, %v7166_v57  ;;  %v7169_v60 = vadd.f32 %v8163_v58, %v7128_v54 }
 0x60d   :  { %7213 = vst [vmem:[%s10066_s15] sm:$0xff] %v7207_v4  ;;  %v7210_v61 = vadd.f32 %v8185_v59, %v7169_v60 }
 0x60f   :  { %7214 = vst [vmem:[%s10066_s15 + $0x8] sm:$0xff] %v7210_v61 }
 0x610   :  { %7219 = vsyncpa [#allocation3], 1 }
 0x611   :  { %7220 = vsyncpa [#allocation5], 1 }
 0x612   :  { %7221 = vsyncpa [#allocation8], 1 }
 0x613   :  { %7222 = vsyncpa [#allocation11], 1 }

</bundles_post_ra>
